<compile_context>
chip_gen: v6e
topology: v6e:2x2x1
jax: 0.10.0
libtpu: 0.0.40
codegen_flags: <defaults>
</compile_context>

<pallas_src>
import jax
import jax.numpy as jnp
from jax import lax
from jax.experimental import pallas as pl
from jax.experimental.pallas import tpu as pltpu

VOCAB = 512      # stand-in for config.vocab_size = 16296 (small, lane-aligned)
HIDDEN = 128     # stand-in for BERT hidden_size = 768
SEQ_PAD = 8      # triple has 3 tokens; padded to 8 sublanes
NEG_K = 3        # config.negative_sample_num
LN_EPS = 1e-6    # stand-in LayerNorm eps (pad rows are exactly zero -> safe)


# ----------------------------- in-kernel compute -----------------------------

def _encode(x, w1, b1):
    """BERT stand-in: dense + tanh + LayerNorm over the hidden (lane) axis."""
    h = jnp.tanh(jnp.dot(x, w1, preferred_element_type=jnp.float32) + b1)
    mu = jnp.mean(h, axis=-1, keepdims=True)
    var = jnp.mean((h - mu) ** 2, axis=-1, keepdims=True)
    return (h - mu) * lax.rsqrt(var + LN_EPS)


def _triple_stats(t0, t1, t2,
                  gemb, gw1, gb1, gW, gb,
                  demb, dw1, db1, dwd, dbd,
                  gx_ref, dx_ref, rows_ref, sel_ref):
    """Fused generate()+discriminate() for one triple (t0, t1, t2).

    Returns:
      q     [SEQ_PAD, VOCAB]  rows 0..2 = softmax q_h, q_r, q_t
      stats [1, 128]          lanes 0..2 = p_hat_h/r/t, lanes 3..5 = q look-ups
    """
    H, V, S = HIDDEN, VOCAB, SEQ_PAD

    # ---- generator: 3 masked copies of the triple, stacked in one batch ----
    e0 = gemb[pl.ds(t0, 1), :]
    e1 = gemb[pl.ds(t1, 1), :]
    e2 = gemb[pl.ds(t2, 1), :]
    em = gemb[0:1, :]                      # [MASK] = token id 0

    gx_ref[...] = jnp.zeros((3 * S, H), jnp.float32)
    # variant "mask head" (rows 0..7)
    gx_ref[0:1, :] = em
    gx_ref[1:2, :] = e1
    gx_ref[2:3, :] = e2
    # variant "mask relation" (rows 8..15)
    gx_ref[S:S + 1, :] = e0
    gx_ref[S + 1:S + 2, :] = em
    gx_ref[S + 2:S + 3, :] = e2
    # variant "mask tail" (rows 16..23)
    gx_ref[2 * S:2 * S + 1, :] = e0
    gx_ref[2 * S + 1:2 * S + 2, :] = e1
    gx_ref[2 * S + 2:2 * S + 3, :] = em

    grepr = _encode(gx_ref[...], gw1[...], gb1[...])          # [3S, H]

    # head inputs: repr of (masked-h, pos 0), (masked-r, pos 1), (masked-t, pos 2)
    rows_ref[...] = jnp.zeros((S, H), jnp.float32)
    rows_ref[0:1, :] = grepr[0:1, :]
    rows_ref[1:2, :] = grepr[S + 1:S + 2, :]
    rows_ref[2:3, :] = grepr[2 * S + 2:2 * S + 3, :]

    # one matmul against the concatenated [H, 3V] head weight (Wh | Wr | Wt)
    logits = jnp.dot(rows_ref[...], gW[...],
                     preferred_element_type=jnp.float32) + gb[...]   # [S, 3V]
    sel_ref[...] = jnp.zeros((S, V), jnp.float32)
    sel_ref[0:1, :] = logits[0:1, 0:V]
    sel_ref[1:2, :] = logits[1:2, V:2 * V]
    sel_ref[2:3, :] = logits[2:3, 2 * V:3 * V]

    sel = sel_ref[...]
    m = jnp.max(sel, axis=-1, keepdims=True)
    e = jnp.exp(sel - m)
    q = e / jnp.sum(e, axis=-1, keepdims=True)                # [S, V] (rows 0..2)

    # look_up(triple, q_*): probability at the triple's own token, per position
    row_s1 = lax.broadcasted_iota(jnp.int32, (S, 1), 0)
    tvec = jnp.where(row_s1 == 0, t0,
                     jnp.where(row_s1 == 1, t1,
                               jnp.where(row_s1 == 2, t2, -1)))
    lane_v = lax.broadcasted_iota(jnp.int32, (S, V), 1)
    qlook = jnp.sum(jnp.where(lane_v == tvec, q, 0.0),
                    axis=-1, keepdims=True)                   # [S, 1]

    # ---- discriminator ----
    dx_ref[...] = jnp.zeros((S, H), jnp.float32)
    dx_ref[0:1, :] = demb[pl.ds(t0, 1), :]
    dx_ref[1:2, :] = demb[pl.ds(t1, 1), :]
    dx_ref[2:3, :] = demb[pl.ds(t2, 1), :]
    drepr = _encode(dx_ref[...], dw1[...], db1[...])          # [S, H]
    E = jnp.sum(drepr * dwd[...], axis=-1, keepdims=True) + dbd[...]   # [S, 1]
    p_hat = jnp.exp(-E)                                       # rows 0..2 valid

    # pack (p_h, p_r, p_t, q_h, q_r, q_t) lane-dense into lanes 0..5 of [1,128]
    row_l = lax.broadcasted_iota(jnp.int32, (S, 128), 0)
    lane_l = lax.broadcasted_iota(jnp.int32, (S, 128), 1)
    valid = row_l < 3
    packed = (jnp.where(valid & (lane_l == row_l), p_hat, 0.0)
              + jnp.where(valid & (lane_l == row_l + 3), qlook, 0.0))
    stats = jnp.sum(packed, axis=0, keepdims=True)            # [1, 128]
    return q, stats


# ----------------------------- Pallas kernels -----------------------------

def positive_kernel(tok_ref,                                  # SMEM [3] int32
                    gemb, gw1, gb1, gW, gb,
                    demb, dw1, db1, dwd, dbd,                 # VMEM weights
                    q_ref, stats_ref,                         # outputs
                    gx_ref, dx_ref, rows_ref, sel_ref):       # VMEM scratch
    t0 = tok_ref[0]
    t1 = tok_ref[1]
    t2 = tok_ref[2]
    q, stats = _triple_stats(t0, t1, t2,
                             gemb, gw1, gb1, gW, gb,
                             demb, dw1, db1, dwd, dbd,
                             gx_ref, dx_ref, rows_ref, sel_ref)
    q_ref[...] = q
    stats_ref[...] = stats


def negatives_kernel(tok_ref,                                 # SMEM [NEG_K,3] int32
                     gemb, gw1, gb1, gW, gb,
                     demb, dw1, db1, dwd, dbd,
                     stats_ref,                               # [1,128] block
                     gx_ref, dx_ref, rows_ref, sel_ref):
    i = pl.program_id(0)
    t0 = tok_ref[i, 0]
    t1 = tok_ref[i, 1]
    t2 = tok_ref[i, 2]
    _, stats = _triple_stats(t0, t1, t2,
                             gemb, gw1, gb1, gW, gb,
                             demb, dw1, db1, dwd, dbd,
                             gx_ref, dx_ref, rows_ref, sel_ref)
    stats_ref[...] = stats


# ----------------------------- kernel wrappers -----------------------------

_W_SHAPES = [
    (VOCAB, HIDDEN), (HIDDEN, HIDDEN), (1, HIDDEN),            # generator encoder
    (HIDDEN, 3 * VOCAB), (1, 3 * VOCAB),                       # generator heads (concat)
    (VOCAB, HIDDEN), (HIDDEN, HIDDEN), (1, HIDDEN),            # discriminator encoder
    (SEQ_PAD, HIDDEN), (SEQ_PAD, 1),                           # discriminator heads
]


def _weights(params):
    return (params["gen_emb"], params["gen_w1"], params["gen_b1"],
            params["gen_W"], params["gen_b"],
            params["disc_emb"], params["disc_w1"], params["disc_b1"],
            params["disc_wd"], params["disc_bd"])


def _weight_specs():
    # full-array blocks + constant index_map => weights stay resident in VMEM
    # across grid steps (no per-step re-DMA).
    return [pl.BlockSpec(s, lambda *_: (0, 0)) for s in _W_SHAPES]


def _scratch_shapes():
    return [
        pltpu.VMEM((3 * SEQ_PAD, HIDDEN), jnp.float32),   # stacked generator input
        pltpu.VMEM((SEQ_PAD, HIDDEN), jnp.float32),       # discriminator input
        pltpu.VMEM((SEQ_PAD, HIDDEN), jnp.float32),       # generator head rows
        pltpu.VMEM((SEQ_PAD, VOCAB), jnp.float32),        # selected head logits
    ]


def positive_pass(params, tok3):
    """One fused pallas_call: generate() + discriminate() for the input triple."""
    grid_spec = pltpu.PrefetchScalarGridSpec(
        num_scalar_prefetch=1,
        grid=(1,),
        in_specs=_weight_specs(),
        out_specs=[
            pl.BlockSpec((SEQ_PAD, VOCAB), lambda *_: (0, 0)),
            pl.BlockSpec((1, 128), lambda *_: (0, 0)),
        ],
        scratch_shapes=_scratch_shapes(),
    )
    q3, stats = pl.pallas_call(
        positive_kernel,
        out_shape=(jax.ShapeDtypeStruct((SEQ_PAD, VOCAB), jnp.float32),
                   jax.ShapeDtypeStruct((1, 128), jnp.float32)),
        grid_spec=grid_spec,
        compiler_params=pltpu.CompilerParams(
            dimension_semantics=("arbitrary",)),
    )(tok3.astype(jnp.int32), *_weights(params))
    return q3, stats


def negatives_pass(params, neg_tokens):
    """One gridded pallas_call over the NEG_K negative triples."""
    grid_spec = pltpu.PrefetchScalarGridSpec(
        num_scalar_prefetch=1,
        grid=(NEG_K,),
        in_specs=_weight_specs(),
        out_specs=pl.BlockSpec((None, 1, 128), lambda i, tok: (i, 0, 0)),
        scratch_shapes=_scratch_shapes(),
    )
    stats = pl.pallas_call(
        negatives_kernel,
        out_shape=jax.ShapeDtypeStruct((NEG_K, 1, 128), jnp.float32),
        grid_spec=grid_spec,
        compiler_params=pltpu.CompilerParams(
            dimension_semantics=("parallel",)),   # v7x: split across 2 TCs
    )(neg_tokens.astype(jnp.int32), *_weights(params))
    return stats[:, 0, :]                          # [NEG_K, 128]


# ----------------------------- forward (one jitted graph) -----------------------------

@jax.jit
def forward(params, input_triple, key):
    tok = input_triple[0].astype(jnp.int32)                  # [3] (h, r, t)
    k = float(NEG_K)

    # positive triple: q distributions + (p_hat, q look-up) scalars
    q3, pos_stats = positive_pass(params, tok)
    p_pos = pos_stats[0, 0:3]                                # p_hat_h, p_hat_r, p_hat_t
    q_pos = pos_stats[0, 3:6]                                # q_h[t0], q_r[t1], q_t[t2]
    loss = -jnp.sum(jnp.log(3.0 * p_pos / (3.0 * p_pos + k * q_pos)))

    # ---- on-device negative sampling (inverse CDF; replaces host RNG + sync) ----
    kp, ku = jax.random.split(key)
    positions = jax.random.randint(kp, (NEG_K,), 0, 3)       # random.randint(0, 2)
    u = jax.random.uniform(ku, (NEG_K,), dtype=jnp.float32)  # random.random()
    cdf = jnp.cumsum(q3[0:3, :], axis=-1)                    # [3, VOCAB]
    cdf_sel = jnp.take(cdf, positions, axis=0)               # [NEG_K, VOCAB]
    sampled = jnp.sum(cdf_sel < u[:, None], axis=-1).astype(jnp.int32)
    sampled = jnp.minimum(sampled, VOCAB - 1)
    onehot = positions[:, None] == jnp.arange(3)[None, :]    # [NEG_K, 3]
    neg_tokens = jnp.where(onehot, sampled[:, None], tok[None, :]).astype(jnp.int32)

    # negatives: fused generate()+discriminate() for all K triples in one call
    neg_stats = negatives_pass(params, neg_tokens)           # [NEG_K, 128]
    p_neg = neg_stats[:, 0:3]
    q_neg = neg_stats[:, 3:6]
    oh = onehot.astype(jnp.float32)
    p_sel = jnp.sum(p_neg * oh, axis=1)                      # p at the replaced position
    q_sel = jnp.sum(q_neg * oh, axis=1)                      # q look-up at that position
    loss = loss - jnp.sum(jnp.log(k * q_sel / (3.0 * p_sel + k * q_sel)))
    return loss


# ----------------------------- parameter init -----------------------------

def init_params(key):
    keys = jax.random.split(key, 10)
    se, sh = 0.1, 0.02
    p = {}
    p["gen_emb"] = se * jax.random.normal(keys[0], (VOCAB, HIDDEN), jnp.float32)
    p["gen_w1"] = se * jax.random.normal(keys[1], (HIDDEN, HIDDEN), jnp.float32)
    p["gen_b1"] = jnp.zeros((1, HIDDEN), jnp.float32)
    Wh = sh * jax.random.normal(keys[2], (HIDDEN, VOCAB), jnp.float32)
    Wr = sh * jax.random.normal(keys[3], (HIDDEN, VOCAB), jnp.float32)
    Wt = sh * jax.random.normal(keys[4], (HIDDEN, VOCAB), jnp.float32)
    p["gen_W"] = jnp.concatenate([Wh, Wr, Wt], axis=1)        # [H, 3*VOCAB]
    p["gen_b"] = jnp.zeros((1, 3 * VOCAB), jnp.float32)
    p["disc_emb"] = se * jax.random.normal(keys[5], (VOCAB, HIDDEN), jnp.float32)
    p["disc_w1"] = se * jax.random.normal(keys[6], (HIDDEN, HIDDEN), jnp.float32)
    p["disc_b1"] = jnp.zeros((1, HIDDEN), jnp.float32)
    wd = sh * jax.random.normal(keys[7], (3, HIDDEN), jnp.float32)
    p["disc_wd"] = jnp.concatenate(
        [wd, jnp.zeros((SEQ_PAD - 3, HIDDEN), jnp.float32)], axis=0)
    p["disc_bd"] = jnp.zeros((SEQ_PAD, 1), jnp.float32)
    return p


if __name__ == "__main__":
    params = init_params(jax.random.PRNGKey(0))
    input_triple = jnp.array([[5, 17, 42]], dtype=jnp.int32)   # [1, 3] (h, r, t)
    loss = forward(params, input_triple, jax.random.PRNGKey(1))
    loss = jax.block_until_ready(loss)
    assert bool(jnp.isfinite(loss)), "loss is not finite"
    print("KERNEL_OK")
</pallas_src>

<mosaic_0001>
module attributes {stable_mosaic.version = 11 : i64} {
  func.func @positive_kernel(%arg0: i32, %arg1: memref<3xi32, #tpu.memory_space<smem>>, %arg2: memref<512x128xf32, #tpu.memory_space<vmem>>, %arg3: memref<128x128xf32, #tpu.memory_space<vmem>>, %arg4: memref<1x128xf32, #tpu.memory_space<vmem>>, %arg5: memref<128x1536xf32, #tpu.memory_space<vmem>>, %arg6: memref<1x1536xf32, #tpu.memory_space<vmem>>, %arg7: memref<512x128xf32, #tpu.memory_space<vmem>>, %arg8: memref<128x128xf32, #tpu.memory_space<vmem>>, %arg9: memref<1x128xf32, #tpu.memory_space<vmem>>, %arg10: memref<8x128xf32, #tpu.memory_space<vmem>>, %arg11: memref<8x1xf32, #tpu.memory_space<vmem>>, %arg12: memref<8x512xf32, #tpu.memory_space<vmem>>, %arg13: memref<1x128xf32, #tpu.memory_space<vmem>>, %arg14: memref<24x128xf32, #tpu.memory_space<vmem>>, %arg15: memref<8x128xf32, #tpu.memory_space<vmem>>, %arg16: memref<8x128xf32, #tpu.memory_space<vmem>>, %arg17: memref<8x512xf32, #tpu.memory_space<vmem>>) attributes {dimension_semantics = [#tpu.dimension_semantics<arbitrary>], iteration_bounds = array<i64: 1>, scalar_prefetch = 1 : i64, scratch_operands = 4 : i64, tpu.core_type = #tpu.core_type<tc>, window_params = [{pipeline_mode = #tpu.pipeline_mode<synchronous>, transform_indices = @transform_0, window_bounds = array<i64: 512, 128>}, {pipeline_mode = #tpu.pipeline_mode<synchronous>, transform_indices = @transform_1, window_bounds = array<i64: 128, 128>}, {pipeline_mode = #tpu.pipeline_mode<synchronous>, transform_indices = @transform_2, window_bounds = array<i64: 1, 128>}, {pipeline_mode = #tpu.pipeline_mode<synchronous>, transform_indices = @transform_3, window_bounds = array<i64: 128, 1536>}, {pipeline_mode = #tpu.pipeline_mode<synchronous>, transform_indices = @transform_4, window_bounds = array<i64: 1, 1536>}, {pipeline_mode = #tpu.pipeline_mode<synchronous>, transform_indices = @transform_5, window_bounds = array<i64: 512, 128>}, {pipeline_mode = #tpu.pipeline_mode<synchronous>, transform_indices = @transform_6, window_bounds = array<i64: 128, 128>}, {pipeline_mode = #tpu.pipeline_mode<synchronous>, transform_indices = @transform_7, window_bounds = array<i64: 1, 128>}, {pipeline_mode = #tpu.pipeline_mode<synchronous>, transform_indices = @transform_8, window_bounds = array<i64: 8, 128>}, {pipeline_mode = #tpu.pipeline_mode<synchronous>, transform_indices = @transform_9, window_bounds = array<i64: 8, 1>}, {pipeline_mode = #tpu.pipeline_mode<synchronous>, transform_indices = @transform_10, window_bounds = array<i64: 8, 512>}, {pipeline_mode = #tpu.pipeline_mode<synchronous>, transform_indices = @transform_11, window_bounds = array<i64: 1, 128>}]} {
    %c0 = arith.constant 0 : index
    %0 = memref.load %arg1[%c0] : memref<3xi32, #tpu.memory_space<smem>>
    %c1 = arith.constant 1 : index
    %1 = memref.load %arg1[%c1] : memref<3xi32, #tpu.memory_space<smem>>
    %c2 = arith.constant 2 : index
    %2 = memref.load %arg1[%c2] : memref<3xi32, #tpu.memory_space<smem>>
    %3 = arith.index_cast %0 : i32 to index
    %c0_0 = arith.constant 0 : index
    %4 = vector.load %arg2[%3, %c0_0] : memref<512x128xf32, #tpu.memory_space<vmem>>, vector<1x128xf32>
    %5 = arith.index_cast %1 : i32 to index
    %c0_1 = arith.constant 0 : index
    %6 = vector.load %arg2[%5, %c0_1] : memref<512x128xf32, #tpu.memory_space<vmem>>, vector<1x128xf32>
    %7 = arith.index_cast %2 : i32 to index
    %c0_2 = arith.constant 0 : index
    %8 = vector.load %arg2[%7, %c0_2] : memref<512x128xf32, #tpu.memory_space<vmem>>, vector<1x128xf32>
    %c0_3 = arith.constant 0 : index
    %c0_4 = arith.constant 0 : index
    %9 = vector.load %arg2[%c0_3, %c0_4] : memref<512x128xf32, #tpu.memory_space<vmem>>, vector<1x128xf32>
    %cst = arith.constant 0.000000e+00 : f32
    %10 = vector.broadcast %cst : f32 to vector<24x128xf32>
    %c0_5 = arith.constant 0 : index
    %c0_6 = arith.constant 0 : index
    %11 = vector.load %arg14[%c0_5, %c0_6] : memref<24x128xf32, #tpu.memory_space<vmem>>, vector<24x128xf32>
    tpu.vector_store %arg14[%c0_5, %c0_6], %10 {strides = array<i32>} : memref<24x128xf32, #tpu.memory_space<vmem>>, vector<24x128xf32>,
    %c0_7 = arith.constant 0 : index
    %c0_8 = arith.constant 0 : index
    %12 = vector.load %arg14[%c0_7, %c0_8] : memref<24x128xf32, #tpu.memory_space<vmem>>, vector<1x128xf32>
    tpu.vector_store %arg14[%c0_7, %c0_8], %9 {strides = array<i32>} : memref<24x128xf32, #tpu.memory_space<vmem>>, vector<1x128xf32>,
    %c1_9 = arith.constant 1 : index
    %c0_10 = arith.constant 0 : index
    %13 = vector.load %arg14[%c1_9, %c0_10] : memref<24x128xf32, #tpu.memory_space<vmem>>, vector<1x128xf32>
    tpu.vector_store %arg14[%c1_9, %c0_10], %6 {strides = array<i32>} : memref<24x128xf32, #tpu.memory_space<vmem>>, vector<1x128xf32>,
    %c2_11 = arith.constant 2 : index
    %c0_12 = arith.constant 0 : index
    %14 = vector.load %arg14[%c2_11, %c0_12] : memref<24x128xf32, #tpu.memory_space<vmem>>, vector<1x128xf32>
    tpu.vector_store %arg14[%c2_11, %c0_12], %8 {strides = array<i32>} : memref<24x128xf32, #tpu.memory_space<vmem>>, vector<1x128xf32>,
    %c8 = arith.constant 8 : index
    %c0_13 = arith.constant 0 : index
    %15 = vector.load %arg14[%c8, %c0_13] : memref<24x128xf32, #tpu.memory_space<vmem>>, vector<1x128xf32>
    tpu.vector_store %arg14[%c8, %c0_13], %4 {strides = array<i32>} : memref<24x128xf32, #tpu.memory_space<vmem>>, vector<1x128xf32>,
    %c9 = arith.constant 9 : index
    %c0_14 = arith.constant 0 : index
    %16 = vector.load %arg14[%c9, %c0_14] : memref<24x128xf32, #tpu.memory_space<vmem>>, vector<1x128xf32>
    tpu.vector_store %arg14[%c9, %c0_14], %9 {strides = array<i32>} : memref<24x128xf32, #tpu.memory_space<vmem>>, vector<1x128xf32>,
    %c10 = arith.constant 10 : index
    %c0_15 = arith.constant 0 : index
    %17 = vector.load %arg14[%c10, %c0_15] : memref<24x128xf32, #tpu.memory_space<vmem>>, vector<1x128xf32>
    tpu.vector_store %arg14[%c10, %c0_15], %8 {strides = array<i32>} : memref<24x128xf32, #tpu.memory_space<vmem>>, vector<1x128xf32>,
    %c16 = arith.constant 16 : index
    %c0_16 = arith.constant 0 : index
    %18 = vector.load %arg14[%c16, %c0_16] : memref<24x128xf32, #tpu.memory_space<vmem>>, vector<1x128xf32>
    tpu.vector_store %arg14[%c16, %c0_16], %4 {strides = array<i32>} : memref<24x128xf32, #tpu.memory_space<vmem>>, vector<1x128xf32>,
    %c17 = arith.constant 17 : index
    %c0_17 = arith.constant 0 : index
    %19 = vector.load %arg14[%c17, %c0_17] : memref<24x128xf32, #tpu.memory_space<vmem>>, vector<1x128xf32>
    tpu.vector_store %arg14[%c17, %c0_17], %6 {strides = array<i32>} : memref<24x128xf32, #tpu.memory_space<vmem>>, vector<1x128xf32>,
    %c18 = arith.constant 18 : index
    %c0_18 = arith.constant 0 : index
    %20 = vector.load %arg14[%c18, %c0_18] : memref<24x128xf32, #tpu.memory_space<vmem>>, vector<1x128xf32>
    tpu.vector_store %arg14[%c18, %c0_18], %9 {strides = array<i32>} : memref<24x128xf32, #tpu.memory_space<vmem>>, vector<1x128xf32>,
    %c0_19 = arith.constant 0 : index
    %c0_20 = arith.constant 0 : index
    %21 = vector.load %arg14[%c0_19, %c0_20] : memref<24x128xf32, #tpu.memory_space<vmem>>, vector<24x128xf32>
    %c0_21 = arith.constant 0 : index
    %c0_22 = arith.constant 0 : index
    %22 = vector.load %arg3[%c0_21, %c0_22] : memref<128x128xf32, #tpu.memory_space<vmem>>, vector<128x128xf32>
    %c0_23 = arith.constant 0 : index
    %c0_24 = arith.constant 0 : index
    %23 = vector.load %arg4[%c0_23, %c0_24] : memref<1x128xf32, #tpu.memory_space<vmem>>, vector<1x128xf32>
    %cst_25 = arith.constant dense<0.000000e+00> : vector<24x128xf32>
    %24 = tpu.matmul %21, %22, %cst_25 {dimension_numbers = #tpu.dot_dimension_numbers<[1], [0], [0], [1], [0, 0, 1, 1], [], []>} : vector<24x128xf32>, vector<128x128xf32>, vector<24x128xf32> -> vector<24x128xf32>
    %25 = vector.broadcast %23 : vector<1x128xf32> to vector<24x128xf32>
    %26 = arith.addf %24, %25 : vector<24x128xf32>
    %27 = math.tanh %26 : vector<24x128xf32>
    %cst_26 = arith.constant dense<0.000000e+00> : vector<24xf32>
    %28 = vector.multi_reduction <add>, %27, %cst_26 [1] : vector<24x128xf32> to vector<24xf32>
    %29 = vector.shape_cast %28 : vector<24xf32> to vector<24x1xf32>
    %cst_27 = arith.constant 1.280000e+02 : f32
    %30 = vector.broadcast %cst_27 : f32 to vector<24x1xf32>
    %31 = arith.divf %29, %30 : vector<24x1xf32>
    %32 = vector.broadcast %31 : vector<24x1xf32> to vector<24x128xf32>
    %33 = arith.subf %27, %32 : vector<24x128xf32>
    %34 = arith.mulf %33, %33 : vector<24x128xf32>
    %cst_28 = arith.constant dense<0.000000e+00> : vector<24xf32>
    %35 = vector.multi_reduction <add>, %34, %cst_28 [1] : vector<24x128xf32> to vector<24xf32>
    %36 = vector.shape_cast %35 : vector<24xf32> to vector<24x1xf32>
    %cst_29 = arith.constant 1.280000e+02 : f32
    %37 = vector.broadcast %cst_29 : f32 to vector<24x1xf32>
    %38 = arith.divf %36, %37 : vector<24x1xf32>
    %39 = vector.broadcast %31 : vector<24x1xf32> to vector<24x128xf32>
    %40 = arith.subf %27, %39 : vector<24x128xf32>
    %cst_30 = arith.constant 9.99999997E-7 : f32
    %41 = vector.broadcast %cst_30 : f32 to vector<24x1xf32>
    %42 = arith.addf %38, %41 : vector<24x1xf32>
    %43 = math.rsqrt %42 : vector<24x1xf32>
    %44 = vector.broadcast %43 : vector<24x1xf32> to vector<24x128xf32>
    %45 = arith.mulf %40, %44 : vector<24x128xf32>
    %cst_31 = arith.constant 0.000000e+00 : f32
    %46 = vector.broadcast %cst_31 : f32 to vector<8x128xf32>
    %c0_32 = arith.constant 0 : index
    %c0_33 = arith.constant 0 : index
    %47 = vector.load %arg16[%c0_32, %c0_33] : memref<8x128xf32, #tpu.memory_space<vmem>>, vector<8x128xf32>
    tpu.vector_store %arg16[%c0_32, %c0_33], %46 {strides = array<i32>} : memref<8x128xf32, #tpu.memory_space<vmem>>, vector<8x128xf32>,
    %48 = vector.extract_strided_slice %45 {offsets = [0, 0], sizes = [1, 128], strides = [1, 1]} : vector<24x128xf32> to vector<1x128xf32>
    %c0_34 = arith.constant 0 : index
    %c0_35 = arith.constant 0 : index
    %49 = vector.load %arg16[%c0_34, %c0_35] : memref<8x128xf32, #tpu.memory_space<vmem>>, vector<1x128xf32>
    tpu.vector_store %arg16[%c0_34, %c0_35], %48 {strides = array<i32>} : memref<8x128xf32, #tpu.memory_space<vmem>>, vector<1x128xf32>,
    %50 = vector.extract_strided_slice %45 {offsets = [9, 0], sizes = [1, 128], strides = [1, 1]} : vector<24x128xf32> to vector<1x128xf32>
    %c1_36 = arith.constant 1 : index
    %c0_37 = arith.constant 0 : index
    %51 = vector.load %arg16[%c1_36, %c0_37] : memref<8x128xf32, #tpu.memory_space<vmem>>, vector<1x128xf32>
    tpu.vector_store %arg16[%c1_36, %c0_37], %50 {strides = array<i32>} : memref<8x128xf32, #tpu.memory_space<vmem>>, vector<1x128xf32>,
    %52 = vector.extract_strided_slice %45 {offsets = [18, 0], sizes = [1, 128], strides = [1, 1]} : vector<24x128xf32> to vector<1x128xf32>
    %c2_38 = arith.constant 2 : index
    %c0_39 = arith.constant 0 : index
    %53 = vector.load %arg16[%c2_38, %c0_39] : memref<8x128xf32, #tpu.memory_space<vmem>>, vector<1x128xf32>
    tpu.vector_store %arg16[%c2_38, %c0_39], %52 {strides = array<i32>} : memref<8x128xf32, #tpu.memory_space<vmem>>, vector<1x128xf32>,
    %c0_40 = arith.constant 0 : index
    %c0_41 = arith.constant 0 : index
    %54 = vector.load %arg16[%c0_40, %c0_41] : memref<8x128xf32, #tpu.memory_space<vmem>>, vector<8x128xf32>
    %c0_42 = arith.constant 0 : index
    %c0_43 = arith.constant 0 : index
    %55 = vector.load %arg5[%c0_42, %c0_43] : memref<128x1536xf32, #tpu.memory_space<vmem>>, vector<128x1536xf32>
    %cst_44 = arith.constant dense<0.000000e+00> : vector<8x1536xf32>
    %56 = tpu.matmul %54, %55, %cst_44 {dimension_numbers = #tpu.dot_dimension_numbers<[1], [0], [0], [1], [0, 0, 1, 1], [], []>} : vector<8x128xf32>, vector<128x1536xf32>, vector<8x1536xf32> -> vector<8x1536xf32>
    %c0_45 = arith.constant 0 : index
    %c0_46 = arith.constant 0 : index
    %57 = vector.load %arg6[%c0_45, %c0_46] : memref<1x1536xf32, #tpu.memory_space<vmem>>, vector<1x1536xf32>
    %58 = vector.broadcast %57 : vector<1x1536xf32> to vector<8x1536xf32>
    %59 = arith.addf %56, %58 : vector<8x1536xf32>
    %cst_47 = arith.constant 0.000000e+00 : f32
    %60 = vector.broadcast %cst_47 : f32 to vector<8x512xf32>
    %c0_48 = arith.constant 0 : index
    %c0_49 = arith.constant 0 : index
    %61 = vector.load %arg17[%c0_48, %c0_49] : memref<8x512xf32, #tpu.memory_space<vmem>>, vector<8x512xf32>
    tpu.vector_store %arg17[%c0_48, %c0_49], %60 {strides = array<i32>} : memref<8x512xf32, #tpu.memory_space<vmem>>, vector<8x512xf32>,
    %62 = vector.extract_strided_slice %59 {offsets = [0, 0], sizes = [1, 512], strides = [1, 1]} : vector<8x1536xf32> to vector<1x512xf32>
    %c0_50 = arith.constant 0 : index
    %c0_51 = arith.constant 0 : index
    %63 = vector.load %arg17[%c0_50, %c0_51] : memref<8x512xf32, #tpu.memory_space<vmem>>, vector<1x512xf32>
    tpu.vector_store %arg17[%c0_50, %c0_51], %62 {strides = array<i32>} : memref<8x512xf32, #tpu.memory_space<vmem>>, vector<1x512xf32>,
    %64 = vector.extract_strided_slice %59 {offsets = [1, 512], sizes = [1, 512], strides = [1, 1]} : vector<8x1536xf32> to vector<1x512xf32>
    %c1_52 = arith.constant 1 : index
    %c0_53 = arith.constant 0 : index
    %65 = vector.load %arg17[%c1_52, %c0_53] : memref<8x512xf32, #tpu.memory_space<vmem>>, vector<1x512xf32>
    tpu.vector_store %arg17[%c1_52, %c0_53], %64 {strides = array<i32>} : memref<8x512xf32, #tpu.memory_space<vmem>>, vector<1x512xf32>,
    %66 = vector.extract_strided_slice %59 {offsets = [2, 1024], sizes = [1, 512], strides = [1, 1]} : vector<8x1536xf32> to vector<1x512xf32>
    %c2_54 = arith.constant 2 : index
    %c0_55 = arith.constant 0 : index
    %67 = vector.load %arg17[%c2_54, %c0_55] : memref<8x512xf32, #tpu.memory_space<vmem>>, vector<1x512xf32>
    tpu.vector_store %arg17[%c2_54, %c0_55], %66 {strides = array<i32>} : memref<8x512xf32, #tpu.memory_space<vmem>>, vector<1x512xf32>,
    %c0_56 = arith.constant 0 : index
    %c0_57 = arith.constant 0 : index
    %68 = vector.load %arg17[%c0_56, %c0_57] : memref<8x512xf32, #tpu.memory_space<vmem>>, vector<8x512xf32>
    %cst_58 = arith.constant dense<0xFF800000> : vector<8xf32>
    %69 = vector.multi_reduction <maximumf>, %68, %cst_58 [1] : vector<8x512xf32> to vector<8xf32>
    %70 = vector.shape_cast %69 : vector<8xf32> to vector<8x1xf32>
    %71 = vector.broadcast %70 : vector<8x1xf32> to vector<8x512xf32>
    %72 = arith.subf %68, %71 : vector<8x512xf32>
    %73 = math.exp %72 : vector<8x512xf32>
    %cst_59 = arith.constant dense<0.000000e+00> : vector<8xf32>
    %74 = vector.multi_reduction <add>, %73, %cst_59 [1] : vector<8x512xf32> to vector<8xf32>
    %75 = vector.shape_cast %74 : vector<8xf32> to vector<8x1xf32>
    %76 = vector.broadcast %75 : vector<8x1xf32> to vector<8x512xf32>
    %77 = arith.divf %73, %76 : vector<8x512xf32>
    %78 = tpu.iota {dimensions = array<i32: 0>} : vector<8x1xi32>
    %c0_i32 = arith.constant 0 : i32
    %79 = vector.broadcast %c0_i32 : i32 to vector<8x1xi32>
    %80 = arith.cmpi eq, %78, %79 : vector<8x1xi32>
    %c1_i32 = arith.constant 1 : i32
    %81 = vector.broadcast %c1_i32 : i32 to vector<8x1xi32>
    %82 = arith.cmpi eq, %78, %81 : vector<8x1xi32>
    %c2_i32 = arith.constant 2 : i32
    %83 = vector.broadcast %c2_i32 : i32 to vector<8x1xi32>
    %84 = arith.cmpi eq, %78, %83 : vector<8x1xi32>
    %c-1_i32 = arith.constant -1 : i32
    %85 = vector.broadcast %2 : i32 to vector<8x1xi32>
    %86 = vector.broadcast %c-1_i32 : i32 to vector<8x1xi32>
    %87 = arith.select %84, %85, %86 : vector<8x1xi1>, vector<8x1xi32>
    %88 = vector.broadcast %1 : i32 to vector<8x1xi32>
    %89 = arith.select %82, %88, %87 : vector<8x1xi1>, vector<8x1xi32>
    %90 = vector.broadcast %0 : i32 to vector<8x1xi32>
    %91 = arith.select %80, %90, %89 : vector<8x1xi1>, vector<8x1xi32>
    %92 = tpu.iota {dimensions = array<i32: 1>} : vector<8x512xi32>
    %93 = vector.broadcast %91 : vector<8x1xi32> to vector<8x512xi32>
    %94 = arith.cmpi eq, %92, %93 : vector<8x512xi32>
    %cst_60 = arith.constant 0.000000e+00 : f32
    %95 = vector.broadcast %cst_60 : f32 to vector<8x512xf32>
    %96 = arith.select %94, %77, %95 : vector<8x512xi1>, vector<8x512xf32>
    %cst_61 = arith.constant dense<0.000000e+00> : vector<8xf32>
    %97 = vector.multi_reduction <add>, %96, %cst_61 [1] : vector<8x512xf32> to vector<8xf32>
    %98 = vector.shape_cast %97 : vector<8xf32> to vector<8x1xf32>
    %cst_62 = arith.constant 0.000000e+00 : f32
    %99 = vector.broadcast %cst_62 : f32 to vector<8x128xf32>
    %c0_63 = arith.constant 0 : index
    %c0_64 = arith.constant 0 : index
    %100 = vector.load %arg15[%c0_63, %c0_64] : memref<8x128xf32, #tpu.memory_space<vmem>>, vector<8x128xf32>
    tpu.vector_store %arg15[%c0_63, %c0_64], %99 {strides = array<i32>} : memref<8x128xf32, #tpu.memory_space<vmem>>, vector<8x128xf32>,
    %101 = arith.index_cast %0 : i32 to index
    %c0_65 = arith.constant 0 : index
    %102 = vector.load %arg7[%101, %c0_65] : memref<512x128xf32, #tpu.memory_space<vmem>>, vector<1x128xf32>
    %c0_66 = arith.constant 0 : index
    %c0_67 = arith.constant 0 : index
    %103 = vector.load %arg15[%c0_66, %c0_67] : memref<8x128xf32, #tpu.memory_space<vmem>>, vector<1x128xf32>
    tpu.vector_store %arg15[%c0_66, %c0_67], %102 {strides = array<i32>} : memref<8x128xf32, #tpu.memory_space<vmem>>, vector<1x128xf32>,
    %104 = arith.index_cast %1 : i32 to index
    %c0_68 = arith.constant 0 : index
    %105 = vector.load %arg7[%104, %c0_68] : memref<512x128xf32, #tpu.memory_space<vmem>>, vector<1x128xf32>
    %c1_69 = arith.constant 1 : index
    %c0_70 = arith.constant 0 : index
    %106 = vector.load %arg15[%c1_69, %c0_70] : memref<8x128xf32, #tpu.memory_space<vmem>>, vector<1x128xf32>
    tpu.vector_store %arg15[%c1_69, %c0_70], %105 {strides = array<i32>} : memref<8x128xf32, #tpu.memory_space<vmem>>, vector<1x128xf32>,
    %107 = arith.index_cast %2 : i32 to index
    %c0_71 = arith.constant 0 : index
    %108 = vector.load %arg7[%107, %c0_71] : memref<512x128xf32, #tpu.memory_space<vmem>>, vector<1x128xf32>
    %c2_72 = arith.constant 2 : index
    %c0_73 = arith.constant 0 : index
    %109 = vector.load %arg15[%c2_72, %c0_73] : memref<8x128xf32, #tpu.memory_space<vmem>>, vector<1x128xf32>
    tpu.vector_store %arg15[%c2_72, %c0_73], %108 {strides = array<i32>} : memref<8x128xf32, #tpu.memory_space<vmem>>, vector<1x128xf32>,
    %c0_74 = arith.constant 0 : index
    %c0_75 = arith.constant 0 : index
    %110 = vector.load %arg15[%c0_74, %c0_75] : memref<8x128xf32, #tpu.memory_space<vmem>>, vector<8x128xf32>
    %c0_76 = arith.constant 0 : index
    %c0_77 = arith.constant 0 : index
    %111 = vector.load %arg8[%c0_76, %c0_77] : memref<128x128xf32, #tpu.memory_space<vmem>>, vector<128x128xf32>
    %c0_78 = arith.constant 0 : index
    %c0_79 = arith.constant 0 : index
    %112 = vector.load %arg9[%c0_78, %c0_79] : memref<1x128xf32, #tpu.memory_space<vmem>>, vector<1x128xf32>
    %cst_80 = arith.constant dense<0.000000e+00> : vector<8x128xf32>
    %113 = tpu.matmul %110, %111, %cst_80 {dimension_numbers = #tpu.dot_dimension_numbers<[1], [0], [0], [1], [0, 0, 1, 1], [], []>} : vector<8x128xf32>, vector<128x128xf32>, vector<8x128xf32> -> vector<8x128xf32>
    %114 = vector.broadcast %112 : vector<1x128xf32> to vector<8x128xf32>
    %115 = arith.addf %113, %114 : vector<8x128xf32>
    %116 = math.tanh %115 : vector<8x128xf32>
    %cst_81 = arith.constant dense<0.000000e+00> : vector<8xf32>
    %117 = vector.multi_reduction <add>, %116, %cst_81 [1] : vector<8x128xf32> to vector<8xf32>
    %118 = vector.shape_cast %117 : vector<8xf32> to vector<8x1xf32>
    %cst_82 = arith.constant 1.280000e+02 : f32
    %119 = vector.broadcast %cst_82 : f32 to vector<8x1xf32>
    %120 = arith.divf %118, %119 : vector<8x1xf32>
    %121 = vector.broadcast %120 : vector<8x1xf32> to vector<8x128xf32>
    %122 = arith.subf %116, %121 : vector<8x128xf32>
    %123 = arith.mulf %122, %122 : vector<8x128xf32>
    %cst_83 = arith.constant dense<0.000000e+00> : vector<8xf32>
    %124 = vector.multi_reduction <add>, %123, %cst_83 [1] : vector<8x128xf32> to vector<8xf32>
    %125 = vector.shape_cast %124 : vector<8xf32> to vector<8x1xf32>
    %cst_84 = arith.constant 1.280000e+02 : f32
    %126 = vector.broadcast %cst_84 : f32 to vector<8x1xf32>
    %127 = arith.divf %125, %126 : vector<8x1xf32>
    %128 = vector.broadcast %120 : vector<8x1xf32> to vector<8x128xf32>
    %129 = arith.subf %116, %128 : vector<8x128xf32>
    %cst_85 = arith.constant 9.99999997E-7 : f32
    %130 = vector.broadcast %cst_85 : f32 to vector<8x1xf32>
    %131 = arith.addf %127, %130 : vector<8x1xf32>
    %132 = math.rsqrt %131 : vector<8x1xf32>
    %133 = vector.broadcast %132 : vector<8x1xf32> to vector<8x128xf32>
    %134 = arith.mulf %129, %133 : vector<8x128xf32>
    %c0_86 = arith.constant 0 : index
    %c0_87 = arith.constant 0 : index
    %135 = vector.load %arg10[%c0_86, %c0_87] : memref<8x128xf32, #tpu.memory_space<vmem>>, vector<8x128xf32>
    %136 = arith.mulf %134, %135 : vector<8x128xf32>
    %cst_88 = arith.constant dense<0.000000e+00> : vector<8xf32>
    %137 = vector.multi_reduction <add>, %136, %cst_88 [1] : vector<8x128xf32> to vector<8xf32>
    %138 = vector.shape_cast %137 : vector<8xf32> to vector<8x1xf32>
    %c0_89 = arith.constant 0 : index
    %c0_90 = arith.constant 0 : index
    %139 = vector.load %arg11[%c0_89, %c0_90] : memref<8x1xf32, #tpu.memory_space<vmem>>, vector<8x1xf32>
    %140 = arith.addf %138, %139 : vector<8x1xf32>
    %cst_91 = arith.constant 0.000000e+00 : f32
    %141 = vector.broadcast %cst_91 : f32 to vector<8x1xf32>
    %142 = arith.subf %141, %140 : vector<8x1xf32>
    %143 = math.exp %142 : vector<8x1xf32>
    %144 = tpu.iota {dimensions = array<i32: 0>} : vector<8x128xi32>
    %145 = tpu.iota {dimensions = array<i32: 1>} : vector<8x128xi32>
    %c3_i32 = arith.constant 3 : i32
    %146 = vector.broadcast %c3_i32 : i32 to vector<8x128xi32>
    %147 = arith.cmpi slt, %144, %146 : vector<8x128xi32>
    %148 = arith.cmpi eq, %145, %144 : vector<8x128xi32>
    %149 = arith.andi %147, %148 : vector<8x128xi1>
    %cst_92 = arith.constant 0.000000e+00 : f32
    %150 = vector.shape_cast %143 : vector<8x1xf32> to vector<8x1xf32>
    %151 = vector.broadcast %150 : vector<8x1xf32> to vector<8x128xf32>
    %152 = vector.broadcast %cst_92 : f32 to vector<8x128xf32>
    %153 = arith.select %149, %151, %152 : vector<8x128xi1>, vector<8x128xf32>
    %c3_i32_93 = arith.constant 3 : i32
    %154 = vector.broadcast %c3_i32_93 : i32 to vector<8x128xi32>
    %155 = arith.addi %144, %154 : vector<8x128xi32>
    %156 = arith.cmpi eq, %145, %155 : vector<8x128xi32>
    %157 = arith.andi %147, %156 : vector<8x128xi1>
    %cst_94 = arith.constant 0.000000e+00 : f32
    %158 = vector.shape_cast %98 : vector<8x1xf32> to vector<8x1xf32>
    %159 = vector.broadcast %158 : vector<8x1xf32> to vector<8x128xf32>
    %160 = vector.broadcast %cst_94 : f32 to vector<8x128xf32>
    %161 = arith.select %157, %159, %160 : vector<8x128xi1>, vector<8x128xf32>
    %162 = arith.addf %153, %161 : vector<8x128xf32>
    %cst_95 = arith.constant dense<0.000000e+00> : vector<128xf32>
    %163 = vector.multi_reduction <add>, %162, %cst_95 [0] : vector<8x128xf32> to vector<128xf32>
    %164 = vector.shape_cast %163 : vector<128xf32> to vector<1x128xf32>
    %c0_96 = arith.constant 0 : index
    %c0_97 = arith.constant 0 : index
    %165 = vector.load %arg12[%c0_96, %c0_97] : memref<8x512xf32, #tpu.memory_space<vmem>>, vector<8x512xf32>
    tpu.vector_store %arg12[%c0_96, %c0_97], %77 {strides = array<i32>} : memref<8x512xf32, #tpu.memory_space<vmem>>, vector<8x512xf32>,
    %c0_98 = arith.constant 0 : index
    %c0_99 = arith.constant 0 : index
    %166 = vector.load %arg13[%c0_98, %c0_99] : memref<1x128xf32, #tpu.memory_space<vmem>>, vector<1x128xf32>
    tpu.vector_store %arg13[%c0_98, %c0_99], %164 {strides = array<i32>} : memref<1x128xf32, #tpu.memory_space<vmem>>, vector<1x128xf32>,
    return
  }
  func.func @transform_0(%arg0: i32, %arg1: memref<3xi32, #tpu.memory_space<smem>>) -> (i32, i32) {
    %c0_i32 = arith.constant 0 : i32
    %c0_i32_0 = arith.constant 0 : i32
    %c0_i32_1 = arith.constant 0 : i32
    return %c0_i32, %c0_i32_0 : i32, i32
  }
  func.func @transform_1(%arg0: i32, %arg1: memref<3xi32, #tpu.memory_space<smem>>) -> (i32, i32) {
    %c0_i32 = arith.constant 0 : i32
    %c0_i32_0 = arith.constant 0 : i32
    %c0_i32_1 = arith.constant 0 : i32
    return %c0_i32, %c0_i32_0 : i32, i32
  }
  func.func @transform_2(%arg0: i32, %arg1: memref<3xi32, #tpu.memory_space<smem>>) -> (i32, i32) {
    %c0_i32 = arith.constant 0 : i32
    %c0_i32_0 = arith.constant 0 : i32
    %c0_i32_1 = arith.constant 0 : i32
    return %c0_i32, %c0_i32_0 : i32, i32
  }
  func.func @transform_3(%arg0: i32, %arg1: memref<3xi32, #tpu.memory_space<smem>>) -> (i32, i32) {
    %c0_i32 = arith.constant 0 : i32
    %c0_i32_0 = arith.constant 0 : i32
    %c0_i32_1 = arith.constant 0 : i32
    return %c0_i32, %c0_i32_0 : i32, i32
  }
  func.func @transform_4(%arg0: i32, %arg1: memref<3xi32, #tpu.memory_space<smem>>) -> (i32, i32) {
    %c0_i32 = arith.constant 0 : i32
    %c0_i32_0 = arith.constant 0 : i32
    %c0_i32_1 = arith.constant 0 : i32
    return %c0_i32, %c0_i32_0 : i32, i32
  }
  func.func @transform_5(%arg0: i32, %arg1: memref<3xi32, #tpu.memory_space<smem>>) -> (i32, i32) {
    %c0_i32 = arith.constant 0 : i32
    %c0_i32_0 = arith.constant 0 : i32
    %c0_i32_1 = arith.constant 0 : i32
    return %c0_i32, %c0_i32_0 : i32, i32
  }
  func.func @transform_6(%arg0: i32, %arg1: memref<3xi32, #tpu.memory_space<smem>>) -> (i32, i32) {
    %c0_i32 = arith.constant 0 : i32
    %c0_i32_0 = arith.constant 0 : i32
    %c0_i32_1 = arith.constant 0 : i32
    return %c0_i32, %c0_i32_0 : i32, i32
  }
  func.func @transform_7(%arg0: i32, %arg1: memref<3xi32, #tpu.memory_space<smem>>) -> (i32, i32) {
    %c0_i32 = arith.constant 0 : i32
    %c0_i32_0 = arith.constant 0 : i32
    %c0_i32_1 = arith.constant 0 : i32
    return %c0_i32, %c0_i32_0 : i32, i32
  }
  func.func @transform_8(%arg0: i32, %arg1: memref<3xi32, #tpu.memory_space<smem>>) -> (i32, i32) {
    %c0_i32 = arith.constant 0 : i32
    %c0_i32_0 = arith.constant 0 : i32
    %c0_i32_1 = arith.constant 0 : i32
    return %c0_i32, %c0_i32_0 : i32, i32
  }
  func.func @transform_9(%arg0: i32, %arg1: memref<3xi32, #tpu.memory_space<smem>>) -> (i32, i32) {
    %c0_i32 = arith.constant 0 : i32
    %c0_i32_0 = arith.constant 0 : i32
    %c0_i32_1 = arith.constant 0 : i32
    return %c0_i32, %c0_i32_0 : i32, i32
  }
  func.func @transform_10(%arg0: i32, %arg1: memref<3xi32, #tpu.memory_space<smem>>) -> (i32, i32) {
    %c0_i32 = arith.constant 0 : i32
    %c0_i32_0 = arith.constant 0 : i32
    %c0_i32_1 = arith.constant 0 : i32
    return %c0_i32, %c0_i32_0 : i32, i32
  }
  func.func @transform_11(%arg0: i32, %arg1: memref<3xi32, #tpu.memory_space<smem>>) -> (i32, i32) {
    %c0_i32 = arith.constant 0 : i32
    %c0_i32_0 = arith.constant 0 : i32
    %c0_i32_1 = arith.constant 0 : i32
    return %c0_i32, %c0_i32_0 : i32, i32
  }
}

module attributes {stable_mosaic.version = 11 : i64} {
  func.func @negatives_kernel(%arg0: i32, %arg1: memref<3x3xi32, #tpu.memory_space<smem>>, %arg2: memref<512x128xf32, #tpu.memory_space<vmem>>, %arg3: memref<128x128xf32, #tpu.memory_space<vmem>>, %arg4: memref<1x128xf32, #tpu.memory_space<vmem>>, %arg5: memref<128x1536xf32, #tpu.memory_space<vmem>>, %arg6: memref<1x1536xf32, #tpu.memory_space<vmem>>, %arg7: memref<512x128xf32, #tpu.memory_space<vmem>>, %arg8: memref<128x128xf32, #tpu.memory_space<vmem>>, %arg9: memref<1x128xf32, #tpu.memory_space<vmem>>, %arg10: memref<8x128xf32, #tpu.memory_space<vmem>>, %arg11: memref<8x1xf32, #tpu.memory_space<vmem>>, %arg12: memref<1x1x128xf32, #tpu.memory_space<vmem>>, %arg13: memref<24x128xf32, #tpu.memory_space<vmem>>, %arg14: memref<8x128xf32, #tpu.memory_space<vmem>>, %arg15: memref<8x128xf32, #tpu.memory_space<vmem>>, %arg16: memref<8x512xf32, #tpu.memory_space<vmem>>) attributes {dimension_semantics = [#tpu.dimension_semantics<parallel>], iteration_bounds = array<i64: 3>, scalar_prefetch = 1 : i64, scratch_operands = 4 : i64, tpu.core_type = #tpu.core_type<tc>, window_params = [{pipeline_mode = #tpu.pipeline_mode<synchronous>, transform_indices = @transform_0, window_bounds = array<i64: 512, 128>}, {pipeline_mode = #tpu.pipeline_mode<synchronous>, transform_indices = @transform_1, window_bounds = array<i64: 128, 128>}, {pipeline_mode = #tpu.pipeline_mode<synchronous>, transform_indices = @transform_2, window_bounds = array<i64: 1, 128>}, {pipeline_mode = #tpu.pipeline_mode<synchronous>, transform_indices = @transform_3, window_bounds = array<i64: 128, 1536>}, {pipeline_mode = #tpu.pipeline_mode<synchronous>, transform_indices = @transform_4, window_bounds = array<i64: 1, 1536>}, {pipeline_mode = #tpu.pipeline_mode<synchronous>, transform_indices = @transform_5, window_bounds = array<i64: 512, 128>}, {pipeline_mode = #tpu.pipeline_mode<synchronous>, transform_indices = @transform_6, window_bounds = array<i64: 128, 128>}, {pipeline_mode = #tpu.pipeline_mode<synchronous>, transform_indices = @transform_7, window_bounds = array<i64: 1, 128>}, {pipeline_mode = #tpu.pipeline_mode<synchronous>, transform_indices = @transform_8, window_bounds = array<i64: 8, 128>}, {pipeline_mode = #tpu.pipeline_mode<synchronous>, transform_indices = @transform_9, window_bounds = array<i64: 8, 1>}, {transform_indices = @transform_10, window_bounds = array<i64: 1, 1, 128>}]} {
    %0 = arith.index_cast %arg0 : i32 to index
    %c0 = arith.constant 0 : index
    %1 = memref.load %arg1[%0, %c0] : memref<3x3xi32, #tpu.memory_space<smem>>
    %2 = arith.index_cast %arg0 : i32 to index
    %c1 = arith.constant 1 : index
    %3 = memref.load %arg1[%2, %c1] : memref<3x3xi32, #tpu.memory_space<smem>>
    %4 = arith.index_cast %arg0 : i32 to index
    %c2 = arith.constant 2 : index
    %5 = memref.load %arg1[%4, %c2] : memref<3x3xi32, #tpu.memory_space<smem>>
    %6 = arith.index_cast %1 : i32 to index
    %c0_0 = arith.constant 0 : index
    %7 = vector.load %arg2[%6, %c0_0] : memref<512x128xf32, #tpu.memory_space<vmem>>, vector<1x128xf32>
    %8 = arith.index_cast %3 : i32 to index
    %c0_1 = arith.constant 0 : index
    %9 = vector.load %arg2[%8, %c0_1] : memref<512x128xf32, #tpu.memory_space<vmem>>, vector<1x128xf32>
    %10 = arith.index_cast %5 : i32 to index
    %c0_2 = arith.constant 0 : index
    %11 = vector.load %arg2[%10, %c0_2] : memref<512x128xf32, #tpu.memory_space<vmem>>, vector<1x128xf32>
    %c0_3 = arith.constant 0 : index
    %c0_4 = arith.constant 0 : index
    %12 = vector.load %arg2[%c0_3, %c0_4] : memref<512x128xf32, #tpu.memory_space<vmem>>, vector<1x128xf32>
    %cst = arith.constant 0.000000e+00 : f32
    %13 = vector.broadcast %cst : f32 to vector<24x128xf32>
    %c0_5 = arith.constant 0 : index
    %c0_6 = arith.constant 0 : index
    %14 = vector.load %arg13[%c0_5, %c0_6] : memref<24x128xf32, #tpu.memory_space<vmem>>, vector<24x128xf32>
    tpu.vector_store %arg13[%c0_5, %c0_6], %13 {strides = array<i32>} : memref<24x128xf32, #tpu.memory_space<vmem>>, vector<24x128xf32>,
    %c0_7 = arith.constant 0 : index
    %c0_8 = arith.constant 0 : index
    %15 = vector.load %arg13[%c0_7, %c0_8] : memref<24x128xf32, #tpu.memory_space<vmem>>, vector<1x128xf32>
    tpu.vector_store %arg13[%c0_7, %c0_8], %12 {strides = array<i32>} : memref<24x128xf32, #tpu.memory_space<vmem>>, vector<1x128xf32>,
    %c1_9 = arith.constant 1 : index
    %c0_10 = arith.constant 0 : index
    %16 = vector.load %arg13[%c1_9, %c0_10] : memref<24x128xf32, #tpu.memory_space<vmem>>, vector<1x128xf32>
    tpu.vector_store %arg13[%c1_9, %c0_10], %9 {strides = array<i32>} : memref<24x128xf32, #tpu.memory_space<vmem>>, vector<1x128xf32>,
    %c2_11 = arith.constant 2 : index
    %c0_12 = arith.constant 0 : index
    %17 = vector.load %arg13[%c2_11, %c0_12] : memref<24x128xf32, #tpu.memory_space<vmem>>, vector<1x128xf32>
    tpu.vector_store %arg13[%c2_11, %c0_12], %11 {strides = array<i32>} : memref<24x128xf32, #tpu.memory_space<vmem>>, vector<1x128xf32>,
    %c8 = arith.constant 8 : index
    %c0_13 = arith.constant 0 : index
    %18 = vector.load %arg13[%c8, %c0_13] : memref<24x128xf32, #tpu.memory_space<vmem>>, vector<1x128xf32>
    tpu.vector_store %arg13[%c8, %c0_13], %7 {strides = array<i32>} : memref<24x128xf32, #tpu.memory_space<vmem>>, vector<1x128xf32>,
    %c9 = arith.constant 9 : index
    %c0_14 = arith.constant 0 : index
    %19 = vector.load %arg13[%c9, %c0_14] : memref<24x128xf32, #tpu.memory_space<vmem>>, vector<1x128xf32>
    tpu.vector_store %arg13[%c9, %c0_14], %12 {strides = array<i32>} : memref<24x128xf32, #tpu.memory_space<vmem>>, vector<1x128xf32>,
    %c10 = arith.constant 10 : index
    %c0_15 = arith.constant 0 : index
    %20 = vector.load %arg13[%c10, %c0_15] : memref<24x128xf32, #tpu.memory_space<vmem>>, vector<1x128xf32>
    tpu.vector_store %arg13[%c10, %c0_15], %11 {strides = array<i32>} : memref<24x128xf32, #tpu.memory_space<vmem>>, vector<1x128xf32>,
    %c16 = arith.constant 16 : index
    %c0_16 = arith.constant 0 : index
    %21 = vector.load %arg13[%c16, %c0_16] : memref<24x128xf32, #tpu.memory_space<vmem>>, vector<1x128xf32>
    tpu.vector_store %arg13[%c16, %c0_16], %7 {strides = array<i32>} : memref<24x128xf32, #tpu.memory_space<vmem>>, vector<1x128xf32>,
    %c17 = arith.constant 17 : index
    %c0_17 = arith.constant 0 : index
    %22 = vector.load %arg13[%c17, %c0_17] : memref<24x128xf32, #tpu.memory_space<vmem>>, vector<1x128xf32>
    tpu.vector_store %arg13[%c17, %c0_17], %9 {strides = array<i32>} : memref<24x128xf32, #tpu.memory_space<vmem>>, vector<1x128xf32>,
    %c18 = arith.constant 18 : index
    %c0_18 = arith.constant 0 : index
    %23 = vector.load %arg13[%c18, %c0_18] : memref<24x128xf32, #tpu.memory_space<vmem>>, vector<1x128xf32>
    tpu.vector_store %arg13[%c18, %c0_18], %12 {strides = array<i32>} : memref<24x128xf32, #tpu.memory_space<vmem>>, vector<1x128xf32>,
    %c0_19 = arith.constant 0 : index
    %c0_20 = arith.constant 0 : index
    %24 = vector.load %arg13[%c0_19, %c0_20] : memref<24x128xf32, #tpu.memory_space<vmem>>, vector<24x128xf32>
    %c0_21 = arith.constant 0 : index
    %c0_22 = arith.constant 0 : index
    %25 = vector.load %arg3[%c0_21, %c0_22] : memref<128x128xf32, #tpu.memory_space<vmem>>, vector<128x128xf32>
    %c0_23 = arith.constant 0 : index
    %c0_24 = arith.constant 0 : index
    %26 = vector.load %arg4[%c0_23, %c0_24] : memref<1x128xf32, #tpu.memory_space<vmem>>, vector<1x128xf32>
    %cst_25 = arith.constant dense<0.000000e+00> : vector<24x128xf32>
    %27 = tpu.matmul %24, %25, %cst_25 {dimension_numbers = #tpu.dot_dimension_numbers<[1], [0], [0], [1], [0, 0, 1, 1], [], []>} : vector<24x128xf32>, vector<128x128xf32>, vector<24x128xf32> -> vector<24x128xf32>
    %28 = vector.broadcast %26 : vector<1x128xf32> to vector<24x128xf32>
    %29 = arith.addf %27, %28 : vector<24x128xf32>
    %30 = math.tanh %29 : vector<24x128xf32>
    %cst_26 = arith.constant dense<0.000000e+00> : vector<24xf32>
    %31 = vector.multi_reduction <add>, %30, %cst_26 [1] : vector<24x128xf32> to vector<24xf32>
    %32 = vector.shape_cast %31 : vector<24xf32> to vector<24x1xf32>
    %cst_27 = arith.constant 1.280000e+02 : f32
    %33 = vector.broadcast %cst_27 : f32 to vector<24x1xf32>
    %34 = arith.divf %32, %33 : vector<24x1xf32>
    %35 = vector.broadcast %34 : vector<24x1xf32> to vector<24x128xf32>
    %36 = arith.subf %30, %35 : vector<24x128xf32>
    %37 = arith.mulf %36, %36 : vector<24x128xf32>
    %cst_28 = arith.constant dense<0.000000e+00> : vector<24xf32>
    %38 = vector.multi_reduction <add>, %37, %cst_28 [1] : vector<24x128xf32> to vector<24xf32>
    %39 = vector.shape_cast %38 : vector<24xf32> to vector<24x1xf32>
    %cst_29 = arith.constant 1.280000e+02 : f32
    %40 = vector.broadcast %cst_29 : f32 to vector<24x1xf32>
    %41 = arith.divf %39, %40 : vector<24x1xf32>
    %42 = vector.broadcast %34 : vector<24x1xf32> to vector<24x128xf32>
    %43 = arith.subf %30, %42 : vector<24x128xf32>
    %cst_30 = arith.constant 9.99999997E-7 : f32
    %44 = vector.broadcast %cst_30 : f32 to vector<24x1xf32>
    %45 = arith.addf %41, %44 : vector<24x1xf32>
    %46 = math.rsqrt %45 : vector<24x1xf32>
    %47 = vector.broadcast %46 : vector<24x1xf32> to vector<24x128xf32>
    %48 = arith.mulf %43, %47 : vector<24x128xf32>
    %cst_31 = arith.constant 0.000000e+00 : f32
    %49 = vector.broadcast %cst_31 : f32 to vector<8x128xf32>
    %c0_32 = arith.constant 0 : index
    %c0_33 = arith.constant 0 : index
    %50 = vector.load %arg15[%c0_32, %c0_33] : memref<8x128xf32, #tpu.memory_space<vmem>>, vector<8x128xf32>
    tpu.vector_store %arg15[%c0_32, %c0_33], %49 {strides = array<i32>} : memref<8x128xf32, #tpu.memory_space<vmem>>, vector<8x128xf32>,
    %51 = vector.extract_strided_slice %48 {offsets = [0, 0], sizes = [1, 128], strides = [1, 1]} : vector<24x128xf32> to vector<1x128xf32>
    %c0_34 = arith.constant 0 : index
    %c0_35 = arith.constant 0 : index
    %52 = vector.load %arg15[%c0_34, %c0_35] : memref<8x128xf32, #tpu.memory_space<vmem>>, vector<1x128xf32>
    tpu.vector_store %arg15[%c0_34, %c0_35], %51 {strides = array<i32>} : memref<8x128xf32, #tpu.memory_space<vmem>>, vector<1x128xf32>,
    %53 = vector.extract_strided_slice %48 {offsets = [9, 0], sizes = [1, 128], strides = [1, 1]} : vector<24x128xf32> to vector<1x128xf32>
    %c1_36 = arith.constant 1 : index
    %c0_37 = arith.constant 0 : index
    %54 = vector.load %arg15[%c1_36, %c0_37] : memref<8x128xf32, #tpu.memory_space<vmem>>, vector<1x128xf32>
    tpu.vector_store %arg15[%c1_36, %c0_37], %53 {strides = array<i32>} : memref<8x128xf32, #tpu.memory_space<vmem>>, vector<1x128xf32>,
    %55 = vector.extract_strided_slice %48 {offsets = [18, 0], sizes = [1, 128], strides = [1, 1]} : vector<24x128xf32> to vector<1x128xf32>
    %c2_38 = arith.constant 2 : index
    %c0_39 = arith.constant 0 : index
    %56 = vector.load %arg15[%c2_38, %c0_39] : memref<8x128xf32, #tpu.memory_space<vmem>>, vector<1x128xf32>
    tpu.vector_store %arg15[%c2_38, %c0_39], %55 {strides = array<i32>} : memref<8x128xf32, #tpu.memory_space<vmem>>, vector<1x128xf32>,
    %c0_40 = arith.constant 0 : index
    %c0_41 = arith.constant 0 : index
    %57 = vector.load %arg15[%c0_40, %c0_41] : memref<8x128xf32, #tpu.memory_space<vmem>>, vector<8x128xf32>
    %c0_42 = arith.constant 0 : index
    %c0_43 = arith.constant 0 : index
    %58 = vector.load %arg5[%c0_42, %c0_43] : memref<128x1536xf32, #tpu.memory_space<vmem>>, vector<128x1536xf32>
    %cst_44 = arith.constant dense<0.000000e+00> : vector<8x1536xf32>
    %59 = tpu.matmul %57, %58, %cst_44 {dimension_numbers = #tpu.dot_dimension_numbers<[1], [0], [0], [1], [0, 0, 1, 1], [], []>} : vector<8x128xf32>, vector<128x1536xf32>, vector<8x1536xf32> -> vector<8x1536xf32>
    %c0_45 = arith.constant 0 : index
    %c0_46 = arith.constant 0 : index
    %60 = vector.load %arg6[%c0_45, %c0_46] : memref<1x1536xf32, #tpu.memory_space<vmem>>, vector<1x1536xf32>
    %61 = vector.broadcast %60 : vector<1x1536xf32> to vector<8x1536xf32>
    %62 = arith.addf %59, %61 : vector<8x1536xf32>
    %cst_47 = arith.constant 0.000000e+00 : f32
    %63 = vector.broadcast %cst_47 : f32 to vector<8x512xf32>
    %c0_48 = arith.constant 0 : index
    %c0_49 = arith.constant 0 : index
    %64 = vector.load %arg16[%c0_48, %c0_49] : memref<8x512xf32, #tpu.memory_space<vmem>>, vector<8x512xf32>
    tpu.vector_store %arg16[%c0_48, %c0_49], %63 {strides = array<i32>} : memref<8x512xf32, #tpu.memory_space<vmem>>, vector<8x512xf32>,
    %65 = vector.extract_strided_slice %62 {offsets = [0, 0], sizes = [1, 512], strides = [1, 1]} : vector<8x1536xf32> to vector<1x512xf32>
    %c0_50 = arith.constant 0 : index
    %c0_51 = arith.constant 0 : index
    %66 = vector.load %arg16[%c0_50, %c0_51] : memref<8x512xf32, #tpu.memory_space<vmem>>, vector<1x512xf32>
    tpu.vector_store %arg16[%c0_50, %c0_51], %65 {strides = array<i32>} : memref<8x512xf32, #tpu.memory_space<vmem>>, vector<1x512xf32>,
    %67 = vector.extract_strided_slice %62 {offsets = [1, 512], sizes = [1, 512], strides = [1, 1]} : vector<8x1536xf32> to vector<1x512xf32>
    %c1_52 = arith.constant 1 : index
    %c0_53 = arith.constant 0 : index
    %68 = vector.load %arg16[%c1_52, %c0_53] : memref<8x512xf32, #tpu.memory_space<vmem>>, vector<1x512xf32>
    tpu.vector_store %arg16[%c1_52, %c0_53], %67 {strides = array<i32>} : memref<8x512xf32, #tpu.memory_space<vmem>>, vector<1x512xf32>,
    %69 = vector.extract_strided_slice %62 {offsets = [2, 1024], sizes = [1, 512], strides = [1, 1]} : vector<8x1536xf32> to vector<1x512xf32>
    %c2_54 = arith.constant 2 : index
    %c0_55 = arith.constant 0 : index
    %70 = vector.load %arg16[%c2_54, %c0_55] : memref<8x512xf32, #tpu.memory_space<vmem>>, vector<1x512xf32>
    tpu.vector_store %arg16[%c2_54, %c0_55], %69 {strides = array<i32>} : memref<8x512xf32, #tpu.memory_space<vmem>>, vector<1x512xf32>,
    %c0_56 = arith.constant 0 : index
    %c0_57 = arith.constant 0 : index
    %71 = vector.load %arg16[%c0_56, %c0_57] : memref<8x512xf32, #tpu.memory_space<vmem>>, vector<8x512xf32>
    %cst_58 = arith.constant dense<0xFF800000> : vector<8xf32>
    %72 = vector.multi_reduction <maximumf>, %71, %cst_58 [1] : vector<8x512xf32> to vector<8xf32>
    %73 = vector.shape_cast %72 : vector<8xf32> to vector<8x1xf32>
    %74 = vector.broadcast %73 : vector<8x1xf32> to vector<8x512xf32>
    %75 = arith.subf %71, %74 : vector<8x512xf32>
    %76 = math.exp %75 : vector<8x512xf32>
    %cst_59 = arith.constant dense<0.000000e+00> : vector<8xf32>
    %77 = vector.multi_reduction <add>, %76, %cst_59 [1] : vector<8x512xf32> to vector<8xf32>
    %78 = vector.shape_cast %77 : vector<8xf32> to vector<8x1xf32>
    %79 = vector.broadcast %78 : vector<8x1xf32> to vector<8x512xf32>
    %80 = arith.divf %76, %79 : vector<8x512xf32>
    %81 = tpu.iota {dimensions = array<i32: 0>} : vector<8x1xi32>
    %c0_i32 = arith.constant 0 : i32
    %82 = vector.broadcast %c0_i32 : i32 to vector<8x1xi32>
    %83 = arith.cmpi eq, %81, %82 : vector<8x1xi32>
    %c1_i32 = arith.constant 1 : i32
    %84 = vector.broadcast %c1_i32 : i32 to vector<8x1xi32>
    %85 = arith.cmpi eq, %81, %84 : vector<8x1xi32>
    %c2_i32 = arith.constant 2 : i32
    %86 = vector.broadcast %c2_i32 : i32 to vector<8x1xi32>
    %87 = arith.cmpi eq, %81, %86 : vector<8x1xi32>
    %c-1_i32 = arith.constant -1 : i32
    %88 = vector.broadcast %5 : i32 to vector<8x1xi32>
    %89 = vector.broadcast %c-1_i32 : i32 to vector<8x1xi32>
    %90 = arith.select %87, %88, %89 : vector<8x1xi1>, vector<8x1xi32>
    %91 = vector.broadcast %3 : i32 to vector<8x1xi32>
    %92 = arith.select %85, %91, %90 : vector<8x1xi1>, vector<8x1xi32>
    %93 = vector.broadcast %1 : i32 to vector<8x1xi32>
    %94 = arith.select %83, %93, %92 : vector<8x1xi1>, vector<8x1xi32>
    %95 = tpu.iota {dimensions = array<i32: 1>} : vector<8x512xi32>
    %96 = vector.broadcast %94 : vector<8x1xi32> to vector<8x512xi32>
    %97 = arith.cmpi eq, %95, %96 : vector<8x512xi32>
    %cst_60 = arith.constant 0.000000e+00 : f32
    %98 = vector.broadcast %cst_60 : f32 to vector<8x512xf32>
    %99 = arith.select %97, %80, %98 : vector<8x512xi1>, vector<8x512xf32>
    %cst_61 = arith.constant dense<0.000000e+00> : vector<8xf32>
    %100 = vector.multi_reduction <add>, %99, %cst_61 [1] : vector<8x512xf32> to vector<8xf32>
    %101 = vector.shape_cast %100 : vector<8xf32> to vector<8x1xf32>
    %cst_62 = arith.constant 0.000000e+00 : f32
    %102 = vector.broadcast %cst_62 : f32 to vector<8x128xf32>
    %c0_63 = arith.constant 0 : index
    %c0_64 = arith.constant 0 : index
    %103 = vector.load %arg14[%c0_63, %c0_64] : memref<8x128xf32, #tpu.memory_space<vmem>>, vector<8x128xf32>
    tpu.vector_store %arg14[%c0_63, %c0_64], %102 {strides = array<i32>} : memref<8x128xf32, #tpu.memory_space<vmem>>, vector<8x128xf32>,
    %104 = arith.index_cast %1 : i32 to index
    %c0_65 = arith.constant 0 : index
    %105 = vector.load %arg7[%104, %c0_65] : memref<512x128xf32, #tpu.memory_space<vmem>>, vector<1x128xf32>
    %c0_66 = arith.constant 0 : index
    %c0_67 = arith.constant 0 : index
    %106 = vector.load %arg14[%c0_66, %c0_67] : memref<8x128xf32, #tpu.memory_space<vmem>>, vector<1x128xf32>
    tpu.vector_store %arg14[%c0_66, %c0_67], %105 {strides = array<i32>} : memref<8x128xf32, #tpu.memory_space<vmem>>, vector<1x128xf32>,
    %107 = arith.index_cast %3 : i32 to index
    %c0_68 = arith.constant 0 : index
    %108 = vector.load %arg7[%107, %c0_68] : memref<512x128xf32, #tpu.memory_space<vmem>>, vector<1x128xf32>
    %c1_69 = arith.constant 1 : index
    %c0_70 = arith.constant 0 : index
    %109 = vector.load %arg14[%c1_69, %c0_70] : memref<8x128xf32, #tpu.memory_space<vmem>>, vector<1x128xf32>
    tpu.vector_store %arg14[%c1_69, %c0_70], %108 {strides = array<i32>} : memref<8x128xf32, #tpu.memory_space<vmem>>, vector<1x128xf32>,
    %110 = arith.index_cast %5 : i32 to index
    %c0_71 = arith.constant 0 : index
    %111 = vector.load %arg7[%110, %c0_71] : memref<512x128xf32, #tpu.memory_space<vmem>>, vector<1x128xf32>
    %c2_72 = arith.constant 2 : index
    %c0_73 = arith.constant 0 : index
    %112 = vector.load %arg14[%c2_72, %c0_73] : memref<8x128xf32, #tpu.memory_space<vmem>>, vector<1x128xf32>
    tpu.vector_store %arg14[%c2_72, %c0_73], %111 {strides = array<i32>} : memref<8x128xf32, #tpu.memory_space<vmem>>, vector<1x128xf32>,
    %c0_74 = arith.constant 0 : index
    %c0_75 = arith.constant 0 : index
    %113 = vector.load %arg14[%c0_74, %c0_75] : memref<8x128xf32, #tpu.memory_space<vmem>>, vector<8x128xf32>
    %c0_76 = arith.constant 0 : index
    %c0_77 = arith.constant 0 : index
    %114 = vector.load %arg8[%c0_76, %c0_77] : memref<128x128xf32, #tpu.memory_space<vmem>>, vector<128x128xf32>
    %c0_78 = arith.constant 0 : index
    %c0_79 = arith.constant 0 : index
    %115 = vector.load %arg9[%c0_78, %c0_79] : memref<1x128xf32, #tpu.memory_space<vmem>>, vector<1x128xf32>
    %cst_80 = arith.constant dense<0.000000e+00> : vector<8x128xf32>
    %116 = tpu.matmul %113, %114, %cst_80 {dimension_numbers = #tpu.dot_dimension_numbers<[1], [0], [0], [1], [0, 0, 1, 1], [], []>} : vector<8x128xf32>, vector<128x128xf32>, vector<8x128xf32> -> vector<8x128xf32>
    %117 = vector.broadcast %115 : vector<1x128xf32> to vector<8x128xf32>
    %118 = arith.addf %116, %117 : vector<8x128xf32>
    %119 = math.tanh %118 : vector<8x128xf32>
    %cst_81 = arith.constant dense<0.000000e+00> : vector<8xf32>
    %120 = vector.multi_reduction <add>, %119, %cst_81 [1] : vector<8x128xf32> to vector<8xf32>
    %121 = vector.shape_cast %120 : vector<8xf32> to vector<8x1xf32>
    %cst_82 = arith.constant 1.280000e+02 : f32
    %122 = vector.broadcast %cst_82 : f32 to vector<8x1xf32>
    %123 = arith.divf %121, %122 : vector<8x1xf32>
    %124 = vector.broadcast %123 : vector<8x1xf32> to vector<8x128xf32>
    %125 = arith.subf %119, %124 : vector<8x128xf32>
    %126 = arith.mulf %125, %125 : vector<8x128xf32>
    %cst_83 = arith.constant dense<0.000000e+00> : vector<8xf32>
    %127 = vector.multi_reduction <add>, %126, %cst_83 [1] : vector<8x128xf32> to vector<8xf32>
    %128 = vector.shape_cast %127 : vector<8xf32> to vector<8x1xf32>
    %cst_84 = arith.constant 1.280000e+02 : f32
    %129 = vector.broadcast %cst_84 : f32 to vector<8x1xf32>
    %130 = arith.divf %128, %129 : vector<8x1xf32>
    %131 = vector.broadcast %123 : vector<8x1xf32> to vector<8x128xf32>
    %132 = arith.subf %119, %131 : vector<8x128xf32>
    %cst_85 = arith.constant 9.99999997E-7 : f32
    %133 = vector.broadcast %cst_85 : f32 to vector<8x1xf32>
    %134 = arith.addf %130, %133 : vector<8x1xf32>
    %135 = math.rsqrt %134 : vector<8x1xf32>
    %136 = vector.broadcast %135 : vector<8x1xf32> to vector<8x128xf32>
    %137 = arith.mulf %132, %136 : vector<8x128xf32>
    %c0_86 = arith.constant 0 : index
    %c0_87 = arith.constant 0 : index
    %138 = vector.load %arg10[%c0_86, %c0_87] : memref<8x128xf32, #tpu.memory_space<vmem>>, vector<8x128xf32>
    %139 = arith.mulf %137, %138 : vector<8x128xf32>
    %cst_88 = arith.constant dense<0.000000e+00> : vector<8xf32>
    %140 = vector.multi_reduction <add>, %139, %cst_88 [1] : vector<8x128xf32> to vector<8xf32>
    %141 = vector.shape_cast %140 : vector<8xf32> to vector<8x1xf32>
    %c0_89 = arith.constant 0 : index
    %c0_90 = arith.constant 0 : index
    %142 = vector.load %arg11[%c0_89, %c0_90] : memref<8x1xf32, #tpu.memory_space<vmem>>, vector<8x1xf32>
    %143 = arith.addf %141, %142 : vector<8x1xf32>
    %cst_91 = arith.constant 0.000000e+00 : f32
    %144 = vector.broadcast %cst_91 : f32 to vector<8x1xf32>
    %145 = arith.subf %144, %143 : vector<8x1xf32>
    %146 = math.exp %145 : vector<8x1xf32>
    %147 = tpu.iota {dimensions = array<i32: 0>} : vector<8x128xi32>
    %148 = tpu.iota {dimensions = array<i32: 1>} : vector<8x128xi32>
    %c3_i32 = arith.constant 3 : i32
    %149 = vector.broadcast %c3_i32 : i32 to vector<8x128xi32>
    %150 = arith.cmpi slt, %147, %149 : vector<8x128xi32>
    %151 = arith.cmpi eq, %148, %147 : vector<8x128xi32>
    %152 = arith.andi %150, %151 : vector<8x128xi1>
    %cst_92 = arith.constant 0.000000e+00 : f32
    %153 = vector.shape_cast %146 : vector<8x1xf32> to vector<8x1xf32>
    %154 = vector.broadcast %153 : vector<8x1xf32> to vector<8x128xf32>
    %155 = vector.broadcast %cst_92 : f32 to vector<8x128xf32>
    %156 = arith.select %152, %154, %155 : vector<8x128xi1>, vector<8x128xf32>
    %c3_i32_93 = arith.constant 3 : i32
    %157 = vector.broadcast %c3_i32_93 : i32 to vector<8x128xi32>
    %158 = arith.addi %147, %157 : vector<8x128xi32>
    %159 = arith.cmpi eq, %148, %158 : vector<8x128xi32>
    %160 = arith.andi %150, %159 : vector<8x128xi1>
    %cst_94 = arith.constant 0.000000e+00 : f32
    %161 = vector.shape_cast %101 : vector<8x1xf32> to vector<8x1xf32>
    %162 = vector.broadcast %161 : vector<8x1xf32> to vector<8x128xf32>
    %163 = vector.broadcast %cst_94 : f32 to vector<8x128xf32>
    %164 = arith.select %160, %162, %163 : vector<8x128xi1>, vector<8x128xf32>
    %165 = arith.addf %156, %164 : vector<8x128xf32>
    %cst_95 = arith.constant dense<0.000000e+00> : vector<128xf32>
    %166 = vector.multi_reduction <add>, %165, %cst_95 [0] : vector<8x128xf32> to vector<128xf32>
    %167 = vector.shape_cast %166 : vector<128xf32> to vector<1x128xf32>
    %c0_96 = arith.constant 0 : index
    %c0_97 = arith.constant 0 : index
    %c0_98 = arith.constant 0 : index
    %168 = vector.load %arg12[%c0_96, %c0_97, %c0_98] : memref<1x1x128xf32, #tpu.memory_space<vmem>>, vector<1x1x128xf32>
    %169 = vector.shape_cast %168 : vector<1x1x128xf32> to vector<1x128xf32>
    %170 = vector.shape_cast %167 : vector<1x128xf32> to vector<1x1x128xf32>
    tpu.vector_store %arg12[%c0_96, %c0_97, %c0_98], %170 {strides = array<i32>} : memref<1x1x128xf32, #tpu.memory_space<vmem>>, vector<1x1x128xf32>,
    return
  }
  func.func @transform_0(%arg0: i32, %arg1: memref<3x3xi32, #tpu.memory_space<smem>>) -> (i32, i32) {
    %c0_i32 = arith.constant 0 : i32
    %c0_i32_0 = arith.constant 0 : i32
    %c0_i32_1 = arith.constant 0 : i32
    return %c0_i32, %c0_i32_0 : i32, i32
  }
  func.func @transform_1(%arg0: i32, %arg1: memref<3x3xi32, #tpu.memory_space<smem>>) -> (i32, i32) {
    %c0_i32 = arith.constant 0 : i32
    %c0_i32_0 = arith.constant 0 : i32
    %c0_i32_1 = arith.constant 0 : i32
    return %c0_i32, %c0_i32_0 : i32, i32
  }
  func.func @transform_2(%arg0: i32, %arg1: memref<3x3xi32, #tpu.memory_space<smem>>) -> (i32, i32) {
    %c0_i32 = arith.constant 0 : i32
    %c0_i32_0 = arith.constant 0 : i32
    %c0_i32_1 = arith.constant 0 : i32
    return %c0_i32, %c0_i32_0 : i32, i32
  }
  func.func @transform_3(%arg0: i32, %arg1: memref<3x3xi32, #tpu.memory_space<smem>>) -> (i32, i32) {
    %c0_i32 = arith.constant 0 : i32
    %c0_i32_0 = arith.constant 0 : i32
    %c0_i32_1 = arith.constant 0 : i32
    return %c0_i32, %c0_i32_0 : i32, i32
  }
  func.func @transform_4(%arg0: i32, %arg1: memref<3x3xi32, #tpu.memory_space<smem>>) -> (i32, i32) {
    %c0_i32 = arith.constant 0 : i32
    %c0_i32_0 = arith.constant 0 : i32
    %c0_i32_1 = arith.constant 0 : i32
    return %c0_i32, %c0_i32_0 : i32, i32
  }
  func.func @transform_5(%arg0: i32, %arg1: memref<3x3xi32, #tpu.memory_space<smem>>) -> (i32, i32) {
    %c0_i32 = arith.constant 0 : i32
    %c0_i32_0 = arith.constant 0 : i32
    %c0_i32_1 = arith.constant 0 : i32
    return %c0_i32, %c0_i32_0 : i32, i32
  }
  func.func @transform_6(%arg0: i32, %arg1: memref<3x3xi32, #tpu.memory_space<smem>>) -> (i32, i32) {
    %c0_i32 = arith.constant 0 : i32
    %c0_i32_0 = arith.constant 0 : i32
    %c0_i32_1 = arith.constant 0 : i32
    return %c0_i32, %c0_i32_0 : i32, i32
  }
  func.func @transform_7(%arg0: i32, %arg1: memref<3x3xi32, #tpu.memory_space<smem>>) -> (i32, i32) {
    %c0_i32 = arith.constant 0 : i32
    %c0_i32_0 = arith.constant 0 : i32
    %c0_i32_1 = arith.constant 0 : i32
    return %c0_i32, %c0_i32_0 : i32, i32
  }
  func.func @transform_8(%arg0: i32, %arg1: memref<3x3xi32, #tpu.memory_space<smem>>) -> (i32, i32) {
    %c0_i32 = arith.constant 0 : i32
    %c0_i32_0 = arith.constant 0 : i32
    %c0_i32_1 = arith.constant 0 : i32
    return %c0_i32, %c0_i32_0 : i32, i32
  }
  func.func @transform_9(%arg0: i32, %arg1: memref<3x3xi32, #tpu.memory_space<smem>>) -> (i32, i32) {
    %c0_i32 = arith.constant 0 : i32
    %c0_i32_0 = arith.constant 0 : i32
    %c0_i32_1 = arith.constant 0 : i32
    return %c0_i32, %c0_i32_0 : i32, i32
  }
  func.func @transform_10(%arg0: i32, %arg1: memref<3x3xi32, #tpu.memory_space<smem>>) -> (i32, i32, i32) {
    %c0_i32 = arith.constant 0 : i32
    %c0_i32_0 = arith.constant 0 : i32
    %c0_i32_1 = arith.constant 0 : i32
    return %arg0, %c0_i32, %c0_i32_0 : i32, i32, i32
  }
}

</mosaic_0001>

<bundles_post_ra>
// kernel: forward.2
= control target key start
LH: loop header
LB: loop body
LE: loop exit
PB: predicated region body
PF: predicated region fallthrough
CT: control target
= control target key end

     0   :  { %s1858_s0 = inlined_call_operand.vmem [shape: s32[3], index: 0, kind: input, shape index: {}]   ;;  %s1859_s1 = inlined_call_operand.hbm [shape: f32[512,128], index: 1, kind: input, shape index: {}]   ;;  %s1860_s2 = inlined_call_operand.hbm [shape: f32[128,128], index: 2, kind: input, shape index: {}]   ;;  %s1861_s3 = inlined_call_operand.vmem [shape: f32[1,128], index: 3, kind: input, shape index: {}]   ;;  %s1862_s4 = inlined_call_operand.hbm [shape: f32[128,1536], index: 4, kind: input, shape index: {}]   ;;  %s1863_s5 = inlined_call_operand.vmem [shape: f32[1,1536], index: 5, kind: input, shape index: {}]   ;;  %s1864_s6 = inlined_call_operand.hbm [shape: f32[512,128], index: 6, kind: input, shape index: {}]   ;;  %s1865_s7 = inlined_call_operand.hbm [shape: f32[128,128], index: 7, kind: input, shape index: {}]   ;;  %s1866_s8 = inlined_call_operand.hbm [shape: f32[1,128], index: 8, kind: input, shape index: {}]   ;;  %s1867_s9 = inlined_call_operand.vmem [shape: f32[8,128], index: 9, kind: input, shape index: {}]   ;;  %s1868_s10 = inlined_call_operand.vmem [shape: f32[8,1], index: 10, kind: input, shape index: {}]   ;;  %s1869_s11 = inlined_call_operand.vmem [shape: f32[8,512], index: 11, kind: output, shape index: {0}]   ;;  %s1870_s12 = inlined_call_operand.vmem [shape: f32[1,128], index: 12, kind: output, shape index: {1}]  }
   0x1   :  { %s18_s23 = sshll.u32 %s1858_s0, 4  ;;  %s19_s23 = int_to_ptr.vmem [resolvable:$true] %s18_s23 }
   0x2   :  { %s1469_s24 = scalar_lea.vmem %s19_s23, 16  ;;  %p1474_p1 = scmp.lt.s32.totalorder %s19_s23, %s19_s23 }
   0x3   :  { %p1470_p0 = scmp.ne.s32.totalorder %s19_s23, %s1469_s24  ;;  %p1475_p2 = scmp.lt.s32.totalorder %s1469_s24, %s1469_s24 }
   0x5   :  { %p1476_p3 = por %p1475_p2, %p1474_p1 }
   0x7   :  { %p1477_p4 = pnand %p1476_p3, %p1470_p0 }
   0x9   :  { %1480 = shalt.err (!%p1477_p4)  }
   0xa   :  { %s1611_s25 = smov [#allocation7]  }
   0xb   :  { %21 = dma.vmem_to_smem %s19_s23, 16, %s1611_s25, [#allocation6] }
   0xc   :  { %1601 = dma.done.wait [#allocation6], 16 }
   0xd   :  { %1602 = vsyncadd [#allocation6], 4294967280 }
   0xe   :  { %23 = sfence }
   0xf   :  { %24 = vsyncpa [#allocation9], 0 }
  0x10   :  { %25 = vsyncpa [#allocation11], 0 }
  0x11   :  { %26 = vsyncpa [#allocation14], 0 }
  0x12   :  { %27 = vsyncpa [#allocation17], 0  ;;  %s1612_s26 = smov [#allocation10]   ;;  %s1613_s0 = smov [#allocation13]  }
  0x13   :  { %s45_s27 = sshll.u32 %s1612_s26, 4  ;;  %s73_s28 = sshll.u32 %s1613_s0, 4  ;;  %s46_s27 = int_to_ptr.vmem [resolvable:$true] %s45_s27  ;;  %s74_s28 = int_to_ptr.vmem [resolvable:$true] %s73_s28 }
  0x14   :  { %s1489_s29 = scalar_lea.vmem %s46_s27, 2048  ;;  %p1494_p6 = scmp.lt.s32.totalorder %s46_s27, %s46_s27 }
  0x15   :  { %p1490_p5 = scmp.ne.s32.totalorder %s46_s27, %s1489_s29  ;;  %p1495_p7 = scmp.lt.s32.totalorder %s1489_s29, %s1489_s29 }
  0x17   :  { %p1496_p8 = por %p1495_p7, %p1494_p6 }
  0x19   :  { %p1497_p9 = pnand %p1496_p8, %p1490_p5 }
  0x1b   :  { %1500 = shalt.err (!%p1497_p9)
}
  0x1c   :  { %s1614_s30 = smov 128   ;;  %s1615_s13 = smov 8  }
  0x1d   :  { %51 = dma.hbm_to_vmem [thread:$0]  %s1860_s2, 2048, %s46_s27, [#allocation11], %s1614_s30, %s1614_s30, %s1615_s13  }
  0x1e   :  { %s1509_s16 = scalar_lea.vmem %s74_s28, 8192  ;;  %p1514_p11 = scmp.lt.s32.totalorder %s74_s28, %s74_s28 }
  0x1f   :  { %p1510_p10 = scmp.ne.s32.totalorder %s74_s28, %s1509_s16  ;;  %p1515_p12 = scmp.lt.s32.totalorder %s1509_s16, %s1509_s16 }
  0x21   :  { %p1516_p13 = por %p1515_p12, %p1514_p11 }
  0x23   :  { %p1517_p0 = pnand %p1516_p13, %p1510_p10 }
  0x25   :  { %1520 = shalt.err (!%p1517_p0)
}
  0x26   :  { %79 = dma.hbm_to_vmem [thread:$0]  %s1864_s6, 8192, %s74_s28, [#allocation14], %s1614_s30, %s1614_s30, %s1615_s13  }
  0x27   :  { %s1616_s19 = smov [#allocation8]   ;;  %s1617_s21 = smov [#allocation12]  }
  0x28   :  { %s33_s20 = sshll.u32 %s1616_s19, 4  ;;  %s59_s22 = sshll.u32 %s1617_s21, 4  ;;  %s34_s20 = int_to_ptr.vmem [resolvable:$true] %s33_s20  ;;  %s60_s22 = int_to_ptr.vmem [resolvable:$true] %s59_s22 }
  0x29   :  { %s1529_s2 = scalar_lea.vmem %s34_s20, 8192  ;;  %p1534_p2 = scmp.lt.s32.totalorder %s34_s20, %s34_s20 }
  0x2a   :  { %p1530_p1 = scmp.ne.s32.totalorder %s34_s20, %s1529_s2  ;;  %p1535_p3 = scmp.lt.s32.totalorder %s1529_s2, %s1529_s2 }
  0x2c   :  { %p1536_p4 = por %p1535_p3, %p1534_p2 }
  0x2e   :  { %p1537_p5 = pnand %p1536_p4, %p1530_p1 }
  0x30   :  { %1540 = shalt.err (!%p1537_p5)
}
  0x31   :  { %39 = dma.hbm_to_vmem [thread:$0]  %s1859_s1, 8192, %s34_s20, [#allocation9], %s1614_s30, %s1614_s30, %s1615_s13  }
  0x32   :  { %s1549_s6 = scalar_lea.vmem %s60_s22, 24576  ;;  %p1554_p7 = scmp.lt.s32.totalorder %s60_s22, %s60_s22 }
  0x33   :  { %p1550_p6 = scmp.ne.s32.totalorder %s60_s22, %s1549_s6  ;;  %p1555_p8 = scmp.lt.s32.totalorder %s1549_s6, %s1549_s6 }
  0x35   :  { %p1556_p9 = por %p1555_p8, %p1554_p7 }
  0x37   :  { %p1557_p10 = pnand %p1556_p9, %p1550_p6 }
  0x39   :  { %1560 = shalt.err (!%p1557_p10)
}
  0x3a   :  { %s1618_s25 = smov 1536   ;;  %s1619_s26 = smov 96  }
  0x3b   :  { %65 = dma.hbm_to_vmem [thread:$0]  %s1862_s4, 24576, %s60_s22, [#allocation11], %s1618_s25, %s1618_s25, %s1619_s26  }
  0x3c   :  { %s1620_s28 = smov [#allocation15]   ;;  %s1621_s14 = smov [#allocation16]  }
  0x3d   :  { %s85_s29 = sshll.u32 %s1620_s28, 4  ;;  %s98_s15 = sshll.u32 %s1621_s14, 4  ;;  %s86_s29 = int_to_ptr.vmem [resolvable:$true] %s85_s29  ;;  %s99_s15 = int_to_ptr.vmem [resolvable:$true] %s98_s15 }
  0x3e   :  { %s1569_s1 = scalar_lea.vmem %s86_s29, 2048  ;;  %p1574_p12 = scmp.lt.s32.totalorder %s86_s29, %s86_s29 }
  0x3f   :  { %p1570_p11 = scmp.ne.s32.totalorder %s86_s29, %s1569_s1  ;;  %p1575_p13 = scmp.lt.s32.totalorder %s1569_s1, %s1569_s1 }
  0x41   :  { %p1576_p0 = por %p1575_p13, %p1574_p12 }
  0x43   :  { %p1577_p1 = pnand %p1576_p0, %p1570_p11 }
  0x45   :  { %1580 = shalt.err (!%p1577_p1)
}
  0x46   :  { %91 = dma.hbm_to_vmem [thread:$0]  %s1865_s7, 2048, %s86_s29, [#allocation14], %s1614_s30, %s1614_s30, %s1615_s13  }
  0x47   :  { %s1589_s4 = scalar_lea.vmem %s99_s15, 16  ;;  %s1593_s18 = scalar_lea.vmem %s99_s15, 32 }
  0x48   :  { %p1590_p2 = scmp.ne.s32.totalorder %s99_s15, %s1589_s4  ;;  %p1594_p3 = scmp.lt.s32.totalorder %s99_s15, %s99_s15 }
  0x49   :  { %p1595_p4 = scmp.lt.s32.totalorder %s1593_s18, %s1589_s4 }
  0x4b   :  { %p1596_p5 = por %p1595_p4, %p1594_p3 }
  0x4d   :  { %p1597_p6 = pnand %p1596_p5, %p1590_p2 }
  0x4f   :  { %1600 = shalt.err (!%p1597_p6)
}
  0x50   :  { %101 = dma.hbm_to_vmem [thread:$0]  %s1866_s8, 16, %s99_s15, [#allocation17]  }
  0x51   :  { %1603 = dma.done.wait [#allocation9], 8192  }
  0x52   :  { %1604 = vsyncadd [#allocation9], 4294959104 }
  0x53   :  { %1605 = dma.done.wait [#allocation11], 26624  }
  0x54   :  { %1606 = vsyncadd [#allocation11], 4294940672 }
  0x55   :  { %1607 = dma.done.wait [#allocation14], 10240  }
  0x56   :  { %1608 = vsyncadd [#allocation14], 4294957056 }
  0x57   :  { %1609 = dma.done.wait [#allocation17], 16  }
  0x58   :  { %1610 = vsyncadd [#allocation17], 4294967280  ;;  %v1622_v0 = vmov 0.0   ;;  %vm1623_vm0 = vmmov 0   ;;  %s1736_s7 = sld [smem:[#allocation7 + $0x1]]  ;;  %v164_v1 = vld [vmem:[#allocation10 + $0x78] sm:$0xff] }
  0x59   :  { %1348 = vmatprep.subr.mxu0 %v1622_v0  ;;  %134 = vst [vmem:[#allocation2] sm:$0xff] %v1622_v0  ;;  %135 = vst [vmem:[#allocation2 + $0x8] sm:$0xff] %v1622_v0  ;;  %1380 = vmatprep.mubr.msk.f32.mxu0 %vm1623_vm0, %v1622_v0  ;;  %s1738_s8 = sld [smem:[#allocation7 + $0x2]]  ;;  %v163_v2 = vld [vmem:[#allocation10 + $0x70] sm:$0xff]  ;;  %v162_v3 = vld [vmem:[#allocation10 + $0x68] sm:$0xff] }
  0x5a   :  { %136 = vst [vmem:[#allocation2 + $0x10] sm:$0xff] %v1622_v0  ;;  %289 = vst [vmem:[#allocation4] sm:$0xff] %v1622_v0  ;;  %614 = vmatprep.mubr.f32.mxu1 %v1622_v0  ;;  %s1741_s30 = sld [smem:[#allocation7]]  ;;  %1349 = vmatpush3.msra.mxu0 %v164_v1  ;;  %v161_v4 = vld [vmem:[#allocation10 + $0x60] sm:$0xff]  ;;  %v160_v7 = vld [vmem:[#allocation10 + $0x58] sm:$0xff] }
  0x5b   :  { %976 = vst [vmem:[#allocation5] sm:$0xff] %v1622_v0  ;;  %977 = vst [vmem:[#allocation5 + $0x8] sm:$0xff] %v1622_v0  ;;  %1350 = vmatprep.subr.mxu0 %v1622_v0  ;;  %v133_v8 = vld [vmem:[#allocation8] sm:$0x1]  ;;  %v159_v10 = vld [vmem:[#allocation10 + $0x50] sm:$0xff] }
  0x5c   :  { %978 = vst [vmem:[#allocation5 + $0x10] sm:$0xff] %v1622_v0  ;;  %979 = vst [vmem:[#allocation5 + $0x18] sm:$0xff] %v1622_v0  ;;  %1351 = vmatpush3.msra.mxu0 %v163_v2  ;;  %v158_v11 = vld [vmem:[#allocation10 + $0x48] sm:$0xff]  ;;  %v157_v12 = vld [vmem:[#allocation10 + $0x40] sm:$0xff] }
  0x5d   :  { %1140 = vst [vmem:[#allocation3] sm:$0xff] %v1622_v0  ;;  %1352 = vmatprep.subr.mxu0 %v1622_v0  ;;  %137 = vst [vmem:[#allocation2] sm:$0x1] %v133_v8  ;;  %v156_v13 = vld [vmem:[#allocation10 + $0x38] sm:$0xff]  ;;  %v155_v14 = vld [vmem:[#allocation10 + $0x30] sm:$0xff] }
  0x5e   :  { %1353 = vmatpush3.msra.mxu0 %v162_v3  ;;  %s129_s13 = scalar_lea.vmem [#allocation8], %s1736_s7  ;;  %141 = vst [vmem:[#allocation2 + $0x9] sm:$0x1] %v133_v8  ;;  %145 = vst [vmem:[#allocation2 + $0x12] sm:$0x1] %v133_v8  ;;  %v154_v15 = vld [vmem:[#allocation10 + $0x28] sm:$0xff] }
  0x5f   :  { %v130_v5 = vld [vmem:[%s129_s13] sm:$0x1]  ;;  %s131_s21 = scalar_lea.vmem [#allocation8], %s1738_s8  ;;  %1354 = vmatprep.subr.mxu0 %v1622_v0  ;;  %v153_v16 = vld [vmem:[#allocation10 + $0x20] sm:$0xff]  ;;  %v151_v18 = vld [vmem:[#allocation10 + $0x10] sm:$0xff]  ;;  %s1144_s24 = scalar_lea.vmem [#allocation13], %s1736_s7 }
  0x60   :  { %v132_v6 = vld [vmem:[%s131_s21] sm:$0x1]  ;;  %138 = vst [vmem:[#allocation2 + $0x1] sm:$0x1] %v130_v5  ;;  %144 = vst [vmem:[#allocation2 + $0x11] sm:$0x1] %v130_v5  ;;  %1355 = vmatpush3.msra.mxu0 %v161_v4 }
  0x61   :  { %139 = vst [vmem:[#allocation2 + $0x2] sm:$0x1] %v132_v6  ;;  %142 = vst [vmem:[#allocation2 + $0xa] sm:$0x1] %v132_v6  ;;  %s127_s22 = scalar_lea.vmem [#allocation8], %s1741_s30  ;;  %1356 = vmatprep.subr.mxu0 %v1622_v0  ;;  %v152_v17 = vld [vmem:[#allocation10 + $0x18] sm:$0xff] }
  0x62   :  { %v128_v9 = vld [vmem:[%s127_s22] sm:$0x1]  ;;  %1357 = vmatpush3.msra.mxu0 %v160_v7  ;;  %v150_v19 = vld [vmem:[#allocation10 + $0x8] sm:$0xff]  ;;  %v149_v20 = vld [vmem:[#allocation10] sm:$0xff]  ;;  %s1147_s6 = scalar_lea.vmem [#allocation13], %s1738_s8 }
  0x63   :  { %140 = vst [vmem:[#allocation2 + $0x8] sm:$0x1] %v128_v9  ;;  %143 = vst [vmem:[#allocation2 + $0x10] sm:$0x1] %v128_v9  ;;  %1358 = vmatprep.subr.mxu0 %v1622_v0  ;;  %v1310_v24 = vld [vmem:[%s1861_s3] ss:$0 sm:$0xff] }
  0x64   :  { %1359 = vmatpush3.msra.mxu0 %v159_v10  ;;  %v475_v49 = vld [vmem:[#allocation12 + $0x5a8] sm:$0xff]  ;;  %v477_v50 = vld [vmem:[#allocation12 + $0x5b8] sm:$0xff]  ;;  %v474_v51 = vld [vmem:[#allocation12 + $0x5a0] sm:$0xff]  ;;  %s1141_s3 = scalar_lea.vmem [#allocation13], %s1741_s30 }
  0x65   :  { %1360 = vmatprep.subr.mxu0 %v1622_v0  ;;  %550 = vmatprep.subr.mxu1 %v475_v49  ;;  %v476_v52 = vld [vmem:[#allocation12 + $0x5b0] sm:$0xff]  ;;  %v463_v53 = vld [vmem:[#allocation12 + $0x548] sm:$0xff]  ;;  %v465_v54 = vld [vmem:[#allocation12 + $0x558] sm:$0xff] }
  0x66   :  { %1361 = vmatpush3.msra.mxu0 %v158_v11  ;;  %551 = vmatpush1.msra.mxu1 %v474_v51  ;;  %v462_v55 = vld [vmem:[#allocation12 + $0x540] sm:$0xff]  ;;  %v464_v56 = vld [vmem:[#allocation12 + $0x550] sm:$0xff]  ;;  %v451_v57 = vld [vmem:[#allocation12 + $0x4e8] sm:$0xff] }
  0x67   :  { %1362 = vmatprep.subr.mxu0 %v1622_v0  ;;  %552 = vmatprep.subr.mxu1 %v463_v53  ;;  %v453_v58 = vld [vmem:[#allocation12 + $0x4f8] sm:$0xff]  ;;  %v450_v59 = vld [vmem:[#allocation12 + $0x4e0] sm:$0xff]  ;;  %v452_v60 = vld [vmem:[#allocation12 + $0x4f0] sm:$0xff] }
  0x68   :  { %1363 = vmatpush3.msra.mxu0 %v157_v12  ;;  %v146_v21 = vld [vmem:[#allocation2] sm:$0xff]  ;;  %553 = vmatpush1.msra.mxu1 %v462_v55  ;;  %v439_v61 = vld [vmem:[#allocation12 + $0x488] sm:$0xff]  ;;  %v438_v63 = vld [vmem:[#allocation12 + $0x480] sm:$0xff] }
  0x69   :  { %1364 = vmatprep.subr.mxu0 %v1622_v0  ;;  %554 = vmatprep.subr.mxu1 %v451_v57  ;;  %v441_v62 = vld [vmem:[#allocation12 + $0x498] sm:$0xff]  ;;  %v440_v1 = vld [vmem:[#allocation12 + $0x490] sm:$0xff]  ;;  %v427_v2 = vld [vmem:[#allocation12 + $0x428] sm:$0xff] }
  0x6a   :  { %1365 = vmatpush3.msra.mxu0 %v156_v13  ;;  %v147_v22 = vld [vmem:[#allocation2 + $0x8] sm:$0xff]  ;;  %v148_v23 = vld [vmem:[#allocation2 + $0x10] sm:$0xff]  ;;  %555 = vmatpush1.msra.mxu1 %v450_v59  ;;  %v429_v3 = vld [vmem:[#allocation12 + $0x438] sm:$0xff] }
  0x6b   :  { %1366 = vmatprep.subr.mxu0 %v1622_v0  ;;  %556 = vmatprep.subr.mxu1 %v439_v61  ;;  %v426_v4 = vld [vmem:[#allocation12 + $0x420] sm:$0xff]  ;;  %v428_v5 = vld [vmem:[#allocation12 + $0x430] sm:$0xff]  ;;  %v415_v6 = vld [vmem:[#allocation12 + $0x3c8] sm:$0xff] }
  0x6c   :  { %1367 = vmatpush3.msra.mxu0 %v155_v14  ;;  %557 = vmatpush1.msra.mxu1 %v438_v63  ;;  %v417_v7 = vld [vmem:[#allocation12 + $0x3d8] sm:$0xff]  ;;  %v414_v8 = vld [vmem:[#allocation12 + $0x3c0] sm:$0xff]  ;;  %v416_v9 = vld [vmem:[#allocation12 + $0x3d0] sm:$0xff] }
  0x6d   :  { %1368 = vmatprep.subr.mxu0 %v1622_v0  ;;  %558 = vmatprep.subr.mxu1 %v427_v2  ;;  %v403_v10 = vld [vmem:[#allocation12 + $0x368] sm:$0xff]  ;;  %v405_v11 = vld [vmem:[#allocation12 + $0x378] sm:$0xff]  ;;  %v402_v12 = vld [vmem:[#allocation12 + $0x360] sm:$0xff] }
  0x6e   :  { %1369 = vmatpush3.msra.mxu0 %v154_v15  ;;  %559 = vmatpush1.msra.mxu1 %v426_v4  ;;  %v404_v13 = vld [vmem:[#allocation12 + $0x370] sm:$0xff]  ;;  %v391_v14 = vld [vmem:[#allocation12 + $0x308] sm:$0xff]  ;;  %v393_v15 = vld [vmem:[#allocation12 + $0x318] sm:$0xff] }
  0x6f   :  { %1370 = vmatprep.subr.mxu0 %v1622_v0  ;;  %560 = vmatprep.subr.mxu1 %v415_v6  ;;  %v295_v49 = vld [vmem:[#allocation12 + $0x8] sm:$0xff]  ;;  %v294_v51 = vld [vmem:[#allocation12] sm:$0xff]  ;;  %v1145_v57 = vld [vmem:[%s1144_s24] sm:$0x1] }
  0x70   :  { %1371 = vmatpush3.msra.mxu0 %v153_v16  ;;  %561 = vmatpush1.msra.mxu1 %v414_v8  ;;  %v390_v16 = vld [vmem:[#allocation12 + $0x300] sm:$0xff]  ;;  %v479_v53 = vld [vmem:[#allocation12 + $0x5c8] sm:$0xff]  ;;  %1146 = vst [vmem:[#allocation3 + $0x1] sm:$0x1] %v1145_v57  ;;  %v1148_v59 = vld [vmem:[%s1147_s6] sm:$0x1] }
  0x71   :  { %1372 = vmatprep.subr.mxu0 %v1622_v0  ;;  %562 = vmatprep.subr.mxu1 %v403_v10  ;;  %1149 = vst [vmem:[#allocation3 + $0x2] sm:$0x1] %v1148_v59  ;;  %v478_v10 = vld [vmem:[#allocation12 + $0x5c0] sm:$0xff]  ;;  %v335_v57 = vld [vmem:[#allocation12 + $0x148] sm:$0xff] }
  0x72   :  { %1373 = vmatpush3.msra.mxu0 %v152_v17  ;;  %563 = vmatpush1.msra.mxu1 %v402_v12  ;;  %v392_v17 = vld [vmem:[#allocation12 + $0x310] sm:$0xff]  ;;  %v334_v59 = vld [vmem:[#allocation12 + $0x140] sm:$0xff] }
  0x73   :  { %1374 = vmatprep.subr.mxu0 %v1622_v0  ;;  %564 = vmatprep.subr.mxu1 %v391_v14  ;;  %v469_v14 = vld [vmem:[#allocation12 + $0x578] sm:$0xff] }
  0x74   :  { %1375 = vmatpush3.msra.mxu0 %v151_v18  ;;  %565 = vmatpush1.msra.mxu1 %v390_v16  ;;  %v379_v18 = vld [vmem:[#allocation12 + $0x2a8] sm:$0xff]  ;;  %v457_v16 = vld [vmem:[#allocation12 + $0x518] sm:$0xff] }
  0x75   :  { %1376 = vmatprep.subr.mxu0 %v1622_v0  ;;  %566 = vmatprep.subr.mxu1 %v379_v18  ;;  %v443_v18 = vld [vmem:[#allocation12 + $0x4a8] sm:$0xff] }
  0x76   :  { %1377 = vmatpush3.msra.mxu0 %v150_v19  ;;  %v381_v19 = vld [vmem:[#allocation12 + $0x2b8] sm:$0xff] }
  0x77   :  { %1378 = vmatprep.subr.mxu0 %v1622_v0 }
  0x78   :  { %1379 = vmatpush3.msra.mxu0 %v149_v20  ;;  %v378_v20 = vld [vmem:[#allocation12 + $0x2a0] sm:$0xff] }
  0x79   :  { %1381 = vmatmul.mubr.f32.vlgmr.msra.gmra.mxu0 %v146_v21  ;;  %621 = vmatprep.subr.mxu0 %v477_v50  ;;  %v380_v21 = vld [vmem:[#allocation12 + $0x2b0] sm:$0xff]  ;;  %v297_v50 = vld [vmem:[#allocation12 + $0x18] sm:$0xff] }
  0x7a   :  { %1383 = vmatprep.mubr.msk.f32.mxu0 %vm1623_vm0, %v1622_v0  ;;  %622 = vmatpush1.msra.mxu0 %v476_v52  ;;  %v296_v52 = vld [vmem:[#allocation12 + $0x10] sm:$0xff] }
  0x7b   :  { %623 = vmatprep.subr.mxu0 %v465_v54  ;;  %567 = vmatpush1.msra.mxu1 %v378_v20  ;;  %v481_v54 = vld [vmem:[#allocation12 + $0x5d8] sm:$0xff]  ;;  %v442_v20 = vld [vmem:[#allocation12 + $0x4a0] sm:$0xff] }
  0x7c   :  { %624 = vmatpush1.msra.mxu0 %v464_v56  ;;  %v1142_v56 = vld [vmem:[%s1141_s3] sm:$0x1] }
  0x7d   :  { %1384 = vmatmul.mubr.f32.gmra.mxu0 %v147_v22  ;;  %625 = vmatprep.subr.mxu0 %v453_v58  ;;  %v367_v22 = vld [vmem:[#allocation12 + $0x248] sm:$0xff]  ;;  %1143 = vst [vmem:[#allocation3] sm:$0x1] %v1142_v56  ;;  %v348_v56 = vld [vmem:[#allocation12 + $0x1b0] sm:$0xff] }
  0x7e   :  { %1386 = vmatprep.mubr.msk.f32.mxu0 %vm1623_vm0, %v1622_v0  ;;  %626 = vmatpush1.msra.mxu0 %v452_v60 }
  0x7f   :  { %627 = vmatprep.subr.mxu0 %v441_v62  ;;  %568 = vmatprep.subr.mxu1 %v367_v22  ;;  %v431_v22 = vld [vmem:[#allocation12 + $0x448] sm:$0xff] }
  0x80   :  { %628 = vmatpush1.msra.mxu0 %v440_v1 }
  0x81   :  { %1387 = vmatmul.mubr.f32.gmra.mxu0 %v148_v23  ;;  %629 = vmatprep.subr.mxu0 %v429_v3  ;;  %v369_v23 = vld [vmem:[#allocation12 + $0x258] sm:$0xff] }
  0x82   :  { %685 = vmatprep.mubr.f32.mxu0 %v1622_v0  ;;  %630 = vmatpush1.msra.mxu0 %v428_v5 }
  0x83   :  { %631 = vmatprep.subr.mxu0 %v417_v7 }
  0x84   :  { %632 = vmatpush1.msra.mxu0 %v416_v9 }
  0x85   :  { %633 = vmatprep.subr.mxu0 %v405_v11  ;;  %v480_v11 = vld [vmem:[#allocation12 + $0x5d0] sm:$0xff] }
  0x86   :  { %634 = vmatpush1.msra.mxu0 %v404_v13  ;;  %v467_v13 = vld [vmem:[#allocation12 + $0x568] sm:$0xff] }
  0x87   :  { %635 = vmatprep.subr.mxu0 %v393_v15  ;;  %v468_v15 = vld [vmem:[#allocation12 + $0x570] sm:$0xff] }
  0x88   :  { %636 = vmatpush1.msra.mxu0 %v392_v17  ;;  %v456_v17 = vld [vmem:[#allocation12 + $0x510] sm:$0xff] }
  0x89   :  { %637 = vmatprep.subr.mxu0 %v381_v19  ;;  %v445_v19 = vld [vmem:[#allocation12 + $0x4b8] sm:$0xff] }
  0x8a   :  { %638 = vmatpush1.msra.mxu0 %v380_v21  ;;  %v444_v21 = vld [vmem:[#allocation12 + $0x4b0] sm:$0xff] }
  0x8b   :  { %639 = vmatprep.subr.mxu0 %v369_v23  ;;  %v433_v23 = vld [vmem:[#allocation12 + $0x458] sm:$0xff] }
 0x139   :  { %v238_v25 = vpop.f32.mrf.mxu0 }
 0x13a   :  { %v239_v26 = vadd.f32 %v1310_v24, %v238_v25  ;;  %v368_v25 = vld [vmem:[#allocation12 + $0x250] sm:$0xff] }
 0x13b   :  { %v1382_v27 = vpop.f32.mrf.mxu0  ;;  %640 = vmatpush1.msra.mxu0 %v368_v25  ;;  %v432_v25 = vld [vmem:[#allocation12 + $0x450] sm:$0xff] }
 0x13c   :  { %1440 = vtanh.f32 %v239_v26  ;;  %v355_v26 = vld [vmem:[#allocation12 + $0x1e8] sm:$0xff]  ;;  %v357_v27 = vld [vmem:[#allocation12 + $0x1f8] sm:$0xff] }
 0x13d   :  { %v243_v28 = vpop.f32.mrf.mxu0  ;;  %641 = vmatprep.subr.mxu0 %v357_v27  ;;  %v421_v27 = vld [vmem:[#allocation12 + $0x3f8] sm:$0xff] }
 0x13e   :  { %v244_v29 = vadd.f32 %v1310_v24, %v243_v28  ;;  %v354_v28 = vld [vmem:[#allocation12 + $0x1e0] sm:$0xff] }
 0x13f   :  { %v1385_v30 = vpop.f32.mrf.mxu0 }
 0x140   :  { %1442 = vtanh.f32 %v244_v29  ;;  %v356_v29 = vld [vmem:[#allocation12 + $0x1f0] sm:$0xff]  ;;  %v343_v30 = vld [vmem:[#allocation12 + $0x188] sm:$0xff] }
 0x141   :  { %v248_v31 = vpop.f32.mrf.mxu0  ;;  %642 = vmatpush1.msra.mxu0 %v356_v29  ;;  %v420_v29 = vld [vmem:[#allocation12 + $0x3f0] sm:$0xff] }
 0x142   :  { %v249_v32 = vadd.f32 %v1310_v24, %v248_v31  ;;  %v366_v24 = vld [vmem:[#allocation12 + $0x240] sm:$0xff]  ;;  %v345_v31 = vld [vmem:[#allocation12 + $0x198] sm:$0xff] }
 0x143   :  { %v1388_v33 = vpop.f32.mrf.mxu0  ;;  %569 = vmatpush1.msra.mxu1 %v366_v24  ;;  %643 = vmatprep.subr.mxu0 %v345_v31  ;;  %v430_v24 = vld [vmem:[#allocation12 + $0x440] sm:$0xff]  ;;  %v409_v31 = vld [vmem:[#allocation12 + $0x398] sm:$0xff] }
 0x144   :  { %1444 = vtanh.f32 %v249_v32  ;;  %570 = vmatprep.subr.mxu1 %v355_v26  ;;  %v342_v32 = vld [vmem:[#allocation12 + $0x180] sm:$0xff]  ;;  %v344_v33 = vld [vmem:[#allocation12 + $0x190] sm:$0xff]  ;;  %v419_v26 = vld [vmem:[#allocation12 + $0x3e8] sm:$0xff] }
 0x145   :  { %571 = vmatpush1.msra.mxu1 %v354_v28  ;;  %644 = vmatpush1.msra.mxu0 %v344_v33  ;;  %v418_v28 = vld [vmem:[#allocation12 + $0x3e0] sm:$0xff]  ;;  %v408_v33 = vld [vmem:[#allocation12 + $0x390] sm:$0xff] }
 0x146   :  { %572 = vmatprep.subr.mxu1 %v343_v30  ;;  %v407_v30 = vld [vmem:[#allocation12 + $0x388] sm:$0xff] }
 0x147   :  { %573 = vmatpush1.msra.mxu1 %v342_v32  ;;  %v406_v32 = vld [vmem:[#allocation12 + $0x380] sm:$0xff] }
 0x149   :  { %v1441_v34 = vpop.eup %1440 }
 0x14a   :  { %255 = vadd.xlane.f32.xlu0 %v1441_v34 }
 0x14d   :  { %v1443_v35 = vpop.eup %1442 }
 0x14e   :  { %257 = vadd.xlane.f32.xlu0 %v1443_v35 }
 0x151   :  { %v1445_v36 = vpop.eup %1444 }
 0x152   :  { %259 = vadd.xlane.f32.xlu1 %v1445_v36 }
 0x1d3   :  { %v256_v37 = vpop.xlane.xlu0 %255 }
 0x1d4   :  { %v262_v38 = vmul.f32 0.0078125, %v256_v37  ;;  %v332_v37 = vld [vmem:[#allocation12 + $0x130] sm:$0xff] }
 0x1d6   :  { %v1769_v39 = vsub.f32 %v1441_v34, %v262_v38  ;;  %v331_v34 = vld [vmem:[#allocation12 + $0x128] sm:$0xff] }
 0x1d7   :  { %v258_v40 = vpop.xlane.xlu0 %257  ;;  %574 = vmatprep.subr.mxu1 %v331_v34  ;;  %v319_v38 = vld [vmem:[#allocation12 + $0xc8] sm:$0xff] }
 0x1d8   :  { %v263_v41 = vmul.f32 0.0078125, %v258_v40  ;;  %v268_v42 = vmul.f32 %v1769_v39, %v1769_v39  ;;  %v321_v40 = vld [vmem:[#allocation12 + $0xd8] sm:$0xff]  ;;  %v395_v34 = vld [vmem:[#allocation12 + $0x328] sm:$0xff] }
 0x1da   :  { %v1773_v43 = vsub.f32 %v1443_v35, %v263_v41  ;;  %271 = vadd.xlane.f32.xlu1 %v268_v42  ;;  %v333_v35 = vld [vmem:[#allocation12 + $0x138] sm:$0xff]  ;;  %v318_v41 = vld [vmem:[#allocation12 + $0xc0] sm:$0xff]  ;;  %v320_v42 = vld [vmem:[#allocation12 + $0xd0] sm:$0xff] }
 0x1db   :  { %v260_v44 = vpop.xlane.xlu1 %259  ;;  %645 = vmatprep.subr.mxu0 %v333_v35  ;;  %v397_v35 = vld [vmem:[#allocation12 + $0x338] sm:$0xff] }
 0x1dc   :  { %v264_v45 = vmul.f32 0.0078125, %v260_v44  ;;  %v269_v46 = vmul.f32 %v1773_v43, %v1773_v43  ;;  %646 = vmatpush1.msra.mxu0 %v332_v37  ;;  %v307_v44 = vld [vmem:[#allocation12 + $0x68] sm:$0xff]  ;;  %v396_v37 = vld [vmem:[#allocation12 + $0x330] sm:$0xff] }
 0x1dd   :  { %647 = vmatprep.subr.mxu0 %v321_v40  ;;  %v385_v40 = vld [vmem:[#allocation12 + $0x2d8] sm:$0xff] }
 0x1de   :  { %v1777_v47 = vsub.f32 %v1445_v36, %v264_v45  ;;  %273 = vadd.xlane.f32.xlu0 %v269_v46  ;;  %v330_v36 = vld [vmem:[#allocation12 + $0x120] sm:$0xff]  ;;  %v309_v45 = vld [vmem:[#allocation12 + $0x78] sm:$0xff]  ;;  %648 = vmatpush1.msra.mxu0 %v320_v42  ;;  %v384_v42 = vld [vmem:[#allocation12 + $0x2d0] sm:$0xff] }
 0x1df   :  { %575 = vmatpush1.msra.mxu1 %v330_v36  ;;  %v306_v46 = vld [vmem:[#allocation12 + $0x60] sm:$0xff]  ;;  %649 = vmatprep.subr.mxu0 %v309_v45  ;;  %v373_v45 = vld [vmem:[#allocation12 + $0x278] sm:$0xff] }
 0x1e0   :  { %v270_v48 = vmul.f32 %v1777_v47, %v1777_v47  ;;  %576 = vmatprep.subr.mxu1 %v319_v38  ;;  %v394_v36 = vld [vmem:[#allocation12 + $0x320] sm:$0xff]  ;;  %v383_v38 = vld [vmem:[#allocation12 + $0x2c8] sm:$0xff] }
 0x1e1   :  { %577 = vmatpush1.msra.mxu1 %v318_v41  ;;  %v382_v41 = vld [vmem:[#allocation12 + $0x2c0] sm:$0xff] }
 0x1e2   :  { %275 = vadd.xlane.f32.xlu1 %v270_v48  ;;  %v308_v48 = vld [vmem:[#allocation12 + $0x70] sm:$0xff]  ;;  %578 = vmatprep.subr.mxu1 %v307_v44  ;;  %v371_v44 = vld [vmem:[#allocation12 + $0x268] sm:$0xff] }
 0x1e3   :  { %579 = vmatpush1.msra.mxu1 %v306_v46  ;;  %650 = vmatpush1.msra.mxu0 %v308_v48  ;;  %v370_v46 = vld [vmem:[#allocation12 + $0x260] sm:$0xff]  ;;  %v372_v48 = vld [vmem:[#allocation12 + $0x270] sm:$0xff] }
 0x1e4   :  { %580 = vmatprep.subr.mxu1 %v295_v49  ;;  %651 = vmatprep.subr.mxu0 %v297_v50  ;;  %v359_v49 = vld [vmem:[#allocation12 + $0x208] sm:$0xff]  ;;  %v361_v50 = vld [vmem:[#allocation12 + $0x218] sm:$0xff] }
 0x1e5   :  { %581 = vmatpush1.msra.mxu1 %v294_v51  ;;  %652 = vmatpush1.msra.mxu0 %v296_v52  ;;  %v358_v51 = vld [vmem:[#allocation12 + $0x200] sm:$0xff]  ;;  %v360_v52 = vld [vmem:[#allocation12 + $0x210] sm:$0xff] }
 0x1e6   :  { %692 = vmatprep.subr.mxu1 %v479_v53  ;;  %763 = vmatprep.subr.mxu0 %v481_v54  ;;  %v347_v53 = vld [vmem:[#allocation12 + $0x1a8] sm:$0xff]  ;;  %v349_v54 = vld [vmem:[#allocation12 + $0x1b8] sm:$0xff] }
 0x263   :  { %v272_v55 = vpop.xlane.xlu1 %271 }
 0x264   :  { %v277_v58 = vmul.f32 0.0078125, %v272_v55  ;;  %v346_v55 = vld [vmem:[#allocation12 + $0x1a0] sm:$0xff] }
 0x266   :  { %v280_v60 = vadd.f32 1e-06, %v277_v58  ;;  %v337_v58 = vld [vmem:[#allocation12 + $0x158] sm:$0xff] }
 0x267   :  { %v274_v61 = vpop.xlane.xlu0 %273 }
 0x268   :  { %1446 = vrsqrt.f32 %v280_v60  ;;  %v278_v62 = vmul.f32 0.0078125, %v274_v61  ;;  %v336_v60 = vld [vmem:[#allocation12 + $0x150] sm:$0xff]  ;;  %v323_v61 = vld [vmem:[#allocation12 + $0xe8] sm:$0xff] }
 0x26a   :  { %v281_v63 = vadd.f32 1e-06, %v278_v62  ;;  %v325_v62 = vld [vmem:[#allocation12 + $0xf8] sm:$0xff] }
 0x26b   :  { %v276_v1 = vpop.xlane.xlu1 %275 }
 0x26c   :  { %1448 = vrsqrt.f32 %v281_v63  ;;  %v279_v2 = vmul.f32 0.0078125, %v276_v1  ;;  %v322_v63 = vld [vmem:[#allocation12 + $0xe0] sm:$0xff]  ;;  %v324_v1 = vld [vmem:[#allocation12 + $0xf0] sm:$0xff] }
 0x26e   :  { %v282_v3 = vadd.f32 1e-06, %v279_v2  ;;  %v311_v2 = vld [vmem:[#allocation12 + $0x88] sm:$0xff] }
 0x270   :  { %1450 = vrsqrt.f32 %v282_v3  ;;  %v313_v3 = vld [vmem:[#allocation12 + $0x98] sm:$0xff] }
 0x275   :  { %v1447_v4 = vpop.eup %1446 }
 0x276   :  { %v286_v5 = vmul.f32 %v1447_v4, %v1769_v39  ;;  %v466_v39 = vld [vmem:[#allocation12 + $0x560] sm:$0xff] }
 0x277   :  { %v310_v4 = vld [vmem:[#allocation12 + $0x80] sm:$0xff] }
 0x278   :  { %290 = vst [vmem:[#allocation4] sm:$0x1] %v286_v5  ;;  %v312_v5 = vld [vmem:[#allocation12 + $0x90] sm:$0xff] }
 0x279   :  { %v1449_v6 = vpop.eup %1448 }
 0x27a   :  { %v287_v7 = vmul.f32 %v1449_v6, %v1773_v43  ;;  %v455_v43 = vld [vmem:[#allocation12 + $0x508] sm:$0xff] }
 0x27b   :  { %v299_v6 = vld [vmem:[#allocation12 + $0x28] sm:$0xff] }
 0x27c   :  { %291 = vst [vmem:[#allocation4] sm:$0x2] %v287_v7  ;;  %v301_v7 = vld [vmem:[#allocation12 + $0x38] sm:$0xff] }
 0x27d   :  { %v1451_v8 = vpop.eup %1450 }
 0x27e   :  { %v288_v9 = vmul.f32 %v1451_v8, %v1777_v47  ;;  %v454_v47 = vld [vmem:[#allocation12 + $0x500] sm:$0xff] }
 0x27f   :  { %v298_v8 = vld [vmem:[#allocation12 + $0x20] sm:$0xff] }
 0x280   :  { %292 = vst [vmem:[#allocation4] sm:$0x4] %v288_v9  ;;  %v300_v9 = vld [vmem:[#allocation12 + $0x30] sm:$0xff] }
 0x287   :  { %v1787_v12 = vld [vmem:[#allocation4] sm:$0xff] }
 0x288   :  { %615 = vmatmul.mubr.f32.vlgmr.msra.gmra.mxu1 %v1787_v12  ;;  %686 = vmatmul.mubr.f32.vlgmr.msra.gmra.mxu0 %v1787_v12 }
 0x289   :  { %693 = vmatpush1.msra.mxu1 %v478_v10  ;;  %764 = vmatpush1.msra.mxu0 %v480_v11  ;;  %v483_v10 = vld [vmem:[#allocation12 + $0x5e8] sm:$0xff]  ;;  %v485_v11 = vld [vmem:[#allocation12 + $0x5f8] sm:$0xff] }
 0x28a   :  { %694 = vmatprep.subr.mxu1 %v467_v13  ;;  %765 = vmatprep.subr.mxu0 %v469_v14  ;;  %v482_v13 = vld [vmem:[#allocation12 + $0x5e0] sm:$0xff]  ;;  %v484_v14 = vld [vmem:[#allocation12 + $0x5f0] sm:$0xff] }
 0x28b   :  { %695 = vmatpush1.msra.mxu1 %v466_v39  ;;  %766 = vmatpush1.msra.mxu0 %v468_v15  ;;  %v471_v39 = vld [vmem:[#allocation12 + $0x588] sm:$0xff]  ;;  %v473_v15 = vld [vmem:[#allocation12 + $0x598] sm:$0xff] }
 0x28c   :  { %696 = vmatprep.subr.mxu1 %v455_v43  ;;  %767 = vmatprep.subr.mxu0 %v457_v16  ;;  %v470_v43 = vld [vmem:[#allocation12 + $0x580] sm:$0xff]  ;;  %v472_v16 = vld [vmem:[#allocation12 + $0x590] sm:$0xff] }
 0x28d   :  { %697 = vmatpush1.msra.mxu1 %v454_v47  ;;  %768 = vmatpush1.msra.mxu0 %v456_v17  ;;  %v459_v47 = vld [vmem:[#allocation12 + $0x528] sm:$0xff]  ;;  %v461_v17 = vld [vmem:[#allocation12 + $0x538] sm:$0xff] }
 0x28e   :  { %698 = vmatprep.subr.mxu1 %v443_v18  ;;  %769 = vmatprep.subr.mxu0 %v445_v19  ;;  %v458_v18 = vld [vmem:[#allocation12 + $0x520] sm:$0xff]  ;;  %v447_v19 = vld [vmem:[#allocation12 + $0x4c8] sm:$0xff] }
 0x28f   :  { %699 = vmatpush1.msra.mxu1 %v442_v20  ;;  %770 = vmatpush1.msra.mxu0 %v444_v21  ;;  %v449_v20 = vld [vmem:[#allocation12 + $0x4d8] sm:$0xff]  ;;  %v446_v21 = vld [vmem:[#allocation12 + $0x4c0] sm:$0xff] }
 0x290   :  { %700 = vmatprep.subr.mxu1 %v431_v22  ;;  %771 = vmatprep.subr.mxu0 %v433_v23  ;;  %v448_v22 = vld [vmem:[#allocation12 + $0x4d0] sm:$0xff]  ;;  %v435_v23 = vld [vmem:[#allocation12 + $0x468] sm:$0xff] }
 0x291   :  { %701 = vmatpush1.msra.mxu1 %v430_v24  ;;  %772 = vmatpush1.msra.mxu0 %v432_v25  ;;  %v437_v24 = vld [vmem:[#allocation12 + $0x478] sm:$0xff]  ;;  %v434_v25 = vld [vmem:[#allocation12 + $0x460] sm:$0xff] }
 0x292   :  { %702 = vmatprep.subr.mxu1 %v419_v26  ;;  %773 = vmatprep.subr.mxu0 %v421_v27  ;;  %v436_v26 = vld [vmem:[#allocation12 + $0x470] sm:$0xff]  ;;  %v423_v27 = vld [vmem:[#allocation12 + $0x408] sm:$0xff] }
 0x293   :  { %703 = vmatpush1.msra.mxu1 %v418_v28  ;;  %774 = vmatpush1.msra.mxu0 %v420_v29  ;;  %v425_v28 = vld [vmem:[#allocation12 + $0x418] sm:$0xff]  ;;  %v422_v29 = vld [vmem:[#allocation12 + $0x400] sm:$0xff] }
 0x294   :  { %704 = vmatprep.subr.mxu1 %v407_v30  ;;  %775 = vmatprep.subr.mxu0 %v409_v31  ;;  %v424_v30 = vld [vmem:[#allocation12 + $0x410] sm:$0xff]  ;;  %v411_v31 = vld [vmem:[#allocation12 + $0x3a8] sm:$0xff] }
 0x295   :  { %705 = vmatpush1.msra.mxu1 %v406_v32  ;;  %776 = vmatpush1.msra.mxu0 %v408_v33  ;;  %v413_v32 = vld [vmem:[#allocation12 + $0x3b8] sm:$0xff]  ;;  %v410_v33 = vld [vmem:[#allocation12 + $0x3a0] sm:$0xff] }
 0x296   :  { %706 = vmatprep.subr.mxu1 %v395_v34  ;;  %777 = vmatprep.subr.mxu0 %v397_v35  ;;  %v412_v34 = vld [vmem:[#allocation12 + $0x3b0] sm:$0xff]  ;;  %v399_v35 = vld [vmem:[#allocation12 + $0x348] sm:$0xff] }
 0x297   :  { %707 = vmatpush1.msra.mxu1 %v394_v36  ;;  %778 = vmatpush1.msra.mxu0 %v396_v37  ;;  %v401_v36 = vld [vmem:[#allocation12 + $0x358] sm:$0xff]  ;;  %v398_v37 = vld [vmem:[#allocation12 + $0x340] sm:$0xff] }
 0x298   :  { %708 = vmatprep.subr.mxu1 %v383_v38  ;;  %779 = vmatprep.subr.mxu0 %v385_v40  ;;  %v400_v38 = vld [vmem:[#allocation12 + $0x350] sm:$0xff]  ;;  %v387_v40 = vld [vmem:[#allocation12 + $0x2e8] sm:$0xff] }
 0x299   :  { %709 = vmatpush1.msra.mxu1 %v382_v41  ;;  %780 = vmatpush1.msra.mxu0 %v384_v42  ;;  %v389_v41 = vld [vmem:[#allocation12 + $0x2f8] sm:$0xff]  ;;  %v386_v42 = vld [vmem:[#allocation12 + $0x2e0] sm:$0xff] }
 0x29a   :  { %710 = vmatprep.subr.mxu1 %v371_v44  ;;  %781 = vmatprep.subr.mxu0 %v373_v45  ;;  %v388_v44 = vld [vmem:[#allocation12 + $0x2f0] sm:$0xff]  ;;  %v375_v45 = vld [vmem:[#allocation12 + $0x288] sm:$0xff] }
 0x29b   :  { %711 = vmatpush1.msra.mxu1 %v370_v46  ;;  %782 = vmatpush1.msra.mxu0 %v372_v48  ;;  %v377_v46 = vld [vmem:[#allocation12 + $0x298] sm:$0xff]  ;;  %v374_v48 = vld [vmem:[#allocation12 + $0x280] sm:$0xff] }
 0x29c   :  { %712 = vmatprep.subr.mxu1 %v359_v49  ;;  %783 = vmatprep.subr.mxu0 %v361_v50  ;;  %v376_v49 = vld [vmem:[#allocation12 + $0x290] sm:$0xff]  ;;  %v363_v50 = vld [vmem:[#allocation12 + $0x228] sm:$0xff] }
 0x29d   :  { %713 = vmatpush1.msra.mxu1 %v358_v51  ;;  %784 = vmatpush1.msra.mxu0 %v360_v52  ;;  %v365_v51 = vld [vmem:[#allocation12 + $0x238] sm:$0xff]  ;;  %v362_v52 = vld [vmem:[#allocation12 + $0x220] sm:$0xff] }
 0x29e   :  { %714 = vmatprep.subr.mxu1 %v347_v53  ;;  %785 = vmatprep.subr.mxu0 %v349_v54  ;;  %v364_v53 = vld [vmem:[#allocation12 + $0x230] sm:$0xff]  ;;  %v351_v54 = vld [vmem:[#allocation12 + $0x1c8] sm:$0xff] }
 0x29f   :  { %715 = vmatpush1.msra.mxu1 %v346_v55  ;;  %786 = vmatpush1.msra.mxu0 %v348_v56  ;;  %v353_v55 = vld [vmem:[#allocation12 + $0x1d8] sm:$0xff]  ;;  %v350_v56 = vld [vmem:[#allocation12 + $0x1c0] sm:$0xff] }
 0x2a0   :  { %716 = vmatprep.subr.mxu1 %v335_v57  ;;  %787 = vmatprep.subr.mxu0 %v337_v58  ;;  %v352_v57 = vld [vmem:[#allocation12 + $0x1d0] sm:$0xff]  ;;  %v339_v58 = vld [vmem:[#allocation12 + $0x168] sm:$0xff] }
 0x2a1   :  { %717 = vmatpush1.msra.mxu1 %v334_v59  ;;  %788 = vmatpush1.msra.mxu0 %v336_v60  ;;  %v341_v59 = vld [vmem:[#allocation12 + $0x178] sm:$0xff]  ;;  %v338_v60 = vld [vmem:[#allocation12 + $0x160] sm:$0xff] }
 0x2a2   :  { %718 = vmatprep.subr.mxu1 %v323_v61  ;;  %789 = vmatprep.subr.mxu0 %v325_v62  ;;  %v340_v61 = vld [vmem:[#allocation12 + $0x170] sm:$0xff]  ;;  %v327_v62 = vld [vmem:[#allocation12 + $0x108] sm:$0xff] }
 0x2a3   :  { %719 = vmatpush1.msra.mxu1 %v322_v63  ;;  %790 = vmatpush1.msra.mxu0 %v324_v1  ;;  %v329_v63 = vld [vmem:[#allocation12 + $0x118] sm:$0xff]  ;;  %v326_v1 = vld [vmem:[#allocation12 + $0x100] sm:$0xff] }
 0x2a4   :  { %720 = vmatprep.subr.mxu1 %v311_v2  ;;  %791 = vmatprep.subr.mxu0 %v313_v3  ;;  %v328_v2 = vld [vmem:[#allocation12 + $0x110] sm:$0xff]  ;;  %v315_v3 = vld [vmem:[#allocation12 + $0xa8] sm:$0xff] }
 0x2a5   :  { %721 = vmatpush1.msra.mxu1 %v310_v4  ;;  %792 = vmatpush1.msra.mxu0 %v312_v5  ;;  %v317_v4 = vld [vmem:[#allocation12 + $0xb8] sm:$0xff]  ;;  %v314_v5 = vld [vmem:[#allocation12 + $0xa0] sm:$0xff] }
 0x2a6   :  { %722 = vmatprep.subr.mxu1 %v299_v6  ;;  %793 = vmatprep.subr.mxu0 %v301_v7  ;;  %v316_v6 = vld [vmem:[#allocation12 + $0xb0] sm:$0xff]  ;;  %v303_v7 = vld [vmem:[#allocation12 + $0x48] sm:$0xff] }
 0x2a7   :  { %723 = vmatpush1.msra.mxu1 %v298_v8  ;;  %756 = vmatprep.mubr.f32.mxu1 %v1622_v0  ;;  %v305_v8 = vld [vmem:[#allocation12 + $0x58] sm:$0xff] }
 0x2a8   :  { %794 = vmatpush1.msra.mxu0 %v300_v9  ;;  %827 = vmatprep.mubr.f32.mxu0 %v1622_v0  ;;  %v460_v0 = vld [vmem:[#allocation12 + $0x530] sm:$0xff]  ;;  %v302_v9 = vld [vmem:[#allocation12 + $0x40] sm:$0xff] }
 0x2a9   :  { %757 = vmatmul.mubr.f32.vlgmr.msra.gmra.mxu1 %v1787_v12  ;;  %828 = vmatmul.mubr.f32.vlgmr.msra.gmra.mxu0 %v1787_v12 }
 0x2aa   :  { %834 = vmatprep.subr.mxu1 %v483_v10  ;;  %905 = vmatprep.subr.mxu0 %v485_v11  ;;  %v304_v10 = vld [vmem:[#allocation12 + $0x50] sm:$0xff]  ;;  %v1468_v11 = vld [vmem:[#allocation5] sm:$0xff] }
 0x2ab   :  { %835 = vmatpush1.msra.mxu1 %v482_v13  ;;  %906 = vmatpush1.msra.mxu0 %v484_v14  ;;  %v1166_v13 = vld [vmem:[#allocation15 + $0x78] sm:$0xff]  ;;  %v1165_v14 = vld [vmem:[#allocation15 + $0x70] sm:$0xff] }
 0x2ac   :  { %836 = vmatprep.subr.mxu1 %v471_v39  ;;  %907 = vmatprep.subr.mxu0 %v473_v15  ;;  %v1164_v39 = vld [vmem:[#allocation15 + $0x68] sm:$0xff]  ;;  %v1163_v15 = vld [vmem:[#allocation15 + $0x60] sm:$0xff] }
 0x2ad   :  { %837 = vmatpush1.msra.mxu1 %v470_v43  ;;  %908 = vmatpush1.msra.mxu0 %v472_v16  ;;  %v1162_v43 = vld [vmem:[#allocation15 + $0x58] sm:$0xff]  ;;  %v1161_v16 = vld [vmem:[#allocation15 + $0x50] sm:$0xff] }
 0x2ae   :  { %838 = vmatprep.subr.mxu1 %v459_v47  ;;  %909 = vmatprep.subr.mxu0 %v461_v17  ;;  %v1160_v47 = vld [vmem:[#allocation15 + $0x48] sm:$0xff]  ;;  %v1158_v17 = vld [vmem:[#allocation15 + $0x38] sm:$0xff] }
 0x2af   :  { %839 = vmatpush1.msra.mxu1 %v458_v18  ;;  %910 = vmatpush1.msra.mxu0 %v460_v0  ;;  %v1157_v18 = vld [vmem:[#allocation15 + $0x30] sm:$0xff]  ;;  %v1156_v0 = vld [vmem:[#allocation15 + $0x28] sm:$0xff] }
 0x2b0   :  { %840 = vmatprep.subr.mxu1 %v447_v19  ;;  %911 = vmatprep.subr.mxu0 %v449_v20  ;;  %v1155_v19 = vld [vmem:[#allocation15 + $0x20] sm:$0xff]  ;;  %v1154_v20 = vld [vmem:[#allocation15 + $0x18] sm:$0xff] }
 0x2b1   :  { %841 = vmatpush1.msra.mxu1 %v446_v21  ;;  %912 = vmatpush1.msra.mxu0 %v448_v22  ;;  %v1153_v21 = vld [vmem:[#allocation15 + $0x10] sm:$0xff]  ;;  %v1152_v22 = vld [vmem:[#allocation15 + $0x8] sm:$0xff] }
 0x2b2   :  { %842 = vmatprep.subr.mxu1 %v435_v23  ;;  %913 = vmatprep.subr.mxu0 %v437_v24  ;;  %v1151_v23 = vld [vmem:[#allocation15] sm:$0xff]  ;;  %v1150_v24 = vld [vmem:[#allocation3] sm:$0xff] }
 0x2b3   :  { %843 = vmatpush1.msra.mxu1 %v434_v25  ;;  %914 = vmatpush1.msra.mxu0 %v436_v26  ;;  %v490_v25 = vlaneseq }
 0x2b4   :  { %844 = vmatprep.subr.mxu1 %v423_v27  ;;  %915 = vmatprep.subr.mxu0 %v425_v28  ;;  %v1624_v27 = vmov 1966171168  }
 0x2b5   :  { %845 = vmatpush1.msra.mxu1 %v422_v29  ;;  %916 = vmatpush1.msra.mxu0 %v424_v30  ;;  %v1799_v26 = vshrl.u32 %v490_v25, 7  ;;  %v987_v28 = vunpack.c.l.s4 %v1624_v27  ;;  %vm1810_vm1 = vcmp.lt.s32.totalorder %v490_v25, 512 }
 0x2b6   :  { %846 = vmatprep.subr.mxu1 %v411_v31  ;;  %917 = vmatprep.subr.mxu0 %v413_v32 }
 0x2b7   :  { %847 = vmatpush1.msra.mxu1 %v410_v33  ;;  %918 = vmatpush1.msra.mxu0 %v412_v34  ;;  %v492_v29 = vsub.s32 0, %v1799_v26  ;;  %v500_v30 = vsub.s32 2, %v1799_v26  ;;  %v496_v31 = vsub.s32 1, %v1799_v26  ;;  %v504_v32 = vsub.s32 3, %v1799_v26  ;;  %v486_v33 = vld [vmem:[%s1863_s5] sm:$0xff] }
 0x2b8   :  { %848 = vmatprep.subr.mxu1 %v399_v35  ;;  %919 = vmatprep.subr.mxu0 %v401_v36  ;;  %v988_v34 = vunpack.c.0.s8 %v987_v28  ;;  %vm1115_vm2 = vcmp.eq.s32.totalorder %v1799_v26, 2  ;;  %vm1114_vm3 = vcmp.eq.s32.totalorder %v1799_v26, 1  ;;  %vm1113_vm4 = vcmp.eq.s32.totalorder %v1799_v26, 0 }
 0x2b9   :  { %849 = vmatpush1.msra.mxu1 %v398_v37  ;;  %920 = vmatpush1.msra.mxu0 %v400_v38  ;;  %v493_v35 = vrot.slane %v486_v33, %v492_v29  ;;  %v501_v36 = vrot.slane %v486_v33, %v500_v30  ;;  %v497_v37 = vrot.slane %v486_v33, %v496_v31  ;;  %vm1265_vm9 = vcmp.lt.s32.totalorder %v1799_v26, 3 }
 0x2ba   :  { %850 = vmatprep.subr.mxu1 %v387_v40  ;;  %921 = vmatprep.subr.mxu0 %v389_v41  ;;  %v505_v38 = vrot.slane %v486_v33, %v504_v32 }
 0x2bb   :  { %851 = vmatpush1.msra.mxu1 %v386_v42  ;;  %922 = vmatpush1.msra.mxu0 %v388_v44  ;;  %v991_v44 = vsub.s32 %v988_v34, %v1799_v26 }
 0x2bc   :  { %852 = vmatprep.subr.mxu1 %v375_v45  ;;  %923 = vmatprep.subr.mxu0 %v377_v46 }
 0x2bd   :  { %853 = vmatpush1.msra.mxu1 %v374_v48  ;;  %924 = vmatpush1.msra.mxu0 %v376_v49 }
 0x2be   :  { %854 = vmatprep.subr.mxu1 %v363_v50  ;;  %925 = vmatprep.subr.mxu0 %v365_v51 }
 0x2bf   :  { %855 = vmatpush1.msra.mxu1 %v362_v52  ;;  %926 = vmatpush1.msra.mxu0 %v364_v53 }
 0x2c0   :  { %856 = vmatprep.subr.mxu1 %v351_v54  ;;  %927 = vmatprep.subr.mxu0 %v353_v55 }
 0x2c1   :  { %857 = vmatpush1.msra.mxu1 %v350_v56  ;;  %928 = vmatpush1.msra.mxu0 %v352_v57 }
 0x2c2   :  { %858 = vmatprep.subr.mxu1 %v339_v58  ;;  %929 = vmatprep.subr.mxu0 %v341_v59  ;;  %v508_v58 = vsub.s32 4, %v1799_v26  ;;  %v516_v59 = vsub.s32 6, %v1799_v26 }
 0x2c3   :  { %859 = vmatpush1.msra.mxu1 %v338_v60  ;;  %930 = vmatpush1.msra.mxu0 %v340_v61  ;;  %v512_v60 = vsub.s32 5, %v1799_v26  ;;  %v520_v61 = vsub.s32 7, %v1799_v26 }
 0x2c4   :  { %860 = vmatprep.subr.mxu1 %v327_v62  ;;  %931 = vmatprep.subr.mxu0 %v329_v63  ;;  %v509_v62 = vrot.slane %v486_v33, %v508_v58  ;;  %v517_v63 = vrot.slane %v486_v33, %v516_v59 }
 0x2c5   :  { %861 = vmatpush1.msra.mxu1 %v326_v1  ;;  %932 = vmatpush1.msra.mxu0 %v328_v2  ;;  %v513_v1 = vrot.slane %v486_v33, %v512_v60  ;;  %v521_v2 = vrot.slane %v486_v33, %v520_v61 }
 0x2c6   :  { %862 = vmatprep.subr.mxu1 %v315_v3  ;;  %933 = vmatprep.subr.mxu0 %v317_v4 }
 0x2c7   :  { %863 = vmatpush1.msra.mxu1 %v314_v5  ;;  %934 = vmatpush1.msra.mxu0 %v316_v6 }
 0x2c8   :  { %864 = vmatprep.subr.mxu1 %v303_v7  ;;  %935 = vmatprep.subr.mxu0 %v305_v8 }
 0x2c9   :  { %865 = vmatpush1.msra.mxu1 %v302_v9  ;;  %898 = vmatprep.mubr.f32.mxu1 %v1468_v11 }
 0x2ca   :  { %936 = vmatpush1.msra.mxu0 %v304_v10  ;;  %969 = vmatprep.mubr.f32.mxu0 %v1468_v11 }
 0x2cb   :  { %899 = vmatmul.mubr.f32.vlgmr.msra.gmra.mxu1 %v1787_v12  ;;  %970 = vmatmul.mubr.f32.vlgmr.msra.gmra.mxu0 %v1787_v12  ;;  %v1159_v12 = vld [vmem:[#allocation15 + $0x40] sm:$0xff] }
 0x2cc   :  { %1389 = vmatprep.subr.mxu1 %v1468_v11  ;;  %1421 = vmatprep.mubr.msk.f32.mxu1 %vm1623_vm0, %v1468_v11 }
 0x2cd   :  { %1390 = vmatpush3.msra.mxu1 %v1166_v13 }
 0x2ce   :  { %1391 = vmatprep.subr.mxu1 %v1468_v11 }
 0x2cf   :  { %1392 = vmatpush3.msra.mxu1 %v1165_v14 }
 0x2d0   :  { %1393 = vmatprep.subr.mxu1 %v1468_v11 }
 0x2d1   :  { %1394 = vmatpush3.msra.mxu1 %v1164_v39 }
 0x2d2   :  { %1395 = vmatprep.subr.mxu1 %v1468_v11 }
 0x2d3   :  { %1396 = vmatpush3.msra.mxu1 %v1163_v15 }
 0x2d4   :  { %1397 = vmatprep.subr.mxu1 %v1468_v11 }
 0x2d5   :  { %1398 = vmatpush3.msra.mxu1 %v1162_v43 }
 0x2d6   :  { %1399 = vmatprep.subr.mxu1 %v1468_v11 }
 0x2d7   :  { %1400 = vmatpush3.msra.mxu1 %v1161_v16  ;;  %v487_v16 = vld [vmem:[%s1863_s5 + $0x8] sm:$0xf] }
 0x2d8   :  { %1401 = vmatprep.subr.mxu1 %v1468_v11 }
 0x2d9   :  { %1402 = vmatpush3.msra.mxu1 %v1160_v47  ;;  %v525_v47 = vrot.slane %v487_v16, %v492_v29 }
 0x2da   :  { %1403 = vmatprep.subr.mxu1 %v1468_v11 }
 0x2db   :  { %1404 = vmatpush3.msra.mxu1 %v1159_v12  ;;  %v533_v12 = vrot.slane %v487_v16, %v500_v30 }
 0x2dc   :  { %1405 = vmatprep.subr.mxu1 %v1468_v11 }
 0x2dd   :  { %1406 = vmatpush3.msra.mxu1 %v1158_v17  ;;  %v529_v17 = vrot.slane %v487_v16, %v496_v31 }
 0x2de   :  { %1407 = vmatprep.subr.mxu1 %v1468_v11 }
 0x2df   :  { %1408 = vmatpush3.msra.mxu1 %v1157_v18  ;;  %v537_v18 = vrot.slane %v487_v16, %v504_v32 }
 0x2e0   :  { %1409 = vmatprep.subr.mxu1 %v1468_v11 }
 0x2e1   :  { %1410 = vmatpush3.msra.mxu1 %v1156_v0 }
 0x2e2   :  { %1411 = vmatprep.subr.mxu1 %v1468_v11 }
 0x2e3   :  { %1412 = vmatpush3.msra.mxu1 %v1155_v19 }
 0x2e4   :  { %1413 = vmatprep.subr.mxu1 %v1468_v11 }
 0x2e5   :  { %1414 = vmatpush3.msra.mxu1 %v1154_v20 }
 0x2e6   :  { %1415 = vmatprep.subr.mxu1 %v1468_v11 }
 0x2e7   :  { %1416 = vmatpush3.msra.mxu1 %v1153_v21 }
 0x2e8   :  { %1417 = vmatprep.subr.mxu1 %v1468_v11 }
 0x2e9   :  { %1418 = vmatpush3.msra.mxu1 %v1152_v22 }
 0x2ea   :  { %1419 = vmatprep.subr.mxu1 %v1468_v11 }
 0x2eb   :  { %1420 = vmatpush3.msra.mxu1 %v1151_v23 }
 0x2ec   :  { %1422 = vmatmul.mubr.f32.vlgmr.msra.gmra.mxu1 %v1150_v24 }
 0x348   :  { %v616_v40 = vpop.f32.mrf.mxu1  ;;  %v687_v41 = vpop.f32.mrf.mxu0 }
 0x349   :  { %v617_v46 = vadd.f32 %v616_v40, %v493_v35  ;;  %v688_v48 = vadd.f32 %v687_v41, %v501_v36 }
 0x34a   :  { %v618_v42 = vpop.f32.mrf.mxu1  ;;  %v689_v45 = vpop.f32.mrf.mxu0 }
 0x34b   :  { %v619_v49 = vadd.f32 %v618_v42, %v497_v37  ;;  %v690_v50 = vadd.f32 %v689_v45, %v505_v38  ;;  %v1311_v45 = vld [vmem:[#allocation16] ss:$0 sm:$0xff] }
 0x34d   :  { %v984_v51 = vcombine.low %v617_v46, %v619_v49  ;;  %v985_v52 = vcombine.low %v688_v48, %v690_v50 }
 0x34f   :  { %v992_v53 = vrot.slane %v984_v51, %v991_v44  ;;  %v999_v54 = vrot.slane %v985_v52, %v991_v44 }
 0x351   :  { %v1000_v55 = vcombine.low %v992_v53, %v999_v54 }
 0x353   :  { %v1007_v57 = vrot.slane %v1000_v55, %v991_v44 }
 0x355   :  { %1013 = vst.msk [vmem:[#allocation5] ss:$8 sm:$0xf] %vm1810_vm1, %v1007_v57 }
 0x369   :  { %v758_v3 = vpop.f32.mrf.mxu1  ;;  %v829_v4 = vpop.f32.mrf.mxu0 }
 0x36a   :  { %v759_v7 = vadd.f32 %v758_v3, %v509_v62  ;;  %v830_v8 = vadd.f32 %v829_v4, %v517_v63 }
 0x36b   :  { %v760_v5 = vpop.f32.mrf.mxu1  ;;  %v831_v6 = vpop.f32.mrf.mxu0 }
 0x36c   :  { %v761_v9 = vadd.f32 %v760_v5, %v513_v1  ;;  %v832_v10 = vadd.f32 %v831_v6, %v521_v2 }
 0x36e   :  { %v1019_v11 = vcombine.low %v759_v7, %v761_v9  ;;  %v1020_v13 = vcombine.low %v830_v8, %v832_v10  ;;  %v1116_v8 = vstv %s1738_s8 }
 0x370   :  { %v1027_v14 = vrot.slane %v1019_v11, %v991_v44  ;;  %v1034_v39 = vrot.slane %v1020_v13, %v991_v44  ;;  %v1117_v11 = vsel %vm1115_vm2, %v1116_v8, 4294967295  ;;  %v1118_v13 = vstv %s1736_s7 }
 0x372   :  { %v1035_v15 = vcombine.high %v1027_v14, %v1034_v39  ;;  %v1123_v39 = vand.u32 127, %v490_v25 }
 0x374   :  { %v1042_v43 = vrot.slane %v1035_v15, %v991_v44  ;;  %v1119_v15 = vsel %vm1114_vm3, %v1118_v13, %v1117_v11  ;;  %v1124_v16 = vadd.s32 128, %v1123_v39  ;;  %vm1266_vm11 = vcmp.eq.s32.totalorder %v1123_v39, %v1799_v26 }
 0x375   :  { %vm1267_vm13 = vmand %vm1265_vm9, %vm1266_vm11 }
 0x376   :  { %1045 = vst.msk [vmem:[#allocation5 + $0x1] ss:$8 sm:$0xf] %vm1810_vm1, %v1042_v43  ;;  %v1120_v43 = vstv %s1741_s30 }
 0x38b   :  { %v900_v0 = vpop.f32.mrf.mxu1  ;;  %v971_v19 = vpop.f32.mrf.mxu0 }
 0x38c   :  { %v901_v22 = vadd.f32 %v900_v0, %v525_v47  ;;  %v972_v23 = vadd.f32 %v971_v19, %v533_v12  ;;  %v1121_v47 = vsel %vm1113_vm4, %v1120_v43, %v1119_v15  ;;  %v1125_v12 = vadd.s32 256, %v1123_v39 }
 0x38d   :  { %v902_v20 = vpop.f32.mrf.mxu1  ;;  %v973_v21 = vpop.f32.mrf.mxu0  ;;  %vm1127_vm5 = vcmp.eq.s32.totalorder %v1123_v39, %v1121_v47  ;;  %vm1128_vm6 = vcmp.eq.s32.totalorder %v1124_v16, %v1121_v47 }
 0x38e   :  { %v903_v24 = vadd.f32 %v902_v20, %v529_v17  ;;  %v974_v27 = vadd.f32 %v973_v21, %v537_v18  ;;  %v1126_v18 = vadd.s32 384, %v1123_v39  ;;  %vm1129_vm7 = vcmp.eq.s32.totalorder %v1125_v12, %v1121_v47 }
 0x390   :  { %v1051_v28 = vcombine.low %v901_v22, %v903_v24  ;;  %v1052_v33 = vcombine.low %v972_v23, %v974_v27  ;;  %vm1130_vm8 = vcmp.eq.s32.totalorder %v1126_v18, %v1121_v47 }
 0x392   :  { %v1059_v34 = vrot.slane %v1051_v28, %v991_v44  ;;  %v1066_v35 = vrot.slane %v1052_v33, %v991_v44 }
 0x394   :  { %v1067_v36 = vcombine.low %v1059_v34, %v1066_v35  ;;  %v1256_v34 = vld [vmem:[%s1867_s9] sm:$0xff] }
 0x396   :  { %v1074_v37 = vrot.slane %v1067_v36, %v991_v44 }
 0x398   :  { %v1075_v38 = vcombine.high %v1074_v37, %v1074_v37 }
 0x39a   :  { %1078 = vst.msk [vmem:[#allocation5 + $0x2] ss:$8 sm:$0xf] %vm1810_vm1, %v1075_v38  ;;  %v1625_v38 = vmov 0  }
 0x39b   :  { %1439 = vset.pattern.permute.xlu0 %v1625_v38 }
 0x3a1   :  { %v1080_v29 = vld [vmem:[#allocation5] sm:$0xff]  ;;  %v1081_v30 = vld [vmem:[#allocation5 + $0x8] sm:$0xff]  ;;  %v1082_v31 = vld [vmem:[#allocation5 + $0x10] sm:$0xff] }
 0x3a2   :  { %v1083_v32 = vld [vmem:[#allocation5 + $0x18] sm:$0xff]  ;;  %v1084_v40 = vmax.f32 %v1080_v29, %v1081_v30 }
 0x3a3   :  { %v1085_v41 = vmax.f32 %v1082_v31, %v1083_v32 }
 0x3a5   :  { %v1086_v42 = vmax.f32 %v1084_v40, %v1085_v41 }
 0x3a7   :  { %1087 = vmax.xlane.f32.xlu1 %v1086_v42  ;;  %v1274_v42 = vadd.s32 3, %v1799_v26 }
 0x3a9   :  { %vm1275_vm10 = vcmp.eq.s32.totalorder %v1123_v39, %v1274_v42 }
 0x3aa   :  { %vm1276_vm12 = vmand %vm1265_vm9, %vm1275_vm10 }
 0x3ac   :  { %v1240_v46 = vpop.f32.mrf.mxu1 }
 0x3ad   :  { %v1241_v48 = vadd.f32 %v1311_v45, %v1240_v46 }
 0x3ae   :  { %v1423_v49 = vpop.f32.mrf.mxu1 }
 0x3af   :  { %1452 = vtanh.f32 %v1241_v48 }
 0x3bc   :  { %v1453_v50 = vpop.eup %1452 }
 0x3bd   :  { %1245 = vadd.xlane.f32.xlu0 %v1453_v50 }
 0x430   :  { %v1088_v44 = vpop.xlane.xlu1 %1087 }
 0x431   :  { %v1089_v51 = vsub.f32 %v1080_v29, %v1088_v44  ;;  %v1090_v52 = vsub.f32 %v1081_v30, %v1088_v44  ;;  %v1091_v53 = vsub.f32 %v1082_v31, %v1088_v44  ;;  %v1092_v54 = vsub.f32 %v1083_v32, %v1088_v44  ;;  %v1260_v29 = vld [vmem:[%s1868_s10] sm:$0xff] }
 0x433   :  { %v1093_v55 = vmul.f32 1.442695, %v1089_v51  ;;  %v1095_v56 = vmul.f32 1.442695, %v1090_v52  ;;  %v1097_v57 = vmul.f32 1.442695, %v1091_v53 }
 0x434   :  { %v1099_v58 = vmul.f32 1.442695, %v1092_v54 }
 0x435   :  { %1454 = vpow2.f32 %v1093_v55 }
 0x436   :  { %1456 = vpow2.f32 %v1095_v56 }
 0x437   :  { %1458 = vpow2.f32 %v1097_v57 }
 0x438   :  { %1460 = vpow2.f32 %v1099_v58 }
 0x442   :  { %v1455_v59 = vpop.eup %1454 }
 0x443   :  { %v1457_v60 = vpop.eup %1456 }
 0x444   :  { %v1101_v61 = vadd.f32 %v1457_v60, %v1455_v59  ;;  %v1459_v62 = vpop.eup %1458 }
 0x445   :  { %v1461_v2 = vpop.eup %1460 }
 0x446   :  { %v1246_v63 = vpop.xlane.xlu0 %1245  ;;  %v1102_v1 = vadd.f32 %v1459_v62, %v1101_v61 }
 0x447   :  { %v1247_v3 = vmul.f32 0.0078125, %v1246_v63 }
 0x448   :  { %v1103_v4 = vadd.f32 %v1461_v2, %v1102_v1 }
 0x449   :  { %v1248_v5 = vsub.f32 %v1453_v50, %v1247_v3 }
 0x44a   :  { %1104 = vadd.xlane.f32.xlu1 %v1103_v4 }
 0x44b   :  { %v1249_v6 = vmul.f32 %v1248_v5, %v1248_v5 }
 0x44d   :  { %1250 = vadd.xlane.f32.xlu0 %v1249_v6 }
 0x4d3   :  { %v1105_v7 = vpop.xlane.xlu1 %1104 }
 0x4d4   :  { %1462 = vrcp.f32 %v1105_v7 }
 0x4d6   :  { %v1251_v9 = vpop.xlane.xlu0 %1250 }
 0x4d7   :  { %v1252_v10 = vmul.f32 0.0078125, %v1251_v9 }
 0x4d9   :  { %v1253_v14 = vadd.f32 1e-06, %v1252_v10 }
 0x4db   :  { %1464 = vrsqrt.f32 %v1253_v14 }
 0x4e1   :  { %v1463_v17 = vpop.eup %1462 }
 0x4e2   :  { %v1107_v0 = vmul.f32 %v1463_v17, %v1455_v59  ;;  %v1108_v19 = vmul.f32 %v1463_v17, %v1457_v60  ;;  %v1109_v20 = vmul.f32 %v1463_v17, %v1459_v62  ;;  %v1110_v21 = vmul.f32 %v1463_v17, %v1461_v2 }
 0x4e4   :  { %v1131_v22 = vsel %vm1127_vm5, %v1107_v0, 0.0  ;;  %v1132_v23 = vsel %vm1128_vm6, %v1108_v19, 0.0  ;;  %1285 = vst [vmem:[%s1869_s11] sm:$0xff] %v1107_v0  ;;  %1286 = vst [vmem:[%s1869_s11 + $0x8] sm:$0xff] %v1108_v19  ;;  %v1133_v24 = vsel %vm1129_vm7, %v1109_v20, 0.0  ;;  %v1134_v33 = vsel %vm1130_vm8, %v1110_v21, 0.0 }
 0x4e5   :  { %1287 = vst [vmem:[%s1869_s11 + $0x10] sm:$0xff] %v1109_v20  ;;  %1288 = vst [vmem:[%s1869_s11 + $0x18] sm:$0xff] %v1110_v21  ;;  %v1135_v25 = vadd.f32 %v1132_v23, %v1131_v22 }
 0x4e7   :  { %v1136_v27 = vadd.f32 %v1135_v25, %v1133_v24 }
 0x4e8   :  { %v1465_v28 = vpop.eup %1464 }
 0x4e9   :  { %v1137_v35 = vadd.f32 %v1136_v27, %v1134_v33  ;;  %v1255_v36 = vmul.f32 %v1465_v28, %v1248_v5 }
 0x4eb   :  { %1138 = vadd.xlane.f32.xlu1 %v1137_v35  ;;  %v1257_v37 = vmul.f32 %v1256_v34, %v1255_v36 }
 0x4ed   :  { %1258 = vadd.xlane.f32.xlu0 %v1257_v37 }
 0x574   :  { %v1139_v45 = vpop.xlane.xlu1 %1138 }
 0x575   :  { %v1277_v48 = vsel %vm1276_vm12, %v1139_v45, 0.0 }
 0x576   :  { %v1259_v30 = vpop.xlane.xlu0 %1258 }
 0x577   :  { %v1261_v31 = vadd.f32 %v1260_v29, %v1259_v30 }
 0x579   :  { %v1262_v32 = vsub.f32 0.0, %v1261_v31 }
 0x57b   :  { %v1263_v40 = vmul.f32 1.442695, %v1262_v32 }
 0x57d   :  { %1466 = vpow2.f32 %v1263_v40 }
 0x58a   :  { %v1467_v41 = vpop.eup %1466 }
 0x58b   :  { %1270 = vperm.xlu0 %1439, %v1467_v41  }
 0x606   :  { %v1271_v46 = vpop.permute.xlu0 %1270 }
 0x607   :  { %v1273_v49 = vsel %vm1267_vm13, %v1271_v46, 0.0 }
 0x608   :  { %v1278_v50 = vadd.f32 %v1277_v48, %v1273_v49 }
 0x60a   :  { %v1279_v44 = vrot.slane %v1278_v50, 4 }
 0x60c   :  { %v1280_v51 = vadd.f32 %v1279_v44, %v1278_v50 }
 0x60e   :  { %v1281_v52 = vrot.slane %v1280_v51, 2 }
 0x610   :  { %v1282_v53 = vadd.f32 %v1281_v52, %v1280_v51 }
 0x612   :  { %v1283_v54 = vrot.slane %v1282_v53, 1 }
 0x614   :  { %v1284_v55 = vadd.f32 %v1283_v54, %v1282_v53 }
 0x616   :  { %1289 = vst [vmem:[%s1870_s12] sm:$0x1] %v1284_v55 }
 0x617   :  { %1298 = vsyncpa [#allocation9], 1 }
 0x618   :  { %1299 = vsyncpa [#allocation11], 1 }
 0x619   :  { %1300 = vsyncpa [#allocation14], 1 }
 0x61a   :  { %1301 = vsyncpa [#allocation17], 1 }

// kernel: forward.3
= control target key start
LH: loop header
LB: loop body
LE: loop exit
PB: predicated region body
PF: predicated region fallthrough
CT: control target
= control target key end

     0   :  { %s2637_s0 = inlined_call_operand.vmem [shape: s32[3,3], index: 0, kind: input, shape index: {}]   ;;  %s2638_s1 = inlined_call_operand.vmem [shape: f32[512,128], index: 1, kind: input, shape index: {}]   ;;  %s2639_s2 = inlined_call_operand.vmem [shape: f32[128,128], index: 2, kind: input, shape index: {}]   ;;  %s2640_s3 = inlined_call_operand.vmem [shape: f32[1,128], index: 3, kind: input, shape index: {}]   ;;  %s2641_s4 = inlined_call_operand.vmem [shape: f32[128,1536], index: 4, kind: input, shape index: {}]   ;;  %s2642_s5 = inlined_call_operand.vmem [shape: f32[1,1536], index: 5, kind: input, shape index: {}]   ;;  %s2643_s6 = inlined_call_operand.vmem [shape: f32[512,128], index: 6, kind: input, shape index: {}]   ;;  %s2644_s7 = inlined_call_operand.vmem [shape: f32[128,128], index: 7, kind: input, shape index: {}]   ;;  %s2645_s8 = inlined_call_operand.vmem [shape: f32[1,128], index: 8, kind: input, shape index: {}]   ;;  %s2646_s9 = inlined_call_operand.vmem [shape: f32[8,128], index: 9, kind: input, shape index: {}]   ;;  %s2647_s10 = inlined_call_operand.vmem [shape: f32[8,1], index: 10, kind: input, shape index: {}]   ;;  %s2648_s11 = inlined_call_operand.vmem [shape: f32[3,1,128], index: 11, kind: output, shape index: {}]  }
   0x1   :  { %s16_s19 = sshll.u32 %s2637_s0, 4  ;;  %s17_s19 = int_to_ptr.vmem [resolvable:$true] %s16_s19 }
   0x2   :  { %s1713_s20 = scalar_lea.vmem %s17_s19, 64  ;;  %p1718_p1 = scmp.lt.s32.totalorder %s17_s19, %s17_s19 }
   0x3   :  { %p1714_p0 = scmp.ne.s32.totalorder %s17_s19, %s1713_s20  ;;  %p1719_p2 = scmp.lt.s32.totalorder %s1713_s20, %s1713_s20 }
   0x5   :  { %p1720_p3 = por %p1719_p2, %p1718_p1 }
   0x7   :  { %p1721_p4 = pnand %p1720_p3, %p1714_p0 }
   0x9   :  { %1724 = shalt.err (!%p1721_p4)  }
   0xa   :  { %s1735_s21 = smov [#allocation7]  }
   0xb   :  { %19 = dma.vmem_to_smem %s17_s19, 64, %s1735_s21, [#allocation6] }
   0xc   :  { %1729 = dma.done.wait [#allocation6], 64 }
   0xd   :  { %1730 = vsyncadd [#allocation6], 4294967232 }
   0xe   :  { %21 = sfence }
   0xf   :  { %s1803_s22 = smov 0  }
  0x10 LB: > { %s1809_s0 = sadd.s32 4294967295, %s1733_s22   ;;  %p1552_p5 = scmp.ge.s32.totalorder %s1733_s22, 1  ;;  %s1733_s22 = sphi %s1803_s22, %s27_s22  }
  0x11   : > { %p309_p6 = scmp.lt.s32.totalorder %s1733_s22, 4 }
  0x13   : > { %p310_p7 = pnand %p1552_p5, %p309_p6 }
  0x14   : > { %s1553_s25 = sshll.u32 (!%p310_p7), %s1809_s0, 7  ;;  %p340_p8 = scmp.lt.s32.totalorder (!%p310_p7), %s1809_s0, 2 }
  0x15   : > { %313 = sbr.rel (%p310_p7) target bundleno = 1497 (0x5d9), region = 60  ;;  %s345_s28 = sadd.s32 (!%p310_p7), 1, %s1553_s25 }
  0x16   : > { %s347_s29 = sadd.s32 (!%p310_p7), 2, %s1553_s25  ;;  %s1832_s30 = sld [smem:[#allocation7 + %s345_s28]] (!%p310_p7) }
  0x17   : > { %s1839_s14 = sld [smem:[#allocation7 + %s347_s29]] (!%p310_p7) }
  0x18   : > { %s1841_s15 = sld [smem:[#allocation7 + %s1553_s25]] (!%p310_p7) }
  0x1a   : > { %v386_v0 = vld [vmem:[%s2639_s2 + $0x78] sm:$0xff]  ;;  %v1736_v1 = vmov 0.0   ;;  %v385_v2 = vld [vmem:[%s2639_s2 + $0x70] sm:$0xff]  ;;  %vm1737_vm0 = vmmov 0   ;;  %v384_v3 = vld [vmem:[%s2639_s2 + $0x68] sm:$0xff]  ;;  %s2652_s0 = smov (!%p340_p8, %s1809_s0), 2 }
  0x1b   : > { %1594 = vmatprep.subr.mxu0 %v1736_v1  ;;  %356 = vst [vmem:[#allocation2] sm:$0xff] %v1736_v1  ;;  %357 = vst [vmem:[#allocation2 + $0x8] sm:$0xff] %v1736_v1  ;;  %1626 = vmatprep.mubr.msk.f32.mxu0 %vm1737_vm0, %v1736_v1  ;;  %v383_v4 = vld [vmem:[%s2639_s2 + $0x60] sm:$0xff]  ;;  %v382_v6 = vld [vmem:[%s2639_s2 + $0x58] sm:$0xff] }
  0x1c   : > { %358 = vst [vmem:[#allocation2 + $0x10] sm:$0xff] %v1736_v1  ;;  %511 = vst [vmem:[#allocation4] sm:$0xff] %v1736_v1  ;;  %1595 = vmatpush3.msra.mxu0 %v386_v0  ;;  %836 = vmatprep.mubr.f32.mxu1 %v1736_v1  ;;  %v355_v5 = vld [vmem:[%s2638_s1] sm:$0x1]  ;;  %s351_s25 = scalar_lea.vmem %s2638_s1, %s1832_s30  ;;  %v381_v7 = vld [vmem:[%s2639_s2 + $0x50] sm:$0xff]  ;;  %s1366_s28 = scalar_lea.vmem %s2643_s6, %s1832_s30 }
  0x1d   : > { %1198 = vst [vmem:[#allocation5] sm:$0xff] %v1736_v1  ;;  %1199 = vst [vmem:[#allocation5 + $0x8] sm:$0xff] %v1736_v1  ;;  %1596 = vmatprep.subr.mxu0 %v1736_v1  ;;  %v352_v8 = vld [vmem:[%s351_s25] sm:$0x1]  ;;  %s353_s12 = scalar_lea.vmem %s2638_s1, %s1839_s14  ;;  %v380_v10 = vld [vmem:[%s2639_s2 + $0x48] sm:$0xff]  ;;  %s1369_s13 = scalar_lea.vmem %s2643_s6, %s1839_s14 }
  0x1e   : > { %1200 = vst [vmem:[#allocation5 + $0x10] sm:$0xff] %v1736_v1  ;;  %1201 = vst [vmem:[#allocation5 + $0x18] sm:$0xff] %v1736_v1  ;;  %1597 = vmatpush3.msra.mxu0 %v385_v2  ;;  %v354_v9 = vld [vmem:[%s353_s12] sm:$0x1]  ;;  %s349_s17 = scalar_lea.vmem %s2638_s1, %s1841_s15  ;;  %v378_v13 = vld [vmem:[%s2639_s2 + $0x38] sm:$0xff]  ;;  %s1363_s25 = scalar_lea.vmem %s2643_s6, %s1841_s15 }
  0x1f   : > { %1362 = vst [vmem:[#allocation3] sm:$0xff] %v1736_v1  ;;  %1598 = vmatprep.subr.mxu0 %v1736_v1  ;;  %359 = vst [vmem:[#allocation2] sm:$0x1] %v355_v5  ;;  %v350_v11 = vld [vmem:[%s349_s17] sm:$0x1]  ;;  %v377_v14 = vld [vmem:[%s2639_s2 + $0x30] sm:$0xff] }
  0x20   : > { %1599 = vmatpush3.msra.mxu0 %v384_v3  ;;  %363 = vst [vmem:[#allocation2 + $0x9] sm:$0x1] %v355_v5  ;;  %367 = vst [vmem:[#allocation2 + $0x12] sm:$0x1] %v355_v5  ;;  %v379_v12 = vld [vmem:[%s2639_s2 + $0x40] sm:$0xff]  ;;  %v376_v15 = vld [vmem:[%s2639_s2 + $0x28] sm:$0xff] }
  0x21   : > { %1600 = vmatprep.subr.mxu0 %v1736_v1  ;;  %360 = vst [vmem:[#allocation2 + $0x1] sm:$0x1] %v352_v8  ;;  %366 = vst [vmem:[#allocation2 + $0x11] sm:$0x1] %v352_v8  ;;  %v375_v16 = vld [vmem:[%s2639_s2 + $0x20] sm:$0xff]  ;;  %v374_v17 = vld [vmem:[%s2639_s2 + $0x18] sm:$0xff] }
  0x22   : > { %1601 = vmatpush3.msra.mxu0 %v383_v4  ;;  %361 = vst [vmem:[#allocation2 + $0x2] sm:$0x1] %v354_v9  ;;  %364 = vst [vmem:[#allocation2 + $0xa] sm:$0x1] %v354_v9  ;;  %v373_v18 = vld [vmem:[%s2639_s2 + $0x10] sm:$0xff]  ;;  %v372_v19 = vld [vmem:[%s2639_s2 + $0x8] sm:$0xff] }
  0x23   : > { %1602 = vmatprep.subr.mxu0 %v1736_v1  ;;  %362 = vst [vmem:[#allocation2 + $0x8] sm:$0x1] %v350_v11  ;;  %365 = vst [vmem:[#allocation2 + $0x10] sm:$0x1] %v350_v11  ;;  %v371_v20 = vld [vmem:[%s2639_s2] sm:$0xff]  ;;  %v697_v49 = vld [vmem:[%s2641_s4 + $0x5a8] sm:$0xff] }
  0x24   : > { %1603 = vmatpush3.msra.mxu0 %v382_v6  ;;  %v1554_v24 = vld [vmem:[%s2640_s3] ss:$0 sm:$0xff]  ;;  %v699_v50 = vld [vmem:[%s2641_s4 + $0x5b8] sm:$0xff]  ;;  %772 = vmatprep.subr.mxu1 %v697_v49  ;;  %v698_v52 = vld [vmem:[%s2641_s4 + $0x5b0] sm:$0xff] }
  0x25   : > { %1604 = vmatprep.subr.mxu0 %v1736_v1  ;;  %v696_v51 = vld [vmem:[%s2641_s4 + $0x5a0] sm:$0xff]  ;;  %v685_v53 = vld [vmem:[%s2641_s4 + $0x548] sm:$0xff]  ;;  %v687_v54 = vld [vmem:[%s2641_s4 + $0x558] sm:$0xff] }
  0x26   : > { %1605 = vmatpush3.msra.mxu0 %v381_v7  ;;  %773 = vmatpush1.msra.mxu1 %v696_v51  ;;  %v684_v55 = vld [vmem:[%s2641_s4 + $0x540] sm:$0xff]  ;;  %v686_v56 = vld [vmem:[%s2641_s4 + $0x550] sm:$0xff]  ;;  %v673_v57 = vld [vmem:[%s2641_s4 + $0x4e8] sm:$0xff] }
  0x27   : > { %1606 = vmatprep.subr.mxu0 %v1736_v1  ;;  %774 = vmatprep.subr.mxu1 %v685_v53  ;;  %v675_v58 = vld [vmem:[%s2641_s4 + $0x4f8] sm:$0xff]  ;;  %v672_v59 = vld [vmem:[%s2641_s4 + $0x4e0] sm:$0xff]  ;;  %v674_v60 = vld [vmem:[%s2641_s4 + $0x4f0] sm:$0xff] }
  0x28   : > { %1607 = vmatpush3.msra.mxu0 %v380_v10  ;;  %775 = vmatpush1.msra.mxu1 %v684_v55  ;;  %v661_v61 = vld [vmem:[%s2641_s4 + $0x488] sm:$0xff]  ;;  %v663_v62 = vld [vmem:[%s2641_s4 + $0x498] sm:$0xff]  ;;  %v660_v63 = vld [vmem:[%s2641_s4 + $0x480] sm:$0xff] }
  0x29   : > { %1608 = vmatprep.subr.mxu0 %v1736_v1  ;;  %v368_v21 = vld [vmem:[#allocation2] sm:$0xff]  ;;  %776 = vmatprep.subr.mxu1 %v673_v57  ;;  %v662_v0 = vld [vmem:[%s2641_s4 + $0x490] sm:$0xff]  ;;  %v649_v2 = vld [vmem:[%s2641_s4 + $0x428] sm:$0xff] }
  0x2a   : > { %1609 = vmatpush3.msra.mxu0 %v379_v12  ;;  %v369_v22 = vld [vmem:[#allocation2 + $0x8] sm:$0xff]  ;;  %v370_v23 = vld [vmem:[#allocation2 + $0x10] sm:$0xff]  ;;  %777 = vmatpush1.msra.mxu1 %v672_v59  ;;  %v651_v3 = vld [vmem:[%s2641_s4 + $0x438] sm:$0xff] }
  0x2b   : > { %1610 = vmatprep.subr.mxu0 %v1736_v1  ;;  %778 = vmatprep.subr.mxu1 %v661_v61  ;;  %v648_v4 = vld [vmem:[%s2641_s4 + $0x420] sm:$0xff]  ;;  %v650_v5 = vld [vmem:[%s2641_s4 + $0x430] sm:$0xff]  ;;  %v637_v6 = vld [vmem:[%s2641_s4 + $0x3c8] sm:$0xff] }
  0x2c   : > { %1611 = vmatpush3.msra.mxu0 %v378_v13  ;;  %779 = vmatpush1.msra.mxu1 %v660_v63  ;;  %v639_v7 = vld [vmem:[%s2641_s4 + $0x3d8] sm:$0xff]  ;;  %v636_v8 = vld [vmem:[%s2641_s4 + $0x3c0] sm:$0xff]  ;;  %v638_v9 = vld [vmem:[%s2641_s4 + $0x3d0] sm:$0xff] }
  0x2d   : > { %1612 = vmatprep.subr.mxu0 %v1736_v1  ;;  %780 = vmatprep.subr.mxu1 %v649_v2  ;;  %v625_v10 = vld [vmem:[%s2641_s4 + $0x368] sm:$0xff]  ;;  %v627_v11 = vld [vmem:[%s2641_s4 + $0x378] sm:$0xff]  ;;  %v624_v12 = vld [vmem:[%s2641_s4 + $0x360] sm:$0xff] }
  0x2e   : > { %1613 = vmatpush3.msra.mxu0 %v377_v14  ;;  %781 = vmatpush1.msra.mxu1 %v648_v4  ;;  %v626_v13 = vld [vmem:[%s2641_s4 + $0x370] sm:$0xff]  ;;  %v613_v14 = vld [vmem:[%s2641_s4 + $0x308] sm:$0xff]  ;;  %v516_v51 = vld [vmem:[%s2641_s4] sm:$0xff] }
  0x2f   : > { %1614 = vmatprep.subr.mxu0 %v1736_v1  ;;  %782 = vmatprep.subr.mxu1 %v637_v6  ;;  %v517_v49 = vld [vmem:[%s2641_s4 + $0x8] sm:$0xff]  ;;  %v1367_v57 = vld [vmem:[%s1366_s28] sm:$0x1] }
  0x30   : > { %1615 = vmatpush3.msra.mxu0 %v376_v15  ;;  %783 = vmatpush1.msra.mxu1 %v636_v8  ;;  %v615_v15 = vld [vmem:[%s2641_s4 + $0x318] sm:$0xff]  ;;  %v701_v53 = vld [vmem:[%s2641_s4 + $0x5c8] sm:$0xff]  ;;  %1368 = vst [vmem:[#allocation3 + $0x1] sm:$0x1] %v1367_v57  ;;  %v1370_v59 = vld [vmem:[%s1369_s13] sm:$0x1] }
  0x31   : > { %1616 = vmatprep.subr.mxu0 %v1736_v1  ;;  %784 = vmatprep.subr.mxu1 %v625_v10  ;;  %1371 = vst [vmem:[#allocation3 + $0x2] sm:$0x1] %v1370_v59  ;;  %v700_v10 = vld [vmem:[%s2641_s4 + $0x5c0] sm:$0xff]  ;;  %v557_v57 = vld [vmem:[%s2641_s4 + $0x148] sm:$0xff] }
  0x32   : > { %1617 = vmatpush3.msra.mxu0 %v375_v16  ;;  %785 = vmatpush1.msra.mxu1 %v624_v12  ;;  %v612_v16 = vld [vmem:[%s2641_s4 + $0x300] sm:$0xff] }
  0x33   : > { %1618 = vmatprep.subr.mxu0 %v1736_v1  ;;  %786 = vmatprep.subr.mxu1 %v613_v14  ;;  %v677_v14 = vld [vmem:[%s2641_s4 + $0x508] sm:$0xff]  ;;  %v556_v59 = vld [vmem:[%s2641_s4 + $0x140] sm:$0xff] }
  0x34   : > { %1619 = vmatpush3.msra.mxu0 %v374_v17  ;;  %v614_v17 = vld [vmem:[%s2641_s4 + $0x310] sm:$0xff]  ;;  %787 = vmatpush1.msra.mxu1 %v612_v16  ;;  %v676_v16 = vld [vmem:[%s2641_s4 + $0x500] sm:$0xff] }
  0x35   : > { %1620 = vmatprep.subr.mxu0 %v1736_v1 }
  0x36   : > { %1621 = vmatpush3.msra.mxu0 %v373_v18  ;;  %v601_v18 = vld [vmem:[%s2641_s4 + $0x2a8] sm:$0xff] }
  0x37   : > { %1622 = vmatprep.subr.mxu0 %v1736_v1  ;;  %788 = vmatprep.subr.mxu1 %v601_v18  ;;  %v665_v18 = vld [vmem:[%s2641_s4 + $0x4a8] sm:$0xff] }
  0x38   : > { %1623 = vmatpush3.msra.mxu0 %v372_v19  ;;  %v603_v19 = vld [vmem:[%s2641_s4 + $0x2b8] sm:$0xff] }
  0x39   : > { %1624 = vmatprep.subr.mxu0 %v1736_v1 }
  0x3a   : > { %1625 = vmatpush3.msra.mxu0 %v371_v20  ;;  %v600_v20 = vld [vmem:[%s2641_s4 + $0x2a0] sm:$0xff] }
  0x3b   : > { %1627 = vmatmul.mubr.f32.vlgmr.msra.gmra.mxu0 %v368_v21  ;;  %843 = vmatprep.subr.mxu0 %v699_v50  ;;  %v602_v21 = vld [vmem:[%s2641_s4 + $0x2b0] sm:$0xff]  ;;  %v519_v50 = vld [vmem:[%s2641_s4 + $0x18] sm:$0xff] }
  0x3c   : > { %1629 = vmatprep.mubr.msk.f32.mxu0 %vm1737_vm0, %v1736_v1  ;;  %844 = vmatpush1.msra.mxu0 %v698_v52  ;;  %v518_v52 = vld [vmem:[%s2641_s4 + $0x10] sm:$0xff] }
  0x3d   : > { %845 = vmatprep.subr.mxu0 %v687_v54  ;;  %789 = vmatpush1.msra.mxu1 %v600_v20  ;;  %v703_v54 = vld [vmem:[%s2641_s4 + $0x5d8] sm:$0xff]  ;;  %v664_v20 = vld [vmem:[%s2641_s4 + $0x4a0] sm:$0xff] }
  0x3e   : > { %846 = vmatpush1.msra.mxu0 %v686_v56  ;;  %v1364_v56 = vld [vmem:[%s1363_s25] sm:$0x1]  ;;  %s342_s25 = scalar_lea.vmem %s2648_s11, %s2652_s0 }
  0x3f   : > { %1630 = vmatmul.mubr.f32.gmra.mxu0 %v369_v22  ;;  %847 = vmatprep.subr.mxu0 %v675_v58  ;;  %v589_v22 = vld [vmem:[%s2641_s4 + $0x248] sm:$0xff]  ;;  %1365 = vst [vmem:[#allocation3] sm:$0x1] %v1364_v56  ;;  %v570_v56 = vld [vmem:[%s2641_s4 + $0x1b0] sm:$0xff] }
  0x40   : > { %1632 = vmatprep.mubr.msk.f32.mxu0 %vm1737_vm0, %v1736_v1  ;;  %848 = vmatpush1.msra.mxu0 %v674_v60 }
  0x41   : > { %849 = vmatprep.subr.mxu0 %v663_v62  ;;  %790 = vmatprep.subr.mxu1 %v589_v22  ;;  %v653_v22 = vld [vmem:[%s2641_s4 + $0x448] sm:$0xff] }
  0x42   : > { %850 = vmatpush1.msra.mxu0 %v662_v0 }
  0x43   : > { %1633 = vmatmul.mubr.f32.gmra.mxu0 %v370_v23  ;;  %851 = vmatprep.subr.mxu0 %v651_v3  ;;  %v591_v23 = vld [vmem:[%s2641_s4 + $0x258] sm:$0xff] }
  0x44   : > { %907 = vmatprep.mubr.f32.mxu0 %v1736_v1  ;;  %852 = vmatpush1.msra.mxu0 %v650_v5 }
  0x45   : > { %853 = vmatprep.subr.mxu0 %v639_v7 }
  0x46   : > { %854 = vmatpush1.msra.mxu0 %v638_v9 }
  0x47   : > { %855 = vmatprep.subr.mxu0 %v627_v11  ;;  %v702_v11 = vld [vmem:[%s2641_s4 + $0x5d0] sm:$0xff] }
  0x48   : > { %856 = vmatpush1.msra.mxu0 %v626_v13  ;;  %v690_v13 = vld [vmem:[%s2641_s4 + $0x570] sm:$0xff] }
  0x49   : > { %857 = vmatprep.subr.mxu0 %v615_v15  ;;  %v679_v15 = vld [vmem:[%s2641_s4 + $0x518] sm:$0xff] }
  0x4a   : > { %858 = vmatpush1.msra.mxu0 %v614_v17  ;;  %v678_v17 = vld [vmem:[%s2641_s4 + $0x510] sm:$0xff] }
  0x4b   : > { %859 = vmatprep.subr.mxu0 %v603_v19  ;;  %v667_v19 = vld [vmem:[%s2641_s4 + $0x4b8] sm:$0xff] }
  0x4c   : > { %860 = vmatpush1.msra.mxu0 %v602_v21  ;;  %v666_v21 = vld [vmem:[%s2641_s4 + $0x4b0] sm:$0xff] }
  0x4d   : > { %861 = vmatprep.subr.mxu0 %v591_v23  ;;  %v655_v23 = vld [vmem:[%s2641_s4 + $0x458] sm:$0xff] }
  0xfb   : > { %v460_v25 = vpop.f32.mrf.mxu0 }
  0xfc   : > { %v461_v26 = vadd.f32 %v1554_v24, %v460_v25  ;;  %v590_v25 = vld [vmem:[%s2641_s4 + $0x250] sm:$0xff] }
  0xfd   : > { %v1628_v27 = vpop.f32.mrf.mxu0  ;;  %862 = vmatpush1.msra.mxu0 %v590_v25  ;;  %v654_v25 = vld [vmem:[%s2641_s4 + $0x450] sm:$0xff] }
  0xfe   : > { %1684 = vtanh.f32 %v461_v26  ;;  %v577_v26 = vld [vmem:[%s2641_s4 + $0x1e8] sm:$0xff]  ;;  %v579_v27 = vld [vmem:[%s2641_s4 + $0x1f8] sm:$0xff] }
  0xff   : > { %v465_v28 = vpop.f32.mrf.mxu0  ;;  %863 = vmatprep.subr.mxu0 %v579_v27  ;;  %v643_v27 = vld [vmem:[%s2641_s4 + $0x3f8] sm:$0xff] }
 0x100   : > { %v466_v29 = vadd.f32 %v1554_v24, %v465_v28  ;;  %v576_v28 = vld [vmem:[%s2641_s4 + $0x1e0] sm:$0xff] }
 0x101   : > { %v1631_v30 = vpop.f32.mrf.mxu0 }
 0x102   : > { %1686 = vtanh.f32 %v466_v29  ;;  %v578_v29 = vld [vmem:[%s2641_s4 + $0x1f0] sm:$0xff]  ;;  %v565_v30 = vld [vmem:[%s2641_s4 + $0x188] sm:$0xff] }
 0x103   : > { %v470_v31 = vpop.f32.mrf.mxu0  ;;  %864 = vmatpush1.msra.mxu0 %v578_v29  ;;  %v642_v29 = vld [vmem:[%s2641_s4 + $0x3f0] sm:$0xff] }
 0x104   : > { %v471_v32 = vadd.f32 %v1554_v24, %v470_v31  ;;  %v588_v24 = vld [vmem:[%s2641_s4 + $0x240] sm:$0xff]  ;;  %v567_v31 = vld [vmem:[%s2641_s4 + $0x198] sm:$0xff] }
 0x105   : > { %v1634_v33 = vpop.f32.mrf.mxu0  ;;  %791 = vmatpush1.msra.mxu1 %v588_v24  ;;  %865 = vmatprep.subr.mxu0 %v567_v31  ;;  %v652_v24 = vld [vmem:[%s2641_s4 + $0x440] sm:$0xff]  ;;  %v631_v31 = vld [vmem:[%s2641_s4 + $0x398] sm:$0xff] }
 0x106   : > { %1688 = vtanh.f32 %v471_v32  ;;  %792 = vmatprep.subr.mxu1 %v577_v26  ;;  %v564_v32 = vld [vmem:[%s2641_s4 + $0x180] sm:$0xff]  ;;  %v566_v33 = vld [vmem:[%s2641_s4 + $0x190] sm:$0xff]  ;;  %v641_v26 = vld [vmem:[%s2641_s4 + $0x3e8] sm:$0xff] }
 0x107   : > { %793 = vmatpush1.msra.mxu1 %v576_v28  ;;  %866 = vmatpush1.msra.mxu0 %v566_v33  ;;  %v640_v28 = vld [vmem:[%s2641_s4 + $0x3e0] sm:$0xff]  ;;  %v630_v33 = vld [vmem:[%s2641_s4 + $0x390] sm:$0xff] }
 0x108   : > { %794 = vmatprep.subr.mxu1 %v565_v30  ;;  %v629_v30 = vld [vmem:[%s2641_s4 + $0x388] sm:$0xff] }
 0x109   : > { %795 = vmatpush1.msra.mxu1 %v564_v32  ;;  %v628_v32 = vld [vmem:[%s2641_s4 + $0x380] sm:$0xff] }
 0x10b   : > { %v1685_v34 = vpop.eup %1684 }
 0x10c   : > { %477 = vadd.xlane.f32.xlu0 %v1685_v34 }
 0x10f   : > { %v1687_v35 = vpop.eup %1686 }
 0x110   : > { %479 = vadd.xlane.f32.xlu0 %v1687_v35 }
 0x113   : > { %v1689_v36 = vpop.eup %1688 }
 0x114   : > { %481 = vadd.xlane.f32.xlu1 %v1689_v36 }
 0x195   : > { %v478_v37 = vpop.xlane.xlu0 %477 }
 0x196   : > { %v484_v38 = vmul.f32 0.0078125, %v478_v37  ;;  %v554_v37 = vld [vmem:[%s2641_s4 + $0x130] sm:$0xff] }
 0x198   : > { %v1919_v39 = vsub.f32 %v1685_v34, %v484_v38  ;;  %v553_v34 = vld [vmem:[%s2641_s4 + $0x128] sm:$0xff] }
 0x199   : > { %v480_v40 = vpop.xlane.xlu0 %479  ;;  %796 = vmatprep.subr.mxu1 %v553_v34  ;;  %v541_v38 = vld [vmem:[%s2641_s4 + $0xc8] sm:$0xff] }
 0x19a   : > { %v485_v41 = vmul.f32 0.0078125, %v480_v40  ;;  %v490_v42 = vmul.f32 %v1919_v39, %v1919_v39  ;;  %v543_v40 = vld [vmem:[%s2641_s4 + $0xd8] sm:$0xff]  ;;  %v617_v34 = vld [vmem:[%s2641_s4 + $0x328] sm:$0xff] }
 0x19c   : > { %v1923_v43 = vsub.f32 %v1687_v35, %v485_v41  ;;  %493 = vadd.xlane.f32.xlu1 %v490_v42  ;;  %v555_v35 = vld [vmem:[%s2641_s4 + $0x138] sm:$0xff]  ;;  %v540_v41 = vld [vmem:[%s2641_s4 + $0xc0] sm:$0xff]  ;;  %v542_v42 = vld [vmem:[%s2641_s4 + $0xd0] sm:$0xff] }
 0x19d   : > { %v482_v44 = vpop.xlane.xlu1 %481  ;;  %867 = vmatprep.subr.mxu0 %v555_v35  ;;  %v619_v35 = vld [vmem:[%s2641_s4 + $0x338] sm:$0xff] }
 0x19e   : > { %v486_v45 = vmul.f32 0.0078125, %v482_v44  ;;  %v491_v46 = vmul.f32 %v1923_v43, %v1923_v43  ;;  %868 = vmatpush1.msra.mxu0 %v554_v37  ;;  %v529_v44 = vld [vmem:[%s2641_s4 + $0x68] sm:$0xff]  ;;  %v618_v37 = vld [vmem:[%s2641_s4 + $0x330] sm:$0xff] }
 0x19f   : > { %869 = vmatprep.subr.mxu0 %v543_v40  ;;  %v607_v40 = vld [vmem:[%s2641_s4 + $0x2d8] sm:$0xff] }
 0x1a0   : > { %v1927_v47 = vsub.f32 %v1689_v36, %v486_v45  ;;  %495 = vadd.xlane.f32.xlu0 %v491_v46  ;;  %v552_v36 = vld [vmem:[%s2641_s4 + $0x120] sm:$0xff]  ;;  %v531_v45 = vld [vmem:[%s2641_s4 + $0x78] sm:$0xff]  ;;  %870 = vmatpush1.msra.mxu0 %v542_v42  ;;  %v606_v42 = vld [vmem:[%s2641_s4 + $0x2d0] sm:$0xff] }
 0x1a1   : > { %797 = vmatpush1.msra.mxu1 %v552_v36  ;;  %v528_v46 = vld [vmem:[%s2641_s4 + $0x60] sm:$0xff]  ;;  %871 = vmatprep.subr.mxu0 %v531_v45  ;;  %v595_v45 = vld [vmem:[%s2641_s4 + $0x278] sm:$0xff] }
 0x1a2   : > { %v492_v48 = vmul.f32 %v1927_v47, %v1927_v47  ;;  %798 = vmatprep.subr.mxu1 %v541_v38  ;;  %v616_v36 = vld [vmem:[%s2641_s4 + $0x320] sm:$0xff]  ;;  %v605_v38 = vld [vmem:[%s2641_s4 + $0x2c8] sm:$0xff] }
 0x1a3   : > { %799 = vmatpush1.msra.mxu1 %v540_v41  ;;  %v604_v41 = vld [vmem:[%s2641_s4 + $0x2c0] sm:$0xff] }
 0x1a4   : > { %497 = vadd.xlane.f32.xlu1 %v492_v48  ;;  %v530_v48 = vld [vmem:[%s2641_s4 + $0x70] sm:$0xff]  ;;  %800 = vmatprep.subr.mxu1 %v529_v44  ;;  %v593_v44 = vld [vmem:[%s2641_s4 + $0x268] sm:$0xff] }
 0x1a5   : > { %801 = vmatpush1.msra.mxu1 %v528_v46  ;;  %872 = vmatpush1.msra.mxu0 %v530_v48  ;;  %v592_v46 = vld [vmem:[%s2641_s4 + $0x260] sm:$0xff]  ;;  %v594_v48 = vld [vmem:[%s2641_s4 + $0x270] sm:$0xff] }
 0x1a6   : > { %802 = vmatprep.subr.mxu1 %v517_v49  ;;  %873 = vmatprep.subr.mxu0 %v519_v50  ;;  %v581_v49 = vld [vmem:[%s2641_s4 + $0x208] sm:$0xff]  ;;  %v583_v50 = vld [vmem:[%s2641_s4 + $0x218] sm:$0xff] }
 0x1a7   : > { %803 = vmatpush1.msra.mxu1 %v516_v51  ;;  %874 = vmatpush1.msra.mxu0 %v518_v52  ;;  %v580_v51 = vld [vmem:[%s2641_s4 + $0x200] sm:$0xff]  ;;  %v582_v52 = vld [vmem:[%s2641_s4 + $0x210] sm:$0xff] }
 0x1a8   : > { %914 = vmatprep.subr.mxu1 %v701_v53  ;;  %985 = vmatprep.subr.mxu0 %v703_v54  ;;  %v569_v53 = vld [vmem:[%s2641_s4 + $0x1a8] sm:$0xff]  ;;  %v571_v54 = vld [vmem:[%s2641_s4 + $0x1b8] sm:$0xff] }
 0x225   : > { %v494_v55 = vpop.xlane.xlu1 %493 }
 0x226   : > { %v499_v58 = vmul.f32 0.0078125, %v494_v55  ;;  %v568_v55 = vld [vmem:[%s2641_s4 + $0x1a0] sm:$0xff] }
 0x228   : > { %v502_v60 = vadd.f32 1e-06, %v499_v58  ;;  %v559_v58 = vld [vmem:[%s2641_s4 + $0x158] sm:$0xff] }
 0x229   : > { %v496_v61 = vpop.xlane.xlu0 %495 }
 0x22a   : > { %1690 = vrsqrt.f32 %v502_v60  ;;  %v500_v62 = vmul.f32 0.0078125, %v496_v61  ;;  %v558_v60 = vld [vmem:[%s2641_s4 + $0x150] sm:$0xff]  ;;  %v545_v61 = vld [vmem:[%s2641_s4 + $0xe8] sm:$0xff] }
 0x22c   : > { %v503_v63 = vadd.f32 1e-06, %v500_v62  ;;  %v547_v62 = vld [vmem:[%s2641_s4 + $0xf8] sm:$0xff] }
 0x22d   : > { %v498_v0 = vpop.xlane.xlu1 %497 }
 0x22e   : > { %1692 = vrsqrt.f32 %v503_v63  ;;  %v501_v2 = vmul.f32 0.0078125, %v498_v0  ;;  %v544_v63 = vld [vmem:[%s2641_s4 + $0xe0] sm:$0xff]  ;;  %v546_v0 = vld [vmem:[%s2641_s4 + $0xf0] sm:$0xff] }
 0x230   : > { %v504_v3 = vadd.f32 1e-06, %v501_v2  ;;  %v533_v2 = vld [vmem:[%s2641_s4 + $0x88] sm:$0xff] }
 0x232   : > { %1694 = vrsqrt.f32 %v504_v3  ;;  %v535_v3 = vld [vmem:[%s2641_s4 + $0x98] sm:$0xff] }
 0x237   : > { %v1691_v4 = vpop.eup %1690 }
 0x238   : > { %v508_v5 = vmul.f32 %v1691_v4, %v1919_v39  ;;  %v689_v39 = vld [vmem:[%s2641_s4 + $0x568] sm:$0xff]  ;;  %v532_v4 = vld [vmem:[%s2641_s4 + $0x80] sm:$0xff] }
 0x23a   : > { %512 = vst [vmem:[#allocation4] sm:$0x1] %v508_v5  ;;  %v534_v5 = vld [vmem:[%s2641_s4 + $0x90] sm:$0xff] }
 0x23b   : > { %v1693_v6 = vpop.eup %1692 }
 0x23c   : > { %v509_v7 = vmul.f32 %v1693_v6, %v1923_v43  ;;  %v691_v43 = vld [vmem:[%s2641_s4 + $0x578] sm:$0xff]  ;;  %v521_v6 = vld [vmem:[%s2641_s4 + $0x28] sm:$0xff] }
 0x23e   : > { %513 = vst [vmem:[#allocation4] sm:$0x2] %v509_v7  ;;  %v523_v7 = vld [vmem:[%s2641_s4 + $0x38] sm:$0xff] }
 0x23f   : > { %v1695_v8 = vpop.eup %1694 }
 0x240   : > { %v510_v9 = vmul.f32 %v1695_v8, %v1927_v47  ;;  %v688_v47 = vld [vmem:[%s2641_s4 + $0x560] sm:$0xff] }
 0x241   : > { %v520_v8 = vld [vmem:[%s2641_s4 + $0x20] sm:$0xff] }
 0x242   : > { %514 = vst [vmem:[#allocation4] sm:$0x4] %v510_v9  ;;  %v522_v9 = vld [vmem:[%s2641_s4 + $0x30] sm:$0xff] }
 0x249   : > { %v2150_v12 = vld [vmem:[#allocation4] sm:$0xff] }
 0x24a   : > { %837 = vmatmul.mubr.f32.vlgmr.msra.gmra.mxu1 %v2150_v12  ;;  %908 = vmatmul.mubr.f32.vlgmr.msra.gmra.mxu0 %v2150_v12 }
 0x24b   : > { %915 = vmatpush1.msra.mxu1 %v700_v10  ;;  %986 = vmatpush1.msra.mxu0 %v702_v11  ;;  %v705_v10 = vld [vmem:[%s2641_s4 + $0x5e8] sm:$0xff]  ;;  %v707_v11 = vld [vmem:[%s2641_s4 + $0x5f8] sm:$0xff] }
 0x24c   : > { %916 = vmatprep.subr.mxu1 %v689_v39  ;;  %987 = vmatprep.subr.mxu0 %v691_v43  ;;  %v704_v39 = vld [vmem:[%s2641_s4 + $0x5e0] sm:$0xff]  ;;  %v706_v43 = vld [vmem:[%s2641_s4 + $0x5f0] sm:$0xff] }
 0x24d   : > { %917 = vmatpush1.msra.mxu1 %v688_v47  ;;  %988 = vmatpush1.msra.mxu0 %v690_v13  ;;  %v693_v47 = vld [vmem:[%s2641_s4 + $0x588] sm:$0xff]  ;;  %v692_v13 = vld [vmem:[%s2641_s4 + $0x580] sm:$0xff] }
 0x24e   : > { %918 = vmatprep.subr.mxu1 %v677_v14  ;;  %989 = vmatprep.subr.mxu0 %v679_v15  ;;  %v694_v14 = vld [vmem:[%s2641_s4 + $0x590] sm:$0xff]  ;;  %v681_v15 = vld [vmem:[%s2641_s4 + $0x528] sm:$0xff] }
 0x24f   : > { %919 = vmatpush1.msra.mxu1 %v676_v16  ;;  %990 = vmatpush1.msra.mxu0 %v678_v17  ;;  %v683_v16 = vld [vmem:[%s2641_s4 + $0x538] sm:$0xff]  ;;  %v680_v17 = vld [vmem:[%s2641_s4 + $0x520] sm:$0xff] }
 0x250   : > { %920 = vmatprep.subr.mxu1 %v665_v18  ;;  %991 = vmatprep.subr.mxu0 %v667_v19  ;;  %v682_v18 = vld [vmem:[%s2641_s4 + $0x530] sm:$0xff]  ;;  %v669_v19 = vld [vmem:[%s2641_s4 + $0x4c8] sm:$0xff] }
 0x251   : > { %921 = vmatpush1.msra.mxu1 %v664_v20  ;;  %992 = vmatpush1.msra.mxu0 %v666_v21  ;;  %v671_v20 = vld [vmem:[%s2641_s4 + $0x4d8] sm:$0xff]  ;;  %v668_v21 = vld [vmem:[%s2641_s4 + $0x4c0] sm:$0xff] }
 0x252   : > { %922 = vmatprep.subr.mxu1 %v653_v22  ;;  %993 = vmatprep.subr.mxu0 %v655_v23  ;;  %v670_v22 = vld [vmem:[%s2641_s4 + $0x4d0] sm:$0xff]  ;;  %v657_v23 = vld [vmem:[%s2641_s4 + $0x468] sm:$0xff] }
 0x253   : > { %923 = vmatpush1.msra.mxu1 %v652_v24  ;;  %994 = vmatpush1.msra.mxu0 %v654_v25  ;;  %v659_v24 = vld [vmem:[%s2641_s4 + $0x478] sm:$0xff]  ;;  %v656_v25 = vld [vmem:[%s2641_s4 + $0x460] sm:$0xff] }
 0x254   : > { %924 = vmatprep.subr.mxu1 %v641_v26  ;;  %995 = vmatprep.subr.mxu0 %v643_v27  ;;  %v658_v26 = vld [vmem:[%s2641_s4 + $0x470] sm:$0xff]  ;;  %v645_v27 = vld [vmem:[%s2641_s4 + $0x408] sm:$0xff] }
 0x255   : > { %925 = vmatpush1.msra.mxu1 %v640_v28  ;;  %996 = vmatpush1.msra.mxu0 %v642_v29  ;;  %v647_v28 = vld [vmem:[%s2641_s4 + $0x418] sm:$0xff]  ;;  %v644_v29 = vld [vmem:[%s2641_s4 + $0x400] sm:$0xff] }
 0x256   : > { %926 = vmatprep.subr.mxu1 %v629_v30  ;;  %997 = vmatprep.subr.mxu0 %v631_v31  ;;  %v646_v30 = vld [vmem:[%s2641_s4 + $0x410] sm:$0xff]  ;;  %v633_v31 = vld [vmem:[%s2641_s4 + $0x3a8] sm:$0xff] }
 0x257   : > { %927 = vmatpush1.msra.mxu1 %v628_v32  ;;  %998 = vmatpush1.msra.mxu0 %v630_v33  ;;  %v635_v32 = vld [vmem:[%s2641_s4 + $0x3b8] sm:$0xff]  ;;  %v632_v33 = vld [vmem:[%s2641_s4 + $0x3a0] sm:$0xff] }
 0x258   : > { %928 = vmatprep.subr.mxu1 %v617_v34  ;;  %999 = vmatprep.subr.mxu0 %v619_v35  ;;  %v634_v34 = vld [vmem:[%s2641_s4 + $0x3b0] sm:$0xff]  ;;  %v621_v35 = vld [vmem:[%s2641_s4 + $0x348] sm:$0xff] }
 0x259   : > { %929 = vmatpush1.msra.mxu1 %v616_v36  ;;  %1000 = vmatpush1.msra.mxu0 %v618_v37  ;;  %v623_v36 = vld [vmem:[%s2641_s4 + $0x358] sm:$0xff]  ;;  %v620_v37 = vld [vmem:[%s2641_s4 + $0x340] sm:$0xff] }
 0x25a   : > { %930 = vmatprep.subr.mxu1 %v605_v38  ;;  %1001 = vmatprep.subr.mxu0 %v607_v40  ;;  %v622_v38 = vld [vmem:[%s2641_s4 + $0x350] sm:$0xff]  ;;  %v609_v40 = vld [vmem:[%s2641_s4 + $0x2e8] sm:$0xff] }
 0x25b   : > { %931 = vmatpush1.msra.mxu1 %v604_v41  ;;  %1002 = vmatpush1.msra.mxu0 %v606_v42  ;;  %v611_v41 = vld [vmem:[%s2641_s4 + $0x2f8] sm:$0xff]  ;;  %v608_v42 = vld [vmem:[%s2641_s4 + $0x2e0] sm:$0xff] }
 0x25c   : > { %932 = vmatprep.subr.mxu1 %v593_v44  ;;  %1003 = vmatprep.subr.mxu0 %v595_v45  ;;  %v610_v44 = vld [vmem:[%s2641_s4 + $0x2f0] sm:$0xff]  ;;  %v597_v45 = vld [vmem:[%s2641_s4 + $0x288] sm:$0xff] }
 0x25d   : > { %933 = vmatpush1.msra.mxu1 %v592_v46  ;;  %1004 = vmatpush1.msra.mxu0 %v594_v48  ;;  %v599_v46 = vld [vmem:[%s2641_s4 + $0x298] sm:$0xff]  ;;  %v596_v48 = vld [vmem:[%s2641_s4 + $0x280] sm:$0xff] }
 0x25e   : > { %934 = vmatprep.subr.mxu1 %v581_v49  ;;  %1005 = vmatprep.subr.mxu0 %v583_v50  ;;  %v598_v49 = vld [vmem:[%s2641_s4 + $0x290] sm:$0xff]  ;;  %v585_v50 = vld [vmem:[%s2641_s4 + $0x228] sm:$0xff] }
 0x25f   : > { %935 = vmatpush1.msra.mxu1 %v580_v51  ;;  %1006 = vmatpush1.msra.mxu0 %v582_v52  ;;  %v587_v51 = vld [vmem:[%s2641_s4 + $0x238] sm:$0xff]  ;;  %v584_v52 = vld [vmem:[%s2641_s4 + $0x220] sm:$0xff] }
 0x260   : > { %936 = vmatprep.subr.mxu1 %v569_v53  ;;  %1007 = vmatprep.subr.mxu0 %v571_v54  ;;  %v586_v53 = vld [vmem:[%s2641_s4 + $0x230] sm:$0xff]  ;;  %v573_v54 = vld [vmem:[%s2641_s4 + $0x1c8] sm:$0xff] }
 0x261   : > { %937 = vmatpush1.msra.mxu1 %v568_v55  ;;  %1008 = vmatpush1.msra.mxu0 %v570_v56  ;;  %v575_v55 = vld [vmem:[%s2641_s4 + $0x1d8] sm:$0xff]  ;;  %v572_v56 = vld [vmem:[%s2641_s4 + $0x1c0] sm:$0xff] }
 0x262   : > { %938 = vmatprep.subr.mxu1 %v557_v57  ;;  %1009 = vmatprep.subr.mxu0 %v559_v58  ;;  %v574_v57 = vld [vmem:[%s2641_s4 + $0x1d0] sm:$0xff]  ;;  %v561_v58 = vld [vmem:[%s2641_s4 + $0x168] sm:$0xff] }
 0x263   : > { %939 = vmatpush1.msra.mxu1 %v556_v59  ;;  %1010 = vmatpush1.msra.mxu0 %v558_v60  ;;  %v563_v59 = vld [vmem:[%s2641_s4 + $0x178] sm:$0xff]  ;;  %v560_v60 = vld [vmem:[%s2641_s4 + $0x160] sm:$0xff] }
 0x264   : > { %940 = vmatprep.subr.mxu1 %v545_v61  ;;  %1011 = vmatprep.subr.mxu0 %v547_v62  ;;  %v562_v61 = vld [vmem:[%s2641_s4 + $0x170] sm:$0xff]  ;;  %v549_v62 = vld [vmem:[%s2641_s4 + $0x108] sm:$0xff] }
 0x265   : > { %941 = vmatpush1.msra.mxu1 %v544_v63  ;;  %1012 = vmatpush1.msra.mxu0 %v546_v0  ;;  %v551_v63 = vld [vmem:[%s2641_s4 + $0x118] sm:$0xff]  ;;  %v548_v0 = vld [vmem:[%s2641_s4 + $0x100] sm:$0xff] }
 0x266   : > { %942 = vmatprep.subr.mxu1 %v533_v2  ;;  %1013 = vmatprep.subr.mxu0 %v535_v3  ;;  %v550_v2 = vld [vmem:[%s2641_s4 + $0x110] sm:$0xff]  ;;  %v537_v3 = vld [vmem:[%s2641_s4 + $0xa8] sm:$0xff] }
 0x267   : > { %943 = vmatpush1.msra.mxu1 %v532_v4  ;;  %1014 = vmatpush1.msra.mxu0 %v534_v5  ;;  %v539_v4 = vld [vmem:[%s2641_s4 + $0xb8] sm:$0xff]  ;;  %v536_v5 = vld [vmem:[%s2641_s4 + $0xa0] sm:$0xff] }
 0x268   : > { %944 = vmatprep.subr.mxu1 %v521_v6  ;;  %1015 = vmatprep.subr.mxu0 %v523_v7  ;;  %v538_v6 = vld [vmem:[%s2641_s4 + $0xb0] sm:$0xff]  ;;  %v525_v7 = vld [vmem:[%s2641_s4 + $0x48] sm:$0xff] }
 0x269   : > { %945 = vmatpush1.msra.mxu1 %v520_v8  ;;  %978 = vmatprep.mubr.f32.mxu1 %v1736_v1  ;;  %v527_v8 = vld [vmem:[%s2641_s4 + $0x58] sm:$0xff] }
 0x26a   : > { %1016 = vmatpush1.msra.mxu0 %v522_v9  ;;  %1049 = vmatprep.mubr.f32.mxu0 %v1736_v1  ;;  %v695_v1 = vld [vmem:[%s2641_s4 + $0x598] sm:$0xff]  ;;  %v524_v9 = vld [vmem:[%s2641_s4 + $0x40] sm:$0xff] }
 0x26b   : > { %979 = vmatmul.mubr.f32.vlgmr.msra.gmra.mxu1 %v2150_v12  ;;  %1050 = vmatmul.mubr.f32.vlgmr.msra.gmra.mxu0 %v2150_v12 }
 0x26c   : > { %1056 = vmatprep.subr.mxu1 %v705_v10  ;;  %1127 = vmatprep.subr.mxu0 %v707_v11  ;;  %v526_v10 = vld [vmem:[%s2641_s4 + $0x50] sm:$0xff]  ;;  %v1712_v11 = vld [vmem:[#allocation5] sm:$0xff] }
 0x26d   : > { %1057 = vmatpush1.msra.mxu1 %v704_v39  ;;  %1128 = vmatpush1.msra.mxu0 %v706_v43  ;;  %v1388_v39 = vld [vmem:[%s2644_s7 + $0x78] sm:$0xff]  ;;  %v1387_v43 = vld [vmem:[%s2644_s7 + $0x70] sm:$0xff] }
 0x26e   : > { %1058 = vmatprep.subr.mxu1 %v693_v47  ;;  %1129 = vmatprep.subr.mxu0 %v695_v1  ;;  %v1386_v47 = vld [vmem:[%s2644_s7 + $0x68] sm:$0xff]  ;;  %v1385_v1 = vld [vmem:[%s2644_s7 + $0x60] sm:$0xff] }
 0x26f   : > { %1059 = vmatpush1.msra.mxu1 %v692_v13  ;;  %1130 = vmatpush1.msra.mxu0 %v694_v14  ;;  %v1383_v13 = vld [vmem:[%s2644_s7 + $0x50] sm:$0xff]  ;;  %v1382_v14 = vld [vmem:[%s2644_s7 + $0x48] sm:$0xff] }
 0x270   : > { %1060 = vmatprep.subr.mxu1 %v681_v15  ;;  %1131 = vmatprep.subr.mxu0 %v683_v16  ;;  %v1381_v15 = vld [vmem:[%s2644_s7 + $0x40] sm:$0xff]  ;;  %v1380_v16 = vld [vmem:[%s2644_s7 + $0x38] sm:$0xff] }
 0x271   : > { %1061 = vmatpush1.msra.mxu1 %v680_v17  ;;  %1132 = vmatpush1.msra.mxu0 %v682_v18  ;;  %v1379_v17 = vld [vmem:[%s2644_s7 + $0x30] sm:$0xff]  ;;  %v1378_v18 = vld [vmem:[%s2644_s7 + $0x28] sm:$0xff] }
 0x272   : > { %1062 = vmatprep.subr.mxu1 %v669_v19  ;;  %1133 = vmatprep.subr.mxu0 %v671_v20  ;;  %v1377_v19 = vld [vmem:[%s2644_s7 + $0x20] sm:$0xff]  ;;  %v1376_v20 = vld [vmem:[%s2644_s7 + $0x18] sm:$0xff] }
 0x273   : > { %1063 = vmatpush1.msra.mxu1 %v668_v21  ;;  %1134 = vmatpush1.msra.mxu0 %v670_v22  ;;  %v1375_v21 = vld [vmem:[%s2644_s7 + $0x10] sm:$0xff]  ;;  %v1374_v22 = vld [vmem:[%s2644_s7 + $0x8] sm:$0xff] }
 0x274   : > { %1064 = vmatprep.subr.mxu1 %v657_v23  ;;  %1135 = vmatprep.subr.mxu0 %v659_v24  ;;  %v1373_v23 = vld [vmem:[%s2644_s7] sm:$0xff]  ;;  %v1372_v24 = vld [vmem:[#allocation3] sm:$0xff] }
 0x275   : > { %1065 = vmatpush1.msra.mxu1 %v656_v25  ;;  %1136 = vmatpush1.msra.mxu0 %v658_v26  ;;  %v712_v25 = vlaneseq }
 0x276   : > { %1066 = vmatprep.subr.mxu1 %v645_v27  ;;  %1137 = vmatprep.subr.mxu0 %v647_v28  ;;  %v1738_v27 = vmov 1966171168  }
 0x277   : > { %1067 = vmatpush1.msra.mxu1 %v644_v29  ;;  %1138 = vmatpush1.msra.mxu0 %v646_v30  ;;  %v2582_v26 = vshrl.u32 %v712_v25, 7  ;;  %v1209_v28 = vunpack.c.l.s4 %v1738_v27  ;;  %vm2593_vm1 = vcmp.lt.s32.totalorder %v712_v25, 512 }
 0x278   : > { %1068 = vmatprep.subr.mxu1 %v633_v31  ;;  %1139 = vmatprep.subr.mxu0 %v635_v32 }
 0x279   : > { %1069 = vmatpush1.msra.mxu1 %v632_v33  ;;  %1140 = vmatpush1.msra.mxu0 %v634_v34  ;;  %v714_v29 = vsub.s32 0, %v2582_v26  ;;  %v722_v30 = vsub.s32 2, %v2582_v26  ;;  %v718_v31 = vsub.s32 1, %v2582_v26  ;;  %v726_v32 = vsub.s32 3, %v2582_v26  ;;  %v708_v33 = vld [vmem:[%s2642_s5] sm:$0xff] }
 0x27a   : > { %1070 = vmatprep.subr.mxu1 %v621_v35  ;;  %1141 = vmatprep.subr.mxu0 %v623_v36  ;;  %v1210_v34 = vunpack.c.0.s8 %v1209_v28  ;;  %vm1337_vm2 = vcmp.eq.s32.totalorder %v2582_v26, 2  ;;  %vm1336_vm3 = vcmp.eq.s32.totalorder %v2582_v26, 1  ;;  %vm1335_vm4 = vcmp.eq.s32.totalorder %v2582_v26, 0 }
 0x27b   : > { %1071 = vmatpush1.msra.mxu1 %v620_v37  ;;  %1142 = vmatpush1.msra.mxu0 %v622_v38  ;;  %v715_v35 = vrot.slane %v708_v33, %v714_v29  ;;  %v723_v36 = vrot.slane %v708_v33, %v722_v30  ;;  %v719_v37 = vrot.slane %v708_v33, %v718_v31  ;;  %vm1487_vm9 = vcmp.lt.s32.totalorder %v2582_v26, 3 }
 0x27c   : > { %1072 = vmatprep.subr.mxu1 %v609_v40  ;;  %1143 = vmatprep.subr.mxu0 %v611_v41  ;;  %v727_v38 = vrot.slane %v708_v33, %v726_v32 }
 0x27d   : > { %1073 = vmatpush1.msra.mxu1 %v608_v42  ;;  %1144 = vmatpush1.msra.mxu0 %v610_v44  ;;  %v1213_v44 = vsub.s32 %v1210_v34, %v2582_v26 }
 0x27e   : > { %1074 = vmatprep.subr.mxu1 %v597_v45  ;;  %1145 = vmatprep.subr.mxu0 %v599_v46 }
 0x27f   : > { %1075 = vmatpush1.msra.mxu1 %v596_v48  ;;  %1146 = vmatpush1.msra.mxu0 %v598_v49 }
 0x280   : > { %1076 = vmatprep.subr.mxu1 %v585_v50  ;;  %1147 = vmatprep.subr.mxu0 %v587_v51 }
 0x281   : > { %1077 = vmatpush1.msra.mxu1 %v584_v52  ;;  %1148 = vmatpush1.msra.mxu0 %v586_v53 }
 0x282   : > { %1078 = vmatprep.subr.mxu1 %v573_v54  ;;  %1149 = vmatprep.subr.mxu0 %v575_v55 }
 0x283   : > { %1079 = vmatpush1.msra.mxu1 %v572_v56  ;;  %1150 = vmatpush1.msra.mxu0 %v574_v57 }
 0x284   : > { %1080 = vmatprep.subr.mxu1 %v561_v58  ;;  %1151 = vmatprep.subr.mxu0 %v563_v59  ;;  %v730_v58 = vsub.s32 4, %v2582_v26  ;;  %v738_v59 = vsub.s32 6, %v2582_v26 }
 0x285   : > { %1081 = vmatpush1.msra.mxu1 %v560_v60  ;;  %1152 = vmatpush1.msra.mxu0 %v562_v61  ;;  %v734_v60 = vsub.s32 5, %v2582_v26  ;;  %v742_v61 = vsub.s32 7, %v2582_v26 }
 0x286   : > { %1082 = vmatprep.subr.mxu1 %v549_v62  ;;  %1153 = vmatprep.subr.mxu0 %v551_v63  ;;  %v731_v62 = vrot.slane %v708_v33, %v730_v58  ;;  %v739_v63 = vrot.slane %v708_v33, %v738_v59 }
 0x287   : > { %1083 = vmatpush1.msra.mxu1 %v548_v0  ;;  %1154 = vmatpush1.msra.mxu0 %v550_v2  ;;  %v735_v0 = vrot.slane %v708_v33, %v734_v60  ;;  %v743_v2 = vrot.slane %v708_v33, %v742_v61 }
 0x288   : > { %1084 = vmatprep.subr.mxu1 %v537_v3  ;;  %1155 = vmatprep.subr.mxu0 %v539_v4 }
 0x289   : > { %1085 = vmatpush1.msra.mxu1 %v536_v5  ;;  %1156 = vmatpush1.msra.mxu0 %v538_v6 }
 0x28a   : > { %1086 = vmatprep.subr.mxu1 %v525_v7  ;;  %1157 = vmatprep.subr.mxu0 %v527_v8 }
 0x28b   : > { %1087 = vmatpush1.msra.mxu1 %v524_v9  ;;  %1120 = vmatprep.mubr.f32.mxu1 %v1712_v11 }
 0x28c   : > { %1158 = vmatpush1.msra.mxu0 %v526_v10  ;;  %1191 = vmatprep.mubr.f32.mxu0 %v1712_v11 }
 0x28d   : > { %1121 = vmatmul.mubr.f32.vlgmr.msra.gmra.mxu1 %v2150_v12  ;;  %1192 = vmatmul.mubr.f32.vlgmr.msra.gmra.mxu0 %v2150_v12  ;;  %v1384_v12 = vld [vmem:[%s2644_s7 + $0x58] sm:$0xff] }
 0x28e   : > { %1635 = vmatprep.subr.mxu1 %v1712_v11  ;;  %1667 = vmatprep.mubr.msk.f32.mxu1 %vm1737_vm0, %v1712_v11 }
 0x28f   : > { %1636 = vmatpush3.msra.mxu1 %v1388_v39 }
 0x290   : > { %1637 = vmatprep.subr.mxu1 %v1712_v11 }
 0x291   : > { %1638 = vmatpush3.msra.mxu1 %v1387_v43 }
 0x292   : > { %1639 = vmatprep.subr.mxu1 %v1712_v11 }
 0x293   : > { %1640 = vmatpush3.msra.mxu1 %v1386_v47 }
 0x294   : > { %1641 = vmatprep.subr.mxu1 %v1712_v11 }
 0x295   : > { %1642 = vmatpush3.msra.mxu1 %v1385_v1 }
 0x296   : > { %1643 = vmatprep.subr.mxu1 %v1712_v11 }
 0x297   : > { %1644 = vmatpush3.msra.mxu1 %v1384_v12 }
 0x298   : > { %1645 = vmatprep.subr.mxu1 %v1712_v11 }
 0x299   : > { %1646 = vmatpush3.msra.mxu1 %v1383_v13  ;;  %v709_v13 = vld [vmem:[%s2642_s5 + $0x8] sm:$0xf] }
 0x29a   : > { %1647 = vmatprep.subr.mxu1 %v1712_v11 }
 0x29b   : > { %1648 = vmatpush3.msra.mxu1 %v1382_v14  ;;  %v747_v14 = vrot.slane %v709_v13, %v714_v29 }
 0x29c   : > { %1649 = vmatprep.subr.mxu1 %v1712_v11 }
 0x29d   : > { %1650 = vmatpush3.msra.mxu1 %v1381_v15  ;;  %v755_v15 = vrot.slane %v709_v13, %v722_v30 }
 0x29e   : > { %1651 = vmatprep.subr.mxu1 %v1712_v11 }
 0x29f   : > { %1652 = vmatpush3.msra.mxu1 %v1380_v16  ;;  %v751_v16 = vrot.slane %v709_v13, %v718_v31 }
 0x2a0   : > { %1653 = vmatprep.subr.mxu1 %v1712_v11 }
 0x2a1   : > { %1654 = vmatpush3.msra.mxu1 %v1379_v17  ;;  %v759_v17 = vrot.slane %v709_v13, %v726_v32 }
 0x2a2   : > { %1655 = vmatprep.subr.mxu1 %v1712_v11 }
 0x2a3   : > { %1656 = vmatpush3.msra.mxu1 %v1378_v18 }
 0x2a4   : > { %1657 = vmatprep.subr.mxu1 %v1712_v11 }
 0x2a5   : > { %1658 = vmatpush3.msra.mxu1 %v1377_v19 }
 0x2a6   : > { %1659 = vmatprep.subr.mxu1 %v1712_v11 }
 0x2a7   : > { %1660 = vmatpush3.msra.mxu1 %v1376_v20 }
 0x2a8   : > { %1661 = vmatprep.subr.mxu1 %v1712_v11 }
 0x2a9   : > { %1662 = vmatpush3.msra.mxu1 %v1375_v21 }
 0x2aa   : > { %1663 = vmatprep.subr.mxu1 %v1712_v11 }
 0x2ab   : > { %1664 = vmatpush3.msra.mxu1 %v1374_v22 }
 0x2ac   : > { %1665 = vmatprep.subr.mxu1 %v1712_v11 }
 0x2ad   : > { %1666 = vmatpush3.msra.mxu1 %v1373_v23 }
 0x2ae   : > { %1668 = vmatmul.mubr.f32.vlgmr.msra.gmra.mxu1 %v1372_v24 }
 0x30a   : > { %v838_v40 = vpop.f32.mrf.mxu1  ;;  %v909_v41 = vpop.f32.mrf.mxu0 }
 0x30b   : > { %v839_v46 = vadd.f32 %v838_v40, %v715_v35  ;;  %v910_v48 = vadd.f32 %v909_v41, %v723_v36 }
 0x30c   : > { %v840_v42 = vpop.f32.mrf.mxu1  ;;  %v911_v45 = vpop.f32.mrf.mxu0 }
 0x30d   : > { %v841_v49 = vadd.f32 %v840_v42, %v719_v37  ;;  %v912_v50 = vadd.f32 %v911_v45, %v727_v38  ;;  %v1555_v45 = vld [vmem:[%s2645_s8] ss:$0 sm:$0xff] }
 0x30f   : > { %v1206_v51 = vcombine.low %v839_v46, %v841_v49  ;;  %v1207_v52 = vcombine.low %v910_v48, %v912_v50 }
 0x311   : > { %v1214_v53 = vrot.slane %v1206_v51, %v1213_v44  ;;  %v1221_v54 = vrot.slane %v1207_v52, %v1213_v44 }
 0x313   : > { %v1222_v55 = vcombine.low %v1214_v53, %v1221_v54 }
 0x315   : > { %v1229_v57 = vrot.slane %v1222_v55, %v1213_v44 }
 0x317   : > { %1235 = vst.msk [vmem:[#allocation5] ss:$8 sm:$0xf] %vm2593_vm1, %v1229_v57 }
 0x32b   : > { %v980_v3 = vpop.f32.mrf.mxu1  ;;  %v1051_v4 = vpop.f32.mrf.mxu0 }
 0x32c   : > { %v981_v7 = vadd.f32 %v980_v3, %v731_v62  ;;  %v1052_v8 = vadd.f32 %v1051_v4, %v739_v63 }
 0x32d   : > { %v982_v5 = vpop.f32.mrf.mxu1  ;;  %v1053_v6 = vpop.f32.mrf.mxu0 }
 0x32e   : > { %v983_v9 = vadd.f32 %v982_v5, %v735_v0  ;;  %v1054_v10 = vadd.f32 %v1053_v6, %v743_v2 }
 0x330   : > { %v1241_v11 = vcombine.low %v981_v7, %v983_v9  ;;  %v1242_v39 = vcombine.low %v1052_v8, %v1054_v10  ;;  %v1338_v8 = vstv %s1839_s14 }
 0x332   : > { %v1249_v43 = vrot.slane %v1241_v11, %v1213_v44  ;;  %v1256_v47 = vrot.slane %v1242_v39, %v1213_v44  ;;  %v1339_v11 = vsel %vm1337_vm2, %v1338_v8, 4294967295  ;;  %v1340_v39 = vstv %s1832_s30 }
 0x334   : > { %v1257_v1 = vcombine.high %v1249_v43, %v1256_v47  ;;  %v1345_v47 = vand.u32 127, %v712_v25 }
 0x336   : > { %v1264_v12 = vrot.slane %v1257_v1, %v1213_v44  ;;  %v1341_v1 = vsel %vm1336_vm3, %v1340_v39, %v1339_v11  ;;  %v1346_v13 = vadd.s32 128, %v1345_v47  ;;  %vm1488_vm11 = vcmp.eq.s32.totalorder %v1345_v47, %v2582_v26 }
 0x337   : > { %vm1489_vm13 = vmand %vm1487_vm9, %vm1488_vm11 }
 0x338   : > { %1267 = vst.msk [vmem:[#allocation5 + $0x1] ss:$8 sm:$0xf] %vm2593_vm1, %v1264_v12  ;;  %v1342_v12 = vstv %s1841_s15 }
 0x34d   : > { %v1122_v18 = vpop.f32.mrf.mxu1  ;;  %v1193_v19 = vpop.f32.mrf.mxu0 }
 0x34e   : > { %v1123_v22 = vadd.f32 %v1122_v18, %v747_v14  ;;  %v1194_v23 = vadd.f32 %v1193_v19, %v755_v15  ;;  %v1343_v14 = vsel %vm1335_vm4, %v1342_v12, %v1341_v1  ;;  %v1347_v15 = vadd.s32 256, %v1345_v47 }
 0x34f   : > { %v1124_v20 = vpop.f32.mrf.mxu1  ;;  %v1195_v21 = vpop.f32.mrf.mxu0  ;;  %vm1349_vm5 = vcmp.eq.s32.totalorder %v1345_v47, %v1343_v14  ;;  %vm1350_vm6 = vcmp.eq.s32.totalorder %v1346_v13, %v1343_v14 }
 0x350   : > { %v1125_v24 = vadd.f32 %v1124_v20, %v751_v16  ;;  %v1196_v27 = vadd.f32 %v1195_v21, %v759_v17  ;;  %v1348_v17 = vadd.s32 384, %v1345_v47  ;;  %vm1351_vm7 = vcmp.eq.s32.totalorder %v1347_v15, %v1343_v14 }
 0x352   : > { %v1273_v28 = vcombine.low %v1123_v22, %v1125_v24  ;;  %v1274_v33 = vcombine.low %v1194_v23, %v1196_v27  ;;  %vm1352_vm8 = vcmp.eq.s32.totalorder %v1348_v17, %v1343_v14 }
 0x354   : > { %v1281_v34 = vrot.slane %v1273_v28, %v1213_v44  ;;  %v1288_v35 = vrot.slane %v1274_v33, %v1213_v44 }
 0x356   : > { %v1289_v36 = vcombine.low %v1281_v34, %v1288_v35  ;;  %v1478_v34 = vld [vmem:[%s2646_s9] sm:$0xff] }
 0x358   : > { %v1296_v37 = vrot.slane %v1289_v36, %v1213_v44 }
 0x35a   : > { %v1297_v38 = vcombine.high %v1296_v37, %v1296_v37 }
 0x35c   : > { %1300 = vst.msk [vmem:[#allocation5 + $0x2] ss:$8 sm:$0xf] %vm2593_vm1, %v1297_v38  ;;  %v1739_v38 = vmov 0  }
 0x35d   : > { %1683 = vset.pattern.permute.xlu0 %v1739_v38 }
 0x363   : > { %v1302_v29 = vld [vmem:[#allocation5] sm:$0xff]  ;;  %v1303_v30 = vld [vmem:[#allocation5 + $0x8] sm:$0xff]  ;;  %v1304_v31 = vld [vmem:[#allocation5 + $0x10] sm:$0xff] }
 0x364   : > { %v1305_v32 = vld [vmem:[#allocation5 + $0x18] sm:$0xff]  ;;  %v1306_v40 = vmax.f32 %v1302_v29, %v1303_v30 }
 0x365   : > { %v1307_v41 = vmax.f32 %v1304_v31, %v1305_v32 }
 0x367   : > { %v1308_v42 = vmax.f32 %v1306_v40, %v1307_v41 }
 0x369   : > { %1309 = vmax.xlane.f32.xlu1 %v1308_v42  ;;  %v1496_v42 = vadd.s32 3, %v2582_v26 }
 0x36b   : > { %vm1497_vm10 = vcmp.eq.s32.totalorder %v1345_v47, %v1496_v42 }
 0x36c   : > { %vm1498_vm12 = vmand %vm1487_vm9, %vm1497_vm10 }
 0x36e   : > { %v1462_v46 = vpop.f32.mrf.mxu1 }
 0x36f   : > { %v1463_v48 = vadd.f32 %v1555_v45, %v1462_v46 }
 0x370   : > { %v1669_v49 = vpop.f32.mrf.mxu1 }
 0x371   : > { %1696 = vtanh.f32 %v1463_v48 }
 0x37e   : > { %v1697_v44 = vpop.eup %1696 }
 0x37f   : > { %1467 = vadd.xlane.f32.xlu0 %v1697_v44 }
 0x3f2   : > { %v1310_v50 = vpop.xlane.xlu1 %1309 }
 0x3f3   : > { %v1311_v51 = vsub.f32 %v1302_v29, %v1310_v50  ;;  %v1312_v52 = vsub.f32 %v1303_v30, %v1310_v50  ;;  %v1313_v53 = vsub.f32 %v1304_v31, %v1310_v50  ;;  %v1314_v54 = vsub.f32 %v1305_v32, %v1310_v50  ;;  %v1482_v29 = vld [vmem:[%s2647_s10] sm:$0xff] }
 0x3f5   : > { %v1315_v55 = vmul.f32 1.442695, %v1311_v51  ;;  %v1317_v56 = vmul.f32 1.442695, %v1312_v52  ;;  %v1319_v57 = vmul.f32 1.442695, %v1313_v53 }
 0x3f6   : > { %v1321_v58 = vmul.f32 1.442695, %v1314_v54 }
 0x3f7   : > { %1698 = vpow2.f32 %v1315_v55 }
 0x3f8   : > { %1700 = vpow2.f32 %v1317_v56 }
 0x3f9   : > { %1702 = vpow2.f32 %v1319_v57 }
 0x3fa   : > { %1704 = vpow2.f32 %v1321_v58 }
 0x404   : > { %v1699_v59 = vpop.eup %1698 }
 0x405   : > { %v1701_v60 = vpop.eup %1700 }
 0x406   : > { %v1323_v61 = vadd.f32 %v1701_v60, %v1699_v59  ;;  %v1703_v62 = vpop.eup %1702 }
 0x407   : > { %v1705_v2 = vpop.eup %1704 }
 0x408   : > { %v1468_v63 = vpop.xlane.xlu0 %1467  ;;  %v1324_v0 = vadd.f32 %v1703_v62, %v1323_v61 }
 0x409   : > { %v1469_v3 = vmul.f32 0.0078125, %v1468_v63 }
 0x40a   : > { %v1325_v4 = vadd.f32 %v1705_v2, %v1324_v0 }
 0x40b   : > { %v1470_v5 = vsub.f32 %v1697_v44, %v1469_v3 }
 0x40c   : > { %1326 = vadd.xlane.f32.xlu1 %v1325_v4 }
 0x40d   : > { %v1471_v6 = vmul.f32 %v1470_v5, %v1470_v5 }
 0x40f   : > { %1472 = vadd.xlane.f32.xlu0 %v1471_v6 }
 0x495   : > { %v1327_v7 = vpop.xlane.xlu1 %1326 }
 0x496   : > { %1706 = vrcp.f32 %v1327_v7 }
 0x498   : > { %v1473_v9 = vpop.xlane.xlu0 %1472 }
 0x499   : > { %v1474_v10 = vmul.f32 0.0078125, %v1473_v9 }
 0x49b   : > { %v1475_v43 = vadd.f32 1e-06, %v1474_v10 }
 0x49d   : > { %1708 = vrsqrt.f32 %v1475_v43 }
 0x4a3   : > { %v1707_v16 = vpop.eup %1706 }
 0x4a4   : > { %v1329_v18 = vmul.f32 %v1707_v16, %v1699_v59  ;;  %v1330_v19 = vmul.f32 %v1707_v16, %v1701_v60  ;;  %v1331_v20 = vmul.f32 %v1707_v16, %v1703_v62  ;;  %v1332_v21 = vmul.f32 %v1707_v16, %v1705_v2 }
 0x4a6   : > { %v1353_v22 = vsel %vm1349_vm5, %v1329_v18, 0.0  ;;  %v1354_v23 = vsel %vm1350_vm6, %v1330_v19, 0.0  ;;  %v1355_v24 = vsel %vm1351_vm7, %v1331_v20, 0.0  ;;  %v1356_v33 = vsel %vm1352_vm8, %v1332_v21, 0.0 }
 0x4a7   : > { %v1357_v25 = vadd.f32 %v1354_v23, %v1353_v22 }
 0x4a9   : > { %v1358_v27 = vadd.f32 %v1357_v25, %v1355_v24 }
 0x4aa   : > { %v1709_v28 = vpop.eup %1708 }
 0x4ab   : > { %v1359_v35 = vadd.f32 %v1358_v27, %v1356_v33  ;;  %v1477_v36 = vmul.f32 %v1709_v28, %v1470_v5 }
 0x4ad   : > { %1360 = vadd.xlane.f32.xlu1 %v1359_v35  ;;  %v1479_v37 = vmul.f32 %v1478_v34, %v1477_v36 }
 0x4af   : > { %1480 = vadd.xlane.f32.xlu0 %v1479_v37 }
 0x536   : > { %v1361_v45 = vpop.xlane.xlu1 %1360 }
 0x537   : > { %v1499_v48 = vsel %vm1498_vm12, %v1361_v45, 0.0 }
 0x538   : > { %v1481_v30 = vpop.xlane.xlu0 %1480 }
 0x539   : > { %v1483_v31 = vadd.f32 %v1482_v29, %v1481_v30 }
 0x53b   : > { %v1484_v32 = vsub.f32 0.0, %v1483_v31 }
 0x53d   : > { %v1485_v40 = vmul.f32 1.442695, %v1484_v32 }
 0x53f   : > { %1710 = vpow2.f32 %v1485_v40 }
 0x54c   : > { %v1711_v41 = vpop.eup %1710 }
 0x54d   : > { %1492 = vperm.xlu0 %1683, %v1711_v41  }
 0x5c8   : > { %v1493_v46 = vpop.permute.xlu0 %1492 }
 0x5c9   : > { %v1495_v49 = vsel %vm1489_vm13, %v1493_v46, 0.0 }
 0x5ca   : > { %v1500_v44 = vadd.f32 %v1499_v48, %v1495_v49 }
 0x5cc   : > { %v1501_v50 = vrot.slane %v1500_v44, 4 }
 0x5ce   : > { %v1502_v51 = vadd.f32 %v1501_v50, %v1500_v44 }
 0x5d0   : > { %v1503_v52 = vrot.slane %v1502_v51, 2 }
 0x5d2   : > { %v1504_v53 = vadd.f32 %v1503_v52, %v1502_v51 }
 0x5d4   : > { %v1505_v54 = vrot.slane %v1504_v53, 1 }
 0x5d6   : > { %v1506_v55 = vadd.f32 %v1505_v54, %v1504_v53 }
 0x5d8   : > { %1507 = vst [vmem:[%s342_s25] sm:$0x1] %v1506_v55 }
 0x5d9 PF: > { %s27_s22 = sadd.s32 1, %s1733_s22  }
 0x5da   : > { %p24_p9 = scmp.ge.s32.totalorder %s27_s22, 5  }
 0x5dc   :  { %26 = sbr.rel (!%p24_p9) target bundleno = 16 (0x10), region = 95 }

</bundles_post_ra>
